<compile_context>
chip_gen: v7x
topology: tpu7x:2x2x1
jax: 0.10.0
libtpu: 0.0.40
codegen_flags: <defaults>
</compile_context>

<pallas_src>
import jax
import jax.numpy as jnp
from jax import lax
from jax.experimental import pallas as pl
from jax.experimental.pallas import tpu as pltpu

INPUT_SIZE = 32        # small stand-in for the module's input_size=400
HIDDEN_SIZE = 128
NUM_LAYERS = 2
NUM_CLASSES = 6
BATCH = 2
SEQ = 8

_B_TILE = 8            # batch rows per grid step (sublane multiple)
_LANE = 128


def _round_up(x, m):
    return (x + m - 1) // m * m


# ---------------------------------------------------------------------------
# Fused kernel: 2 wavefront-interleaved LSTM layers + FC, one invocation.
# ---------------------------------------------------------------------------
def _fused_lstm_fc_kernel(x_ref,        # (1, S*Bt, Dp)  bf16, batch-tile slab
                          w_ih0_ref,    # (Dp, 4H)       bf16, pre-transposed
                          w_hh0_ref,    # (H, 4H)        bf16
                          b0_ref,       # (1, 4H)        f32, b_ih + b_hh folded
                          w_cat1_ref,   # (2H, 4H)       bf16, [W_ih1^T; W_hh1^T]
                          b1_ref,       # (1, 4H)        f32
                          fc_w_ref,     # (H, Cp)        bf16, pre-transposed
                          fc_b_ref,     # (1, Cp)        f32
                          out_ref,      # (Bt, Cp)       f32
                          xg0_ref):     # VMEM scratch (S*Bt, 4H) f32
    H = w_hh0_ref.shape[0]
    Bt = out_ref.shape[0]
    S = x_ref.shape[1] // Bt

    # ---- Off the critical path: batched layer-0 input projection for ALL
    # timesteps, staged in VMEM scratch (not held live in vregs across the
    # unrolled serial loop).
    xg0_ref[...] = jnp.dot(x_ref[0], w_ih0_ref[...],
                           preferred_element_type=jnp.float32) + b0_ref[...]

    w_hh0 = w_hh0_ref[...]
    w_cat1 = w_cat1_ref[...]
    b1 = b1_ref[...]

    def cell(gates, c_prev):
        # PyTorch gate order: input, forget, cell(g), output.
        # Each slice is a clean 128-lane block (maps 1:1 to vregs);
        # sigmoids grouped so EUP pushes stay back-to-back.
        i = jax.nn.sigmoid(gates[:, 0 * H:1 * H])
        f = jax.nn.sigmoid(gates[:, 1 * H:2 * H])
        o = jax.nn.sigmoid(gates[:, 3 * H:4 * H])
        g = jnp.tanh(gates[:, 2 * H:3 * H])
        c = f * c_prev + i * g
        h = o * jnp.tanh(c)
        return h, c

    zeros = jnp.zeros((Bt, H), jnp.float32)
    h0, c0 = zeros, zeros
    h1, c1 = zeros, zeros

    # ---- Wavefront over both layers: S is small & static -> fully unrolled.
    # TODO(synk): for much longer SEQ, switch to lax.fori_loop(..., unroll=2..4)
    # with h/c carried, reading xg0 via pl.ds.
    for t in range(S):
        # Layer 0: only the recurrent matmul sits on the serial path.
        gates0 = xg0_ref[t * Bt:(t + 1) * Bt, :] + jnp.dot(
            h0.astype(jnp.bfloat16), w_hh0, preferred_element_type=jnp.float32)
        h0, c0 = cell(gates0, c0)

        # Layer 1: single fused matmul [h0_t, h1_{t-1}] @ [W_ih1^T; W_hh1^T].
        hcat = jnp.concatenate([h0, h1], axis=1).astype(jnp.bfloat16)
        gates1 = jnp.dot(hcat, w_cat1, preferred_element_type=jnp.float32) + b1
        h1, c1 = cell(gates1, c1)

    # ---- FC on the last timestep, fused (no HBM round trip).
    out_ref[...] = jnp.dot(h1.astype(jnp.bfloat16), fc_w_ref[...],
                           preferred_element_type=jnp.float32) + fc_b_ref[...]


# ---------------------------------------------------------------------------
# Wrappers
# ---------------------------------------------------------------------------
def prepare_params(params, num_layers=NUM_LAYERS):
    """One-time transform: transpose, fold biases, fuse layer-1 weights, pad, bf16."""
    H = params["w_hh_l0"].shape[1]
    D = params["w_ih_l0"].shape[1]
    C = params["fc_w"].shape[0]
    Dp = _round_up(D, _LANE)
    Cp = _round_up(C, _LANE)

    w_ih0 = jnp.pad(jnp.asarray(params["w_ih_l0"]).T,
                    ((0, Dp - D), (0, 0))).astype(jnp.bfloat16)          # (Dp, 4H)
    w_hh0 = jnp.asarray(params["w_hh_l0"]).T.astype(jnp.bfloat16)        # (H, 4H)
    b0 = (params["b_ih_l0"] + params["b_hh_l0"]).reshape(1, 4 * H).astype(jnp.float32)

    # Fused layer-1 weight: gates1 = [h0_t, h1_{t-1}] @ [W_ih1^T; W_hh1^T] + b1
    w_cat1 = jnp.concatenate(
        [jnp.asarray(params["w_ih_l1"]).T, jnp.asarray(params["w_hh_l1"]).T],
        axis=0).astype(jnp.bfloat16)                                     # (2H, 4H)
    b1 = (params["b_ih_l1"] + params["b_hh_l1"]).reshape(1, 4 * H).astype(jnp.float32)

    fc_w = jnp.pad(jnp.asarray(params["fc_w"]).T,
                   ((0, 0), (0, Cp - C))).astype(jnp.bfloat16)           # (H, Cp)
    fc_b = jnp.pad(jnp.asarray(params["fc_b"]),
                   (0, Cp - C)).reshape(1, Cp).astype(jnp.float32)       # (1, Cp)

    return {"w_ih0": w_ih0, "w_hh0": w_hh0, "b0": b0,
            "w_cat1": w_cat1, "b1": b1, "fc_w": fc_w, "fc_b": fc_b}


@jax.jit
def time_series_lstm_forward(x, prepped):
    """Forward matching TimeSeriesLSTM.forward: x (B, S, input_size) -> (B, C)."""
    B, S, D = x.shape
    H = prepped["w_hh0"].shape[0]
    Dp = prepped["w_ih0"].shape[0]
    Cp = prepped["fc_w"].shape[1]
    Bp = _round_up(max(B, _B_TILE), _B_TILE)
    nb = Bp // _B_TILE                       # batch tiles -> parallel grid axis

    # Time-major, batch/feature padded, regrouped by batch tile so the kernel
    # sees a flat lane-dense (S*Bt, Dp) slab per grid step (no in-kernel reshape).
    x_tm = jnp.transpose(x.astype(jnp.float32), (1, 0, 2))               # (S, B, D)
    x_tm = jnp.pad(x_tm, ((0, 0), (0, Bp - B), (0, Dp - D)))             # (S, Bp, Dp)
    x_tiles = (x_tm.reshape(S, nb, _B_TILE, Dp)
                   .transpose(1, 0, 2, 3)
                   .reshape(nb, S * _B_TILE, Dp)
                   .astype(jnp.bfloat16))                                # (nb, S*Bt, Dp)

    out_padded = pl.pallas_call(
        _fused_lstm_fc_kernel,
        out_shape=jax.ShapeDtypeStruct((Bp, Cp), jnp.float32),
        grid=(nb,),
        in_specs=[
            pl.BlockSpec((1, S * _B_TILE, Dp), lambda b: (b, 0, 0)),   # x (per tile)
            pl.BlockSpec((Dp, 4 * H), lambda b: (0, 0)),               # w_ih0
            pl.BlockSpec((H, 4 * H), lambda b: (0, 0)),                # w_hh0
            pl.BlockSpec((1, 4 * H), lambda b: (0, 0)),                # b0
            pl.BlockSpec((2 * H, 4 * H), lambda b: (0, 0)),            # w_cat1
            pl.BlockSpec((1, 4 * H), lambda b: (0, 0)),                # b1
            pl.BlockSpec((H, Cp), lambda b: (0, 0)),                   # fc_w
            pl.BlockSpec((1, Cp), lambda b: (0, 0)),                   # fc_b
        ],
        out_specs=pl.BlockSpec((_B_TILE, Cp), lambda b: (b, 0)),
        scratch_shapes=[pltpu.VMEM((S * _B_TILE, 4 * H), jnp.float32)],  # xg0 staging
        compiler_params=pltpu.CompilerParams(
            dimension_semantics=("parallel",)),   # independent batch tiles -> both TCs on v7x
    )(x_tiles, prepped["w_ih0"], prepped["w_hh0"], prepped["b0"],
      prepped["w_cat1"], prepped["b1"], prepped["fc_w"], prepped["fc_b"])

    return out_padded[:B, :NUM_CLASSES]


def init_params(key, input_size, hidden_size, num_layers, num_classes):
    """Deterministic synthetic parameters, same shapes as the nn.Module."""
    params = {}
    k = 1.0 / jnp.sqrt(hidden_size)
    keys = jax.random.split(key, num_layers * 4 + 2)
    idx = 0
    for l in range(num_layers):
        d_in = input_size if l == 0 else hidden_size
        params[f"w_ih_l{l}"] = jax.random.uniform(
            keys[idx], (4 * hidden_size, d_in), jnp.float32, -k, k); idx += 1
        params[f"w_hh_l{l}"] = jax.random.uniform(
            keys[idx], (4 * hidden_size, hidden_size), jnp.float32, -k, k); idx += 1
        params[f"b_ih_l{l}"] = jax.random.uniform(
            keys[idx], (4 * hidden_size,), jnp.float32, -k, k); idx += 1
        params[f"b_hh_l{l}"] = jax.random.uniform(
            keys[idx], (4 * hidden_size,), jnp.float32, -k, k); idx += 1
    params["fc_w"] = jax.random.uniform(
        keys[idx], (num_classes, hidden_size), jnp.float32, -k, k); idx += 1
    params["fc_b"] = jax.random.uniform(
        keys[idx], (num_classes,), jnp.float32, -k, k)
    return params


# ---------------------------------------------------------------------------
# Pure-JAX reference (for correctness check)
# ---------------------------------------------------------------------------
def reference_forward(x, params, num_layers=NUM_LAYERS):
    x_tm = jnp.transpose(x.astype(jnp.float32), (1, 0, 2))
    h_seq = x_tm
    H = params["w_hh_l0"].shape[1]
    B = x.shape[0]
    for l in range(num_layers):
        w_ih, w_hh = params[f"w_ih_l{l}"], params[f"w_hh_l{l}"]
        b = params[f"b_ih_l{l}"] + params[f"b_hh_l{l}"]

        def step(carry, x_t):
            h_prev, c_prev = carry
            gates = x_t @ w_ih.T + h_prev @ w_hh.T + b
            i = jax.nn.sigmoid(gates[:, 0 * H:1 * H])
            f = jax.nn.sigmoid(gates[:, 1 * H:2 * H])
            g = jnp.tanh(gates[:, 2 * H:3 * H])
            o = jax.nn.sigmoid(gates[:, 3 * H:4 * H])
            c = f * c_prev + i * g
            h = o * jnp.tanh(c)
            return (h, c), h

        init = (jnp.zeros((B, H), jnp.float32), jnp.zeros((B, H), jnp.float32))
        _, h_seq = lax.scan(step, init, h_seq)
    return h_seq[-1] @ params["fc_w"].T + params["fc_b"]


# ---------------------------------------------------------------------------
if __name__ == "__main__":
    key = jax.random.PRNGKey(0)
    kx, kp = jax.random.split(key)

    x = jax.random.normal(kx, (BATCH, SEQ, INPUT_SIZE), jnp.float32)
    params = init_params(kp, INPUT_SIZE, HIDDEN_SIZE, NUM_LAYERS, NUM_CLASSES)
    prepped = prepare_params(params)

    out = time_series_lstm_forward(x, prepped)
    out = jax.block_until_ready(out)

    ref = reference_forward(x, params)
    assert out.shape == (BATCH, NUM_CLASSES), out.shape
    # bf16 MXU feeds (same numerics as default-precision f32 matmuls) give
    # ~1e-3-level deviation over S=8 steps vs the f32 XLA reference; a real bug
    # (gate order / state carry / weight fusion) would be >> 1e-1.
    if not jnp.allclose(out, ref, rtol=2e-2, atol=2e-2):
        raise AssertionError("Pallas fused LSTM output does not match reference")

    print("KERNEL_OK")
</pallas_src>

<mosaic_0001>
module attributes {stable_mosaic.version = 11 : i64} {
  func.func @_fused_lstm_fc_kernel(%arg0: i32, %arg1: memref<1x64x128xbf16, #tpu.memory_space<vmem>>, %arg2: memref<128x512xbf16, #tpu.memory_space<vmem>>, %arg3: memref<128x512xbf16, #tpu.memory_space<vmem>>, %arg4: memref<1x512xf32, #tpu.memory_space<vmem>>, %arg5: memref<256x512xbf16, #tpu.memory_space<vmem>>, %arg6: memref<1x512xf32, #tpu.memory_space<vmem>>, %arg7: memref<128x128xbf16, #tpu.memory_space<vmem>>, %arg8: memref<1x128xf32, #tpu.memory_space<vmem>>, %arg9: memref<8x128xf32, #tpu.memory_space<vmem>>, %arg10: memref<64x512xf32, #tpu.memory_space<vmem>>) attributes {dimension_semantics = [#tpu.dimension_semantics<parallel>], iteration_bounds = array<i64: 1>, scalar_prefetch = 0 : i64, scratch_operands = 1 : i64, tpu.core_type = #tpu.core_type<tc>, window_params = [{transform_indices = @transform_0, window_bounds = array<i64: 1, 64, 128>}, {pipeline_mode = #tpu.pipeline_mode<synchronous>, transform_indices = @transform_1, window_bounds = array<i64: 128, 512>}, {pipeline_mode = #tpu.pipeline_mode<synchronous>, transform_indices = @transform_2, window_bounds = array<i64: 128, 512>}, {pipeline_mode = #tpu.pipeline_mode<synchronous>, transform_indices = @transform_3, window_bounds = array<i64: 1, 512>}, {pipeline_mode = #tpu.pipeline_mode<synchronous>, transform_indices = @transform_4, window_bounds = array<i64: 256, 512>}, {pipeline_mode = #tpu.pipeline_mode<synchronous>, transform_indices = @transform_5, window_bounds = array<i64: 1, 512>}, {pipeline_mode = #tpu.pipeline_mode<synchronous>, transform_indices = @transform_6, window_bounds = array<i64: 128, 128>}, {pipeline_mode = #tpu.pipeline_mode<synchronous>, transform_indices = @transform_7, window_bounds = array<i64: 1, 128>}, {transform_indices = @transform_8, window_bounds = array<i64: 8, 128>}]} {
    %c0 = arith.constant 0 : index
    %c0_0 = arith.constant 0 : index
    %c0_1 = arith.constant 0 : index
    %0 = vector.load %arg1[%c0, %c0_0, %c0_1] : memref<1x64x128xbf16, #tpu.memory_space<vmem>>, vector<1x64x128xbf16>
    %1 = vector.shape_cast %0 : vector<1x64x128xbf16> to vector<64x128xbf16>
    %c0_2 = arith.constant 0 : index
    %c0_3 = arith.constant 0 : index
    %2 = vector.load %arg2[%c0_2, %c0_3] : memref<128x512xbf16, #tpu.memory_space<vmem>>, vector<128x512xbf16>
    %cst = arith.constant dense<0.000000e+00> : vector<64x512xf32>
    %3 = tpu.matmul %1, %2, %cst {dimension_numbers = #tpu.dot_dimension_numbers<[1], [0], [0], [1], [0, 0, 1, 1], [], []>} : vector<64x128xbf16>, vector<128x512xbf16>, vector<64x512xf32> -> vector<64x512xf32>
    %c0_4 = arith.constant 0 : index
    %c0_5 = arith.constant 0 : index
    %4 = vector.load %arg4[%c0_4, %c0_5] : memref<1x512xf32, #tpu.memory_space<vmem>>, vector<1x512xf32>
    %5 = vector.broadcast %4 : vector<1x512xf32> to vector<64x512xf32>
    %6 = arith.addf %3, %5 : vector<64x512xf32>
    %c0_6 = arith.constant 0 : index
    %c0_7 = arith.constant 0 : index
    %7 = vector.load %arg10[%c0_6, %c0_7] : memref<64x512xf32, #tpu.memory_space<vmem>>, vector<64x512xf32>
    tpu.vector_store %arg10[%c0_6, %c0_7], %6 {strides = array<i32>} : memref<64x512xf32, #tpu.memory_space<vmem>>, vector<64x512xf32>,
    %c0_8 = arith.constant 0 : index
    %c0_9 = arith.constant 0 : index
    %8 = vector.load %arg3[%c0_8, %c0_9] : memref<128x512xbf16, #tpu.memory_space<vmem>>, vector<128x512xbf16>
    %c0_10 = arith.constant 0 : index
    %c0_11 = arith.constant 0 : index
    %9 = vector.load %arg5[%c0_10, %c0_11] : memref<256x512xbf16, #tpu.memory_space<vmem>>, vector<256x512xbf16>
    %c0_12 = arith.constant 0 : index
    %c0_13 = arith.constant 0 : index
    %10 = vector.load %arg6[%c0_12, %c0_13] : memref<1x512xf32, #tpu.memory_space<vmem>>, vector<1x512xf32>
    %cst_14 = arith.constant 0.000000e+00 : f32
    %11 = vector.broadcast %cst_14 : f32 to vector<8x128xf32>
    %c0_15 = arith.constant 0 : index
    %c0_16 = arith.constant 0 : index
    %12 = vector.load %arg10[%c0_15, %c0_16] : memref<64x512xf32, #tpu.memory_space<vmem>>, vector<8x512xf32>
    %13 = arith.truncf %11 : vector<8x128xf32> to vector<8x128xbf16>
    %cst_17 = arith.constant dense<0.000000e+00> : vector<8x512xf32>
    %14 = tpu.matmul %13, %8, %cst_17 {dimension_numbers = #tpu.dot_dimension_numbers<[1], [0], [0], [1], [0, 0, 1, 1], [], []>} : vector<8x128xbf16>, vector<128x512xbf16>, vector<8x512xf32> -> vector<8x512xf32>
    %15 = arith.addf %12, %14 : vector<8x512xf32>
    %16 = vector.extract_strided_slice %15 {offsets = [0, 0], sizes = [8, 128], strides = [1, 1]} : vector<8x512xf32> to vector<8x128xf32>
    %17 = arith.negf %16 : vector<8x128xf32>
    %18 = math.exp %17 : vector<8x128xf32>
    %cst_18 = arith.constant 1.000000e+00 : f32
    %19 = vector.broadcast %cst_18 : f32 to vector<8x128xf32>
    %20 = arith.addf %19, %18 : vector<8x128xf32>
    %21 = arith.divf %19, %20 : vector<8x128xf32>
    %22 = vector.extract_strided_slice %15 {offsets = [0, 128], sizes = [8, 128], strides = [1, 1]} : vector<8x512xf32> to vector<8x128xf32>
    %23 = arith.negf %22 : vector<8x128xf32>
    %24 = math.exp %23 : vector<8x128xf32>
    %cst_19 = arith.constant 1.000000e+00 : f32
    %25 = vector.broadcast %cst_19 : f32 to vector<8x128xf32>
    %26 = arith.addf %25, %24 : vector<8x128xf32>
    %27 = arith.divf %25, %26 : vector<8x128xf32>
    %28 = vector.extract_strided_slice %15 {offsets = [0, 384], sizes = [8, 128], strides = [1, 1]} : vector<8x512xf32> to vector<8x128xf32>
    %29 = arith.negf %28 : vector<8x128xf32>
    %30 = math.exp %29 : vector<8x128xf32>
    %cst_20 = arith.constant 1.000000e+00 : f32
    %31 = vector.broadcast %cst_20 : f32 to vector<8x128xf32>
    %32 = arith.addf %31, %30 : vector<8x128xf32>
    %33 = arith.divf %31, %32 : vector<8x128xf32>
    %34 = vector.extract_strided_slice %15 {offsets = [0, 256], sizes = [8, 128], strides = [1, 1]} : vector<8x512xf32> to vector<8x128xf32>
    %35 = math.tanh %34 : vector<8x128xf32>
    %36 = arith.mulf %27, %11 : vector<8x128xf32>
    %37 = arith.mulf %21, %35 : vector<8x128xf32>
    %38 = arith.addf %36, %37 : vector<8x128xf32>
    %39 = math.tanh %38 : vector<8x128xf32>
    %40 = arith.mulf %33, %39 : vector<8x128xf32>
    %41 = tpu.concatenate %40, %11 in 1 : vector<8x128xf32>, vector<8x128xf32> -> vector<8x256xf32>
    %42 = arith.truncf %41 : vector<8x256xf32> to vector<8x256xbf16>
    %cst_21 = arith.constant dense<0.000000e+00> : vector<8x512xf32>
    %43 = tpu.matmul %42, %9, %cst_21 {dimension_numbers = #tpu.dot_dimension_numbers<[1], [0], [0], [1], [0, 0, 1, 1], [], []>} : vector<8x256xbf16>, vector<256x512xbf16>, vector<8x512xf32> -> vector<8x512xf32>
    %44 = vector.broadcast %10 : vector<1x512xf32> to vector<8x512xf32>
    %45 = arith.addf %43, %44 : vector<8x512xf32>
    %46 = vector.extract_strided_slice %45 {offsets = [0, 0], sizes = [8, 128], strides = [1, 1]} : vector<8x512xf32> to vector<8x128xf32>
    %47 = arith.negf %46 : vector<8x128xf32>
    %48 = math.exp %47 : vector<8x128xf32>
    %cst_22 = arith.constant 1.000000e+00 : f32
    %49 = vector.broadcast %cst_22 : f32 to vector<8x128xf32>
    %50 = arith.addf %49, %48 : vector<8x128xf32>
    %51 = arith.divf %49, %50 : vector<8x128xf32>
    %52 = vector.extract_strided_slice %45 {offsets = [0, 128], sizes = [8, 128], strides = [1, 1]} : vector<8x512xf32> to vector<8x128xf32>
    %53 = arith.negf %52 : vector<8x128xf32>
    %54 = math.exp %53 : vector<8x128xf32>
    %cst_23 = arith.constant 1.000000e+00 : f32
    %55 = vector.broadcast %cst_23 : f32 to vector<8x128xf32>
    %56 = arith.addf %55, %54 : vector<8x128xf32>
    %57 = arith.divf %55, %56 : vector<8x128xf32>
    %58 = vector.extract_strided_slice %45 {offsets = [0, 384], sizes = [8, 128], strides = [1, 1]} : vector<8x512xf32> to vector<8x128xf32>
    %59 = arith.negf %58 : vector<8x128xf32>
    %60 = math.exp %59 : vector<8x128xf32>
    %cst_24 = arith.constant 1.000000e+00 : f32
    %61 = vector.broadcast %cst_24 : f32 to vector<8x128xf32>
    %62 = arith.addf %61, %60 : vector<8x128xf32>
    %63 = arith.divf %61, %62 : vector<8x128xf32>
    %64 = vector.extract_strided_slice %45 {offsets = [0, 256], sizes = [8, 128], strides = [1, 1]} : vector<8x512xf32> to vector<8x128xf32>
    %65 = math.tanh %64 : vector<8x128xf32>
    %66 = arith.mulf %57, %11 : vector<8x128xf32>
    %67 = arith.mulf %51, %65 : vector<8x128xf32>
    %68 = arith.addf %66, %67 : vector<8x128xf32>
    %69 = math.tanh %68 : vector<8x128xf32>
    %70 = arith.mulf %63, %69 : vector<8x128xf32>
    %c8 = arith.constant 8 : index
    %c0_25 = arith.constant 0 : index
    %71 = vector.load %arg10[%c8, %c0_25] : memref<64x512xf32, #tpu.memory_space<vmem>>, vector<8x512xf32>
    %72 = arith.truncf %40 : vector<8x128xf32> to vector<8x128xbf16>
    %cst_26 = arith.constant dense<0.000000e+00> : vector<8x512xf32>
    %73 = tpu.matmul %72, %8, %cst_26 {dimension_numbers = #tpu.dot_dimension_numbers<[1], [0], [0], [1], [0, 0, 1, 1], [], []>} : vector<8x128xbf16>, vector<128x512xbf16>, vector<8x512xf32> -> vector<8x512xf32>
    %74 = arith.addf %71, %73 : vector<8x512xf32>
    %75 = vector.extract_strided_slice %74 {offsets = [0, 0], sizes = [8, 128], strides = [1, 1]} : vector<8x512xf32> to vector<8x128xf32>
    %76 = arith.negf %75 : vector<8x128xf32>
    %77 = math.exp %76 : vector<8x128xf32>
    %cst_27 = arith.constant 1.000000e+00 : f32
    %78 = vector.broadcast %cst_27 : f32 to vector<8x128xf32>
    %79 = arith.addf %78, %77 : vector<8x128xf32>
    %80 = arith.divf %78, %79 : vector<8x128xf32>
    %81 = vector.extract_strided_slice %74 {offsets = [0, 128], sizes = [8, 128], strides = [1, 1]} : vector<8x512xf32> to vector<8x128xf32>
    %82 = arith.negf %81 : vector<8x128xf32>
    %83 = math.exp %82 : vector<8x128xf32>
    %cst_28 = arith.constant 1.000000e+00 : f32
    %84 = vector.broadcast %cst_28 : f32 to vector<8x128xf32>
    %85 = arith.addf %84, %83 : vector<8x128xf32>
    %86 = arith.divf %84, %85 : vector<8x128xf32>
    %87 = vector.extract_strided_slice %74 {offsets = [0, 384], sizes = [8, 128], strides = [1, 1]} : vector<8x512xf32> to vector<8x128xf32>
    %88 = arith.negf %87 : vector<8x128xf32>
    %89 = math.exp %88 : vector<8x128xf32>
    %cst_29 = arith.constant 1.000000e+00 : f32
    %90 = vector.broadcast %cst_29 : f32 to vector<8x128xf32>
    %91 = arith.addf %90, %89 : vector<8x128xf32>
    %92 = arith.divf %90, %91 : vector<8x128xf32>
    %93 = vector.extract_strided_slice %74 {offsets = [0, 256], sizes = [8, 128], strides = [1, 1]} : vector<8x512xf32> to vector<8x128xf32>
    %94 = math.tanh %93 : vector<8x128xf32>
    %95 = arith.mulf %86, %38 : vector<8x128xf32>
    %96 = arith.mulf %80, %94 : vector<8x128xf32>
    %97 = arith.addf %95, %96 : vector<8x128xf32>
    %98 = math.tanh %97 : vector<8x128xf32>
    %99 = arith.mulf %92, %98 : vector<8x128xf32>
    %100 = tpu.concatenate %99, %70 in 1 : vector<8x128xf32>, vector<8x128xf32> -> vector<8x256xf32>
    %101 = arith.truncf %100 : vector<8x256xf32> to vector<8x256xbf16>
    %cst_30 = arith.constant dense<0.000000e+00> : vector<8x512xf32>
    %102 = tpu.matmul %101, %9, %cst_30 {dimension_numbers = #tpu.dot_dimension_numbers<[1], [0], [0], [1], [0, 0, 1, 1], [], []>} : vector<8x256xbf16>, vector<256x512xbf16>, vector<8x512xf32> -> vector<8x512xf32>
    %103 = vector.broadcast %10 : vector<1x512xf32> to vector<8x512xf32>
    %104 = arith.addf %102, %103 : vector<8x512xf32>
    %105 = vector.extract_strided_slice %104 {offsets = [0, 0], sizes = [8, 128], strides = [1, 1]} : vector<8x512xf32> to vector<8x128xf32>
    %106 = arith.negf %105 : vector<8x128xf32>
    %107 = math.exp %106 : vector<8x128xf32>
    %cst_31 = arith.constant 1.000000e+00 : f32
    %108 = vector.broadcast %cst_31 : f32 to vector<8x128xf32>
    %109 = arith.addf %108, %107 : vector<8x128xf32>
    %110 = arith.divf %108, %109 : vector<8x128xf32>
    %111 = vector.extract_strided_slice %104 {offsets = [0, 128], sizes = [8, 128], strides = [1, 1]} : vector<8x512xf32> to vector<8x128xf32>
    %112 = arith.negf %111 : vector<8x128xf32>
    %113 = math.exp %112 : vector<8x128xf32>
    %cst_32 = arith.constant 1.000000e+00 : f32
    %114 = vector.broadcast %cst_32 : f32 to vector<8x128xf32>
    %115 = arith.addf %114, %113 : vector<8x128xf32>
    %116 = arith.divf %114, %115 : vector<8x128xf32>
    %117 = vector.extract_strided_slice %104 {offsets = [0, 384], sizes = [8, 128], strides = [1, 1]} : vector<8x512xf32> to vector<8x128xf32>
    %118 = arith.negf %117 : vector<8x128xf32>
    %119 = math.exp %118 : vector<8x128xf32>
    %cst_33 = arith.constant 1.000000e+00 : f32
    %120 = vector.broadcast %cst_33 : f32 to vector<8x128xf32>
    %121 = arith.addf %120, %119 : vector<8x128xf32>
    %122 = arith.divf %120, %121 : vector<8x128xf32>
    %123 = vector.extract_strided_slice %104 {offsets = [0, 256], sizes = [8, 128], strides = [1, 1]} : vector<8x512xf32> to vector<8x128xf32>
    %124 = math.tanh %123 : vector<8x128xf32>
    %125 = arith.mulf %116, %68 : vector<8x128xf32>
    %126 = arith.mulf %110, %124 : vector<8x128xf32>
    %127 = arith.addf %125, %126 : vector<8x128xf32>
    %128 = math.tanh %127 : vector<8x128xf32>
    %129 = arith.mulf %122, %128 : vector<8x128xf32>
    %c16 = arith.constant 16 : index
    %c0_34 = arith.constant 0 : index
    %130 = vector.load %arg10[%c16, %c0_34] : memref<64x512xf32, #tpu.memory_space<vmem>>, vector<8x512xf32>
    %131 = arith.truncf %99 : vector<8x128xf32> to vector<8x128xbf16>
    %cst_35 = arith.constant dense<0.000000e+00> : vector<8x512xf32>
    %132 = tpu.matmul %131, %8, %cst_35 {dimension_numbers = #tpu.dot_dimension_numbers<[1], [0], [0], [1], [0, 0, 1, 1], [], []>} : vector<8x128xbf16>, vector<128x512xbf16>, vector<8x512xf32> -> vector<8x512xf32>
    %133 = arith.addf %130, %132 : vector<8x512xf32>
    %134 = vector.extract_strided_slice %133 {offsets = [0, 0], sizes = [8, 128], strides = [1, 1]} : vector<8x512xf32> to vector<8x128xf32>
    %135 = arith.negf %134 : vector<8x128xf32>
    %136 = math.exp %135 : vector<8x128xf32>
    %cst_36 = arith.constant 1.000000e+00 : f32
    %137 = vector.broadcast %cst_36 : f32 to vector<8x128xf32>
    %138 = arith.addf %137, %136 : vector<8x128xf32>
    %139 = arith.divf %137, %138 : vector<8x128xf32>
    %140 = vector.extract_strided_slice %133 {offsets = [0, 128], sizes = [8, 128], strides = [1, 1]} : vector<8x512xf32> to vector<8x128xf32>
    %141 = arith.negf %140 : vector<8x128xf32>
    %142 = math.exp %141 : vector<8x128xf32>
    %cst_37 = arith.constant 1.000000e+00 : f32
    %143 = vector.broadcast %cst_37 : f32 to vector<8x128xf32>
    %144 = arith.addf %143, %142 : vector<8x128xf32>
    %145 = arith.divf %143, %144 : vector<8x128xf32>
    %146 = vector.extract_strided_slice %133 {offsets = [0, 384], sizes = [8, 128], strides = [1, 1]} : vector<8x512xf32> to vector<8x128xf32>
    %147 = arith.negf %146 : vector<8x128xf32>
    %148 = math.exp %147 : vector<8x128xf32>
    %cst_38 = arith.constant 1.000000e+00 : f32
    %149 = vector.broadcast %cst_38 : f32 to vector<8x128xf32>
    %150 = arith.addf %149, %148 : vector<8x128xf32>
    %151 = arith.divf %149, %150 : vector<8x128xf32>
    %152 = vector.extract_strided_slice %133 {offsets = [0, 256], sizes = [8, 128], strides = [1, 1]} : vector<8x512xf32> to vector<8x128xf32>
    %153 = math.tanh %152 : vector<8x128xf32>
    %154 = arith.mulf %145, %97 : vector<8x128xf32>
    %155 = arith.mulf %139, %153 : vector<8x128xf32>
    %156 = arith.addf %154, %155 : vector<8x128xf32>
    %157 = math.tanh %156 : vector<8x128xf32>
    %158 = arith.mulf %151, %157 : vector<8x128xf32>
    %159 = tpu.concatenate %158, %129 in 1 : vector<8x128xf32>, vector<8x128xf32> -> vector<8x256xf32>
    %160 = arith.truncf %159 : vector<8x256xf32> to vector<8x256xbf16>
    %cst_39 = arith.constant dense<0.000000e+00> : vector<8x512xf32>
    %161 = tpu.matmul %160, %9, %cst_39 {dimension_numbers = #tpu.dot_dimension_numbers<[1], [0], [0], [1], [0, 0, 1, 1], [], []>} : vector<8x256xbf16>, vector<256x512xbf16>, vector<8x512xf32> -> vector<8x512xf32>
    %162 = vector.broadcast %10 : vector<1x512xf32> to vector<8x512xf32>
    %163 = arith.addf %161, %162 : vector<8x512xf32>
    %164 = vector.extract_strided_slice %163 {offsets = [0, 0], sizes = [8, 128], strides = [1, 1]} : vector<8x512xf32> to vector<8x128xf32>
    %165 = arith.negf %164 : vector<8x128xf32>
    %166 = math.exp %165 : vector<8x128xf32>
    %cst_40 = arith.constant 1.000000e+00 : f32
    %167 = vector.broadcast %cst_40 : f32 to vector<8x128xf32>
    %168 = arith.addf %167, %166 : vector<8x128xf32>
    %169 = arith.divf %167, %168 : vector<8x128xf32>
    %170 = vector.extract_strided_slice %163 {offsets = [0, 128], sizes = [8, 128], strides = [1, 1]} : vector<8x512xf32> to vector<8x128xf32>
    %171 = arith.negf %170 : vector<8x128xf32>
    %172 = math.exp %171 : vector<8x128xf32>
    %cst_41 = arith.constant 1.000000e+00 : f32
    %173 = vector.broadcast %cst_41 : f32 to vector<8x128xf32>
    %174 = arith.addf %173, %172 : vector<8x128xf32>
    %175 = arith.divf %173, %174 : vector<8x128xf32>
    %176 = vector.extract_strided_slice %163 {offsets = [0, 384], sizes = [8, 128], strides = [1, 1]} : vector<8x512xf32> to vector<8x128xf32>
    %177 = arith.negf %176 : vector<8x128xf32>
    %178 = math.exp %177 : vector<8x128xf32>
    %cst_42 = arith.constant 1.000000e+00 : f32
    %179 = vector.broadcast %cst_42 : f32 to vector<8x128xf32>
    %180 = arith.addf %179, %178 : vector<8x128xf32>
    %181 = arith.divf %179, %180 : vector<8x128xf32>
    %182 = vector.extract_strided_slice %163 {offsets = [0, 256], sizes = [8, 128], strides = [1, 1]} : vector<8x512xf32> to vector<8x128xf32>
    %183 = math.tanh %182 : vector<8x128xf32>
    %184 = arith.mulf %175, %127 : vector<8x128xf32>
    %185 = arith.mulf %169, %183 : vector<8x128xf32>
    %186 = arith.addf %184, %185 : vector<8x128xf32>
    %187 = math.tanh %186 : vector<8x128xf32>
    %188 = arith.mulf %181, %187 : vector<8x128xf32>
    %c24 = arith.constant 24 : index
    %c0_43 = arith.constant 0 : index
    %189 = vector.load %arg10[%c24, %c0_43] : memref<64x512xf32, #tpu.memory_space<vmem>>, vector<8x512xf32>
    %190 = arith.truncf %158 : vector<8x128xf32> to vector<8x128xbf16>
    %cst_44 = arith.constant dense<0.000000e+00> : vector<8x512xf32>
    %191 = tpu.matmul %190, %8, %cst_44 {dimension_numbers = #tpu.dot_dimension_numbers<[1], [0], [0], [1], [0, 0, 1, 1], [], []>} : vector<8x128xbf16>, vector<128x512xbf16>, vector<8x512xf32> -> vector<8x512xf32>
    %192 = arith.addf %189, %191 : vector<8x512xf32>
    %193 = vector.extract_strided_slice %192 {offsets = [0, 0], sizes = [8, 128], strides = [1, 1]} : vector<8x512xf32> to vector<8x128xf32>
    %194 = arith.negf %193 : vector<8x128xf32>
    %195 = math.exp %194 : vector<8x128xf32>
    %cst_45 = arith.constant 1.000000e+00 : f32
    %196 = vector.broadcast %cst_45 : f32 to vector<8x128xf32>
    %197 = arith.addf %196, %195 : vector<8x128xf32>
    %198 = arith.divf %196, %197 : vector<8x128xf32>
    %199 = vector.extract_strided_slice %192 {offsets = [0, 128], sizes = [8, 128], strides = [1, 1]} : vector<8x512xf32> to vector<8x128xf32>
    %200 = arith.negf %199 : vector<8x128xf32>
    %201 = math.exp %200 : vector<8x128xf32>
    %cst_46 = arith.constant 1.000000e+00 : f32
    %202 = vector.broadcast %cst_46 : f32 to vector<8x128xf32>
    %203 = arith.addf %202, %201 : vector<8x128xf32>
    %204 = arith.divf %202, %203 : vector<8x128xf32>
    %205 = vector.extract_strided_slice %192 {offsets = [0, 384], sizes = [8, 128], strides = [1, 1]} : vector<8x512xf32> to vector<8x128xf32>
    %206 = arith.negf %205 : vector<8x128xf32>
    %207 = math.exp %206 : vector<8x128xf32>
    %cst_47 = arith.constant 1.000000e+00 : f32
    %208 = vector.broadcast %cst_47 : f32 to vector<8x128xf32>
    %209 = arith.addf %208, %207 : vector<8x128xf32>
    %210 = arith.divf %208, %209 : vector<8x128xf32>
    %211 = vector.extract_strided_slice %192 {offsets = [0, 256], sizes = [8, 128], strides = [1, 1]} : vector<8x512xf32> to vector<8x128xf32>
    %212 = math.tanh %211 : vector<8x128xf32>
    %213 = arith.mulf %204, %156 : vector<8x128xf32>
    %214 = arith.mulf %198, %212 : vector<8x128xf32>
    %215 = arith.addf %213, %214 : vector<8x128xf32>
    %216 = math.tanh %215 : vector<8x128xf32>
    %217 = arith.mulf %210, %216 : vector<8x128xf32>
    %218 = tpu.concatenate %217, %188 in 1 : vector<8x128xf32>, vector<8x128xf32> -> vector<8x256xf32>
    %219 = arith.truncf %218 : vector<8x256xf32> to vector<8x256xbf16>
    %cst_48 = arith.constant dense<0.000000e+00> : vector<8x512xf32>
    %220 = tpu.matmul %219, %9, %cst_48 {dimension_numbers = #tpu.dot_dimension_numbers<[1], [0], [0], [1], [0, 0, 1, 1], [], []>} : vector<8x256xbf16>, vector<256x512xbf16>, vector<8x512xf32> -> vector<8x512xf32>
    %221 = vector.broadcast %10 : vector<1x512xf32> to vector<8x512xf32>
    %222 = arith.addf %220, %221 : vector<8x512xf32>
    %223 = vector.extract_strided_slice %222 {offsets = [0, 0], sizes = [8, 128], strides = [1, 1]} : vector<8x512xf32> to vector<8x128xf32>
    %224 = arith.negf %223 : vector<8x128xf32>
    %225 = math.exp %224 : vector<8x128xf32>
    %cst_49 = arith.constant 1.000000e+00 : f32
    %226 = vector.broadcast %cst_49 : f32 to vector<8x128xf32>
    %227 = arith.addf %226, %225 : vector<8x128xf32>
    %228 = arith.divf %226, %227 : vector<8x128xf32>
    %229 = vector.extract_strided_slice %222 {offsets = [0, 128], sizes = [8, 128], strides = [1, 1]} : vector<8x512xf32> to vector<8x128xf32>
    %230 = arith.negf %229 : vector<8x128xf32>
    %231 = math.exp %230 : vector<8x128xf32>
    %cst_50 = arith.constant 1.000000e+00 : f32
    %232 = vector.broadcast %cst_50 : f32 to vector<8x128xf32>
    %233 = arith.addf %232, %231 : vector<8x128xf32>
    %234 = arith.divf %232, %233 : vector<8x128xf32>
    %235 = vector.extract_strided_slice %222 {offsets = [0, 384], sizes = [8, 128], strides = [1, 1]} : vector<8x512xf32> to vector<8x128xf32>
    %236 = arith.negf %235 : vector<8x128xf32>
    %237 = math.exp %236 : vector<8x128xf32>
    %cst_51 = arith.constant 1.000000e+00 : f32
    %238 = vector.broadcast %cst_51 : f32 to vector<8x128xf32>
    %239 = arith.addf %238, %237 : vector<8x128xf32>
    %240 = arith.divf %238, %239 : vector<8x128xf32>
    %241 = vector.extract_strided_slice %222 {offsets = [0, 256], sizes = [8, 128], strides = [1, 1]} : vector<8x512xf32> to vector<8x128xf32>
    %242 = math.tanh %241 : vector<8x128xf32>
    %243 = arith.mulf %234, %186 : vector<8x128xf32>
    %244 = arith.mulf %228, %242 : vector<8x128xf32>
    %245 = arith.addf %243, %244 : vector<8x128xf32>
    %246 = math.tanh %245 : vector<8x128xf32>
    %247 = arith.mulf %240, %246 : vector<8x128xf32>
    %c32 = arith.constant 32 : index
    %c0_52 = arith.constant 0 : index
    %248 = vector.load %arg10[%c32, %c0_52] : memref<64x512xf32, #tpu.memory_space<vmem>>, vector<8x512xf32>
    %249 = arith.truncf %217 : vector<8x128xf32> to vector<8x128xbf16>
    %cst_53 = arith.constant dense<0.000000e+00> : vector<8x512xf32>
    %250 = tpu.matmul %249, %8, %cst_53 {dimension_numbers = #tpu.dot_dimension_numbers<[1], [0], [0], [1], [0, 0, 1, 1], [], []>} : vector<8x128xbf16>, vector<128x512xbf16>, vector<8x512xf32> -> vector<8x512xf32>
    %251 = arith.addf %248, %250 : vector<8x512xf32>
    %252 = vector.extract_strided_slice %251 {offsets = [0, 0], sizes = [8, 128], strides = [1, 1]} : vector<8x512xf32> to vector<8x128xf32>
    %253 = arith.negf %252 : vector<8x128xf32>
    %254 = math.exp %253 : vector<8x128xf32>
    %cst_54 = arith.constant 1.000000e+00 : f32
    %255 = vector.broadcast %cst_54 : f32 to vector<8x128xf32>
    %256 = arith.addf %255, %254 : vector<8x128xf32>
    %257 = arith.divf %255, %256 : vector<8x128xf32>
    %258 = vector.extract_strided_slice %251 {offsets = [0, 128], sizes = [8, 128], strides = [1, 1]} : vector<8x512xf32> to vector<8x128xf32>
    %259 = arith.negf %258 : vector<8x128xf32>
    %260 = math.exp %259 : vector<8x128xf32>
    %cst_55 = arith.constant 1.000000e+00 : f32
    %261 = vector.broadcast %cst_55 : f32 to vector<8x128xf32>
    %262 = arith.addf %261, %260 : vector<8x128xf32>
    %263 = arith.divf %261, %262 : vector<8x128xf32>
    %264 = vector.extract_strided_slice %251 {offsets = [0, 384], sizes = [8, 128], strides = [1, 1]} : vector<8x512xf32> to vector<8x128xf32>
    %265 = arith.negf %264 : vector<8x128xf32>
    %266 = math.exp %265 : vector<8x128xf32>
    %cst_56 = arith.constant 1.000000e+00 : f32
    %267 = vector.broadcast %cst_56 : f32 to vector<8x128xf32>
    %268 = arith.addf %267, %266 : vector<8x128xf32>
    %269 = arith.divf %267, %268 : vector<8x128xf32>
    %270 = vector.extract_strided_slice %251 {offsets = [0, 256], sizes = [8, 128], strides = [1, 1]} : vector<8x512xf32> to vector<8x128xf32>
    %271 = math.tanh %270 : vector<8x128xf32>
    %272 = arith.mulf %263, %215 : vector<8x128xf32>
    %273 = arith.mulf %257, %271 : vector<8x128xf32>
    %274 = arith.addf %272, %273 : vector<8x128xf32>
    %275 = math.tanh %274 : vector<8x128xf32>
    %276 = arith.mulf %269, %275 : vector<8x128xf32>
    %277 = tpu.concatenate %276, %247 in 1 : vector<8x128xf32>, vector<8x128xf32> -> vector<8x256xf32>
    %278 = arith.truncf %277 : vector<8x256xf32> to vector<8x256xbf16>
    %cst_57 = arith.constant dense<0.000000e+00> : vector<8x512xf32>
    %279 = tpu.matmul %278, %9, %cst_57 {dimension_numbers = #tpu.dot_dimension_numbers<[1], [0], [0], [1], [0, 0, 1, 1], [], []>} : vector<8x256xbf16>, vector<256x512xbf16>, vector<8x512xf32> -> vector<8x512xf32>
    %280 = vector.broadcast %10 : vector<1x512xf32> to vector<8x512xf32>
    %281 = arith.addf %279, %280 : vector<8x512xf32>
    %282 = vector.extract_strided_slice %281 {offsets = [0, 0], sizes = [8, 128], strides = [1, 1]} : vector<8x512xf32> to vector<8x128xf32>
    %283 = arith.negf %282 : vector<8x128xf32>
    %284 = math.exp %283 : vector<8x128xf32>
    %cst_58 = arith.constant 1.000000e+00 : f32
    %285 = vector.broadcast %cst_58 : f32 to vector<8x128xf32>
    %286 = arith.addf %285, %284 : vector<8x128xf32>
    %287 = arith.divf %285, %286 : vector<8x128xf32>
    %288 = vector.extract_strided_slice %281 {offsets = [0, 128], sizes = [8, 128], strides = [1, 1]} : vector<8x512xf32> to vector<8x128xf32>
    %289 = arith.negf %288 : vector<8x128xf32>
    %290 = math.exp %289 : vector<8x128xf32>
    %cst_59 = arith.constant 1.000000e+00 : f32
    %291 = vector.broadcast %cst_59 : f32 to vector<8x128xf32>
    %292 = arith.addf %291, %290 : vector<8x128xf32>
    %293 = arith.divf %291, %292 : vector<8x128xf32>
    %294 = vector.extract_strided_slice %281 {offsets = [0, 384], sizes = [8, 128], strides = [1, 1]} : vector<8x512xf32> to vector<8x128xf32>
    %295 = arith.negf %294 : vector<8x128xf32>
    %296 = math.exp %295 : vector<8x128xf32>
    %cst_60 = arith.constant 1.000000e+00 : f32
    %297 = vector.broadcast %cst_60 : f32 to vector<8x128xf32>
    %298 = arith.addf %297, %296 : vector<8x128xf32>
    %299 = arith.divf %297, %298 : vector<8x128xf32>
    %300 = vector.extract_strided_slice %281 {offsets = [0, 256], sizes = [8, 128], strides = [1, 1]} : vector<8x512xf32> to vector<8x128xf32>
    %301 = math.tanh %300 : vector<8x128xf32>
    %302 = arith.mulf %293, %245 : vector<8x128xf32>
    %303 = arith.mulf %287, %301 : vector<8x128xf32>
    %304 = arith.addf %302, %303 : vector<8x128xf32>
    %305 = math.tanh %304 : vector<8x128xf32>
    %306 = arith.mulf %299, %305 : vector<8x128xf32>
    %c40 = arith.constant 40 : index
    %c0_61 = arith.constant 0 : index
    %307 = vector.load %arg10[%c40, %c0_61] : memref<64x512xf32, #tpu.memory_space<vmem>>, vector<8x512xf32>
    %308 = arith.truncf %276 : vector<8x128xf32> to vector<8x128xbf16>
    %cst_62 = arith.constant dense<0.000000e+00> : vector<8x512xf32>
    %309 = tpu.matmul %308, %8, %cst_62 {dimension_numbers = #tpu.dot_dimension_numbers<[1], [0], [0], [1], [0, 0, 1, 1], [], []>} : vector<8x128xbf16>, vector<128x512xbf16>, vector<8x512xf32> -> vector<8x512xf32>
    %310 = arith.addf %307, %309 : vector<8x512xf32>
    %311 = vector.extract_strided_slice %310 {offsets = [0, 0], sizes = [8, 128], strides = [1, 1]} : vector<8x512xf32> to vector<8x128xf32>
    %312 = arith.negf %311 : vector<8x128xf32>
    %313 = math.exp %312 : vector<8x128xf32>
    %cst_63 = arith.constant 1.000000e+00 : f32
    %314 = vector.broadcast %cst_63 : f32 to vector<8x128xf32>
    %315 = arith.addf %314, %313 : vector<8x128xf32>
    %316 = arith.divf %314, %315 : vector<8x128xf32>
    %317 = vector.extract_strided_slice %310 {offsets = [0, 128], sizes = [8, 128], strides = [1, 1]} : vector<8x512xf32> to vector<8x128xf32>
    %318 = arith.negf %317 : vector<8x128xf32>
    %319 = math.exp %318 : vector<8x128xf32>
    %cst_64 = arith.constant 1.000000e+00 : f32
    %320 = vector.broadcast %cst_64 : f32 to vector<8x128xf32>
    %321 = arith.addf %320, %319 : vector<8x128xf32>
    %322 = arith.divf %320, %321 : vector<8x128xf32>
    %323 = vector.extract_strided_slice %310 {offsets = [0, 384], sizes = [8, 128], strides = [1, 1]} : vector<8x512xf32> to vector<8x128xf32>
    %324 = arith.negf %323 : vector<8x128xf32>
    %325 = math.exp %324 : vector<8x128xf32>
    %cst_65 = arith.constant 1.000000e+00 : f32
    %326 = vector.broadcast %cst_65 : f32 to vector<8x128xf32>
    %327 = arith.addf %326, %325 : vector<8x128xf32>
    %328 = arith.divf %326, %327 : vector<8x128xf32>
    %329 = vector.extract_strided_slice %310 {offsets = [0, 256], sizes = [8, 128], strides = [1, 1]} : vector<8x512xf32> to vector<8x128xf32>
    %330 = math.tanh %329 : vector<8x128xf32>
    %331 = arith.mulf %322, %274 : vector<8x128xf32>
    %332 = arith.mulf %316, %330 : vector<8x128xf32>
    %333 = arith.addf %331, %332 : vector<8x128xf32>
    %334 = math.tanh %333 : vector<8x128xf32>
    %335 = arith.mulf %328, %334 : vector<8x128xf32>
    %336 = tpu.concatenate %335, %306 in 1 : vector<8x128xf32>, vector<8x128xf32> -> vector<8x256xf32>
    %337 = arith.truncf %336 : vector<8x256xf32> to vector<8x256xbf16>
    %cst_66 = arith.constant dense<0.000000e+00> : vector<8x512xf32>
    %338 = tpu.matmul %337, %9, %cst_66 {dimension_numbers = #tpu.dot_dimension_numbers<[1], [0], [0], [1], [0, 0, 1, 1], [], []>} : vector<8x256xbf16>, vector<256x512xbf16>, vector<8x512xf32> -> vector<8x512xf32>
    %339 = vector.broadcast %10 : vector<1x512xf32> to vector<8x512xf32>
    %340 = arith.addf %338, %339 : vector<8x512xf32>
    %341 = vector.extract_strided_slice %340 {offsets = [0, 0], sizes = [8, 128], strides = [1, 1]} : vector<8x512xf32> to vector<8x128xf32>
    %342 = arith.negf %341 : vector<8x128xf32>
    %343 = math.exp %342 : vector<8x128xf32>
    %cst_67 = arith.constant 1.000000e+00 : f32
    %344 = vector.broadcast %cst_67 : f32 to vector<8x128xf32>
    %345 = arith.addf %344, %343 : vector<8x128xf32>
    %346 = arith.divf %344, %345 : vector<8x128xf32>
    %347 = vector.extract_strided_slice %340 {offsets = [0, 128], sizes = [8, 128], strides = [1, 1]} : vector<8x512xf32> to vector<8x128xf32>
    %348 = arith.negf %347 : vector<8x128xf32>
    %349 = math.exp %348 : vector<8x128xf32>
    %cst_68 = arith.constant 1.000000e+00 : f32
    %350 = vector.broadcast %cst_68 : f32 to vector<8x128xf32>
    %351 = arith.addf %350, %349 : vector<8x128xf32>
    %352 = arith.divf %350, %351 : vector<8x128xf32>
    %353 = vector.extract_strided_slice %340 {offsets = [0, 384], sizes = [8, 128], strides = [1, 1]} : vector<8x512xf32> to vector<8x128xf32>
    %354 = arith.negf %353 : vector<8x128xf32>
    %355 = math.exp %354 : vector<8x128xf32>
    %cst_69 = arith.constant 1.000000e+00 : f32
    %356 = vector.broadcast %cst_69 : f32 to vector<8x128xf32>
    %357 = arith.addf %356, %355 : vector<8x128xf32>
    %358 = arith.divf %356, %357 : vector<8x128xf32>
    %359 = vector.extract_strided_slice %340 {offsets = [0, 256], sizes = [8, 128], strides = [1, 1]} : vector<8x512xf32> to vector<8x128xf32>
    %360 = math.tanh %359 : vector<8x128xf32>
    %361 = arith.mulf %352, %304 : vector<8x128xf32>
    %362 = arith.mulf %346, %360 : vector<8x128xf32>
    %363 = arith.addf %361, %362 : vector<8x128xf32>
    %364 = math.tanh %363 : vector<8x128xf32>
    %365 = arith.mulf %358, %364 : vector<8x128xf32>
    %c48 = arith.constant 48 : index
    %c0_70 = arith.constant 0 : index
    %366 = vector.load %arg10[%c48, %c0_70] : memref<64x512xf32, #tpu.memory_space<vmem>>, vector<8x512xf32>
    %367 = arith.truncf %335 : vector<8x128xf32> to vector<8x128xbf16>
    %cst_71 = arith.constant dense<0.000000e+00> : vector<8x512xf32>
    %368 = tpu.matmul %367, %8, %cst_71 {dimension_numbers = #tpu.dot_dimension_numbers<[1], [0], [0], [1], [0, 0, 1, 1], [], []>} : vector<8x128xbf16>, vector<128x512xbf16>, vector<8x512xf32> -> vector<8x512xf32>
    %369 = arith.addf %366, %368 : vector<8x512xf32>
    %370 = vector.extract_strided_slice %369 {offsets = [0, 0], sizes = [8, 128], strides = [1, 1]} : vector<8x512xf32> to vector<8x128xf32>
    %371 = arith.negf %370 : vector<8x128xf32>
    %372 = math.exp %371 : vector<8x128xf32>
    %cst_72 = arith.constant 1.000000e+00 : f32
    %373 = vector.broadcast %cst_72 : f32 to vector<8x128xf32>
    %374 = arith.addf %373, %372 : vector<8x128xf32>
    %375 = arith.divf %373, %374 : vector<8x128xf32>
    %376 = vector.extract_strided_slice %369 {offsets = [0, 128], sizes = [8, 128], strides = [1, 1]} : vector<8x512xf32> to vector<8x128xf32>
    %377 = arith.negf %376 : vector<8x128xf32>
    %378 = math.exp %377 : vector<8x128xf32>
    %cst_73 = arith.constant 1.000000e+00 : f32
    %379 = vector.broadcast %cst_73 : f32 to vector<8x128xf32>
    %380 = arith.addf %379, %378 : vector<8x128xf32>
    %381 = arith.divf %379, %380 : vector<8x128xf32>
    %382 = vector.extract_strided_slice %369 {offsets = [0, 384], sizes = [8, 128], strides = [1, 1]} : vector<8x512xf32> to vector<8x128xf32>
    %383 = arith.negf %382 : vector<8x128xf32>
    %384 = math.exp %383 : vector<8x128xf32>
    %cst_74 = arith.constant 1.000000e+00 : f32
    %385 = vector.broadcast %cst_74 : f32 to vector<8x128xf32>
    %386 = arith.addf %385, %384 : vector<8x128xf32>
    %387 = arith.divf %385, %386 : vector<8x128xf32>
    %388 = vector.extract_strided_slice %369 {offsets = [0, 256], sizes = [8, 128], strides = [1, 1]} : vector<8x512xf32> to vector<8x128xf32>
    %389 = math.tanh %388 : vector<8x128xf32>
    %390 = arith.mulf %381, %333 : vector<8x128xf32>
    %391 = arith.mulf %375, %389 : vector<8x128xf32>
    %392 = arith.addf %390, %391 : vector<8x128xf32>
    %393 = math.tanh %392 : vector<8x128xf32>
    %394 = arith.mulf %387, %393 : vector<8x128xf32>
    %395 = tpu.concatenate %394, %365 in 1 : vector<8x128xf32>, vector<8x128xf32> -> vector<8x256xf32>
    %396 = arith.truncf %395 : vector<8x256xf32> to vector<8x256xbf16>
    %cst_75 = arith.constant dense<0.000000e+00> : vector<8x512xf32>
    %397 = tpu.matmul %396, %9, %cst_75 {dimension_numbers = #tpu.dot_dimension_numbers<[1], [0], [0], [1], [0, 0, 1, 1], [], []>} : vector<8x256xbf16>, vector<256x512xbf16>, vector<8x512xf32> -> vector<8x512xf32>
    %398 = vector.broadcast %10 : vector<1x512xf32> to vector<8x512xf32>
    %399 = arith.addf %397, %398 : vector<8x512xf32>
    %400 = vector.extract_strided_slice %399 {offsets = [0, 0], sizes = [8, 128], strides = [1, 1]} : vector<8x512xf32> to vector<8x128xf32>
    %401 = arith.negf %400 : vector<8x128xf32>
    %402 = math.exp %401 : vector<8x128xf32>
    %cst_76 = arith.constant 1.000000e+00 : f32
    %403 = vector.broadcast %cst_76 : f32 to vector<8x128xf32>
    %404 = arith.addf %403, %402 : vector<8x128xf32>
    %405 = arith.divf %403, %404 : vector<8x128xf32>
    %406 = vector.extract_strided_slice %399 {offsets = [0, 128], sizes = [8, 128], strides = [1, 1]} : vector<8x512xf32> to vector<8x128xf32>
    %407 = arith.negf %406 : vector<8x128xf32>
    %408 = math.exp %407 : vector<8x128xf32>
    %cst_77 = arith.constant 1.000000e+00 : f32
    %409 = vector.broadcast %cst_77 : f32 to vector<8x128xf32>
    %410 = arith.addf %409, %408 : vector<8x128xf32>
    %411 = arith.divf %409, %410 : vector<8x128xf32>
    %412 = vector.extract_strided_slice %399 {offsets = [0, 384], sizes = [8, 128], strides = [1, 1]} : vector<8x512xf32> to vector<8x128xf32>
    %413 = arith.negf %412 : vector<8x128xf32>
    %414 = math.exp %413 : vector<8x128xf32>
    %cst_78 = arith.constant 1.000000e+00 : f32
    %415 = vector.broadcast %cst_78 : f32 to vector<8x128xf32>
    %416 = arith.addf %415, %414 : vector<8x128xf32>
    %417 = arith.divf %415, %416 : vector<8x128xf32>
    %418 = vector.extract_strided_slice %399 {offsets = [0, 256], sizes = [8, 128], strides = [1, 1]} : vector<8x512xf32> to vector<8x128xf32>
    %419 = math.tanh %418 : vector<8x128xf32>
    %420 = arith.mulf %411, %363 : vector<8x128xf32>
    %421 = arith.mulf %405, %419 : vector<8x128xf32>
    %422 = arith.addf %420, %421 : vector<8x128xf32>
    %423 = math.tanh %422 : vector<8x128xf32>
    %424 = arith.mulf %417, %423 : vector<8x128xf32>
    %c56 = arith.constant 56 : index
    %c0_79 = arith.constant 0 : index
    %425 = vector.load %arg10[%c56, %c0_79] : memref<64x512xf32, #tpu.memory_space<vmem>>, vector<8x512xf32>
    %426 = arith.truncf %394 : vector<8x128xf32> to vector<8x128xbf16>
    %cst_80 = arith.constant dense<0.000000e+00> : vector<8x512xf32>
    %427 = tpu.matmul %426, %8, %cst_80 {dimension_numbers = #tpu.dot_dimension_numbers<[1], [0], [0], [1], [0, 0, 1, 1], [], []>} : vector<8x128xbf16>, vector<128x512xbf16>, vector<8x512xf32> -> vector<8x512xf32>
    %428 = arith.addf %425, %427 : vector<8x512xf32>
    %429 = vector.extract_strided_slice %428 {offsets = [0, 0], sizes = [8, 128], strides = [1, 1]} : vector<8x512xf32> to vector<8x128xf32>
    %430 = arith.negf %429 : vector<8x128xf32>
    %431 = math.exp %430 : vector<8x128xf32>
    %cst_81 = arith.constant 1.000000e+00 : f32
    %432 = vector.broadcast %cst_81 : f32 to vector<8x128xf32>
    %433 = arith.addf %432, %431 : vector<8x128xf32>
    %434 = arith.divf %432, %433 : vector<8x128xf32>
    %435 = vector.extract_strided_slice %428 {offsets = [0, 128], sizes = [8, 128], strides = [1, 1]} : vector<8x512xf32> to vector<8x128xf32>
    %436 = arith.negf %435 : vector<8x128xf32>
    %437 = math.exp %436 : vector<8x128xf32>
    %cst_82 = arith.constant 1.000000e+00 : f32
    %438 = vector.broadcast %cst_82 : f32 to vector<8x128xf32>
    %439 = arith.addf %438, %437 : vector<8x128xf32>
    %440 = arith.divf %438, %439 : vector<8x128xf32>
    %441 = vector.extract_strided_slice %428 {offsets = [0, 384], sizes = [8, 128], strides = [1, 1]} : vector<8x512xf32> to vector<8x128xf32>
    %442 = arith.negf %441 : vector<8x128xf32>
    %443 = math.exp %442 : vector<8x128xf32>
    %cst_83 = arith.constant 1.000000e+00 : f32
    %444 = vector.broadcast %cst_83 : f32 to vector<8x128xf32>
    %445 = arith.addf %444, %443 : vector<8x128xf32>
    %446 = arith.divf %444, %445 : vector<8x128xf32>
    %447 = vector.extract_strided_slice %428 {offsets = [0, 256], sizes = [8, 128], strides = [1, 1]} : vector<8x512xf32> to vector<8x128xf32>
    %448 = math.tanh %447 : vector<8x128xf32>
    %449 = arith.mulf %440, %392 : vector<8x128xf32>
    %450 = arith.mulf %434, %448 : vector<8x128xf32>
    %451 = arith.addf %449, %450 : vector<8x128xf32>
    %452 = math.tanh %451 : vector<8x128xf32>
    %453 = arith.mulf %446, %452 : vector<8x128xf32>
    %454 = tpu.concatenate %453, %424 in 1 : vector<8x128xf32>, vector<8x128xf32> -> vector<8x256xf32>
    %455 = arith.truncf %454 : vector<8x256xf32> to vector<8x256xbf16>
    %cst_84 = arith.constant dense<0.000000e+00> : vector<8x512xf32>
    %456 = tpu.matmul %455, %9, %cst_84 {dimension_numbers = #tpu.dot_dimension_numbers<[1], [0], [0], [1], [0, 0, 1, 1], [], []>} : vector<8x256xbf16>, vector<256x512xbf16>, vector<8x512xf32> -> vector<8x512xf32>
    %457 = vector.broadcast %10 : vector<1x512xf32> to vector<8x512xf32>
    %458 = arith.addf %456, %457 : vector<8x512xf32>
    %459 = vector.extract_strided_slice %458 {offsets = [0, 0], sizes = [8, 128], strides = [1, 1]} : vector<8x512xf32> to vector<8x128xf32>
    %460 = arith.negf %459 : vector<8x128xf32>
    %461 = math.exp %460 : vector<8x128xf32>
    %cst_85 = arith.constant 1.000000e+00 : f32
    %462 = vector.broadcast %cst_85 : f32 to vector<8x128xf32>
    %463 = arith.addf %462, %461 : vector<8x128xf32>
    %464 = arith.divf %462, %463 : vector<8x128xf32>
    %465 = vector.extract_strided_slice %458 {offsets = [0, 128], sizes = [8, 128], strides = [1, 1]} : vector<8x512xf32> to vector<8x128xf32>
    %466 = arith.negf %465 : vector<8x128xf32>
    %467 = math.exp %466 : vector<8x128xf32>
    %cst_86 = arith.constant 1.000000e+00 : f32
    %468 = vector.broadcast %cst_86 : f32 to vector<8x128xf32>
    %469 = arith.addf %468, %467 : vector<8x128xf32>
    %470 = arith.divf %468, %469 : vector<8x128xf32>
    %471 = vector.extract_strided_slice %458 {offsets = [0, 384], sizes = [8, 128], strides = [1, 1]} : vector<8x512xf32> to vector<8x128xf32>
    %472 = arith.negf %471 : vector<8x128xf32>
    %473 = math.exp %472 : vector<8x128xf32>
    %cst_87 = arith.constant 1.000000e+00 : f32
    %474 = vector.broadcast %cst_87 : f32 to vector<8x128xf32>
    %475 = arith.addf %474, %473 : vector<8x128xf32>
    %476 = arith.divf %474, %475 : vector<8x128xf32>
    %477 = vector.extract_strided_slice %458 {offsets = [0, 256], sizes = [8, 128], strides = [1, 1]} : vector<8x512xf32> to vector<8x128xf32>
    %478 = math.tanh %477 : vector<8x128xf32>
    %479 = arith.mulf %470, %422 : vector<8x128xf32>
    %480 = arith.mulf %464, %478 : vector<8x128xf32>
    %481 = arith.addf %479, %480 : vector<8x128xf32>
    %482 = math.tanh %481 : vector<8x128xf32>
    %483 = arith.mulf %476, %482 : vector<8x128xf32>
    %484 = arith.truncf %483 : vector<8x128xf32> to vector<8x128xbf16>
    %c0_88 = arith.constant 0 : index
    %c0_89 = arith.constant 0 : index
    %485 = vector.load %arg7[%c0_88, %c0_89] : memref<128x128xbf16, #tpu.memory_space<vmem>>, vector<128x128xbf16>
    %cst_90 = arith.constant dense<0.000000e+00> : vector<8x128xf32>
    %486 = tpu.matmul %484, %485, %cst_90 {dimension_numbers = #tpu.dot_dimension_numbers<[1], [0], [0], [1], [0, 0, 1, 1], [], []>} : vector<8x128xbf16>, vector<128x128xbf16>, vector<8x128xf32> -> vector<8x128xf32>
    %c0_91 = arith.constant 0 : index
    %c0_92 = arith.constant 0 : index
    %487 = vector.load %arg8[%c0_91, %c0_92] : memref<1x128xf32, #tpu.memory_space<vmem>>, vector<1x128xf32>
    %488 = vector.broadcast %487 : vector<1x128xf32> to vector<8x128xf32>
    %489 = arith.addf %486, %488 : vector<8x128xf32>
    %c0_93 = arith.constant 0 : index
    %c0_94 = arith.constant 0 : index
    %490 = vector.load %arg9[%c0_93, %c0_94] : memref<8x128xf32, #tpu.memory_space<vmem>>, vector<8x128xf32>
    tpu.vector_store %arg9[%c0_93, %c0_94], %489 {strides = array<i32>} : memref<8x128xf32, #tpu.memory_space<vmem>>, vector<8x128xf32>,
    return
  }
  func.func @transform_0(%arg0: i32) -> (i32, i32, i32) {
    %c0_i32 = arith.constant 0 : i32
    %c0_i32_0 = arith.constant 0 : i32
    %c0_i32_1 = arith.constant 0 : i32
    return %arg0, %c0_i32, %c0_i32_0 : i32, i32, i32
  }
  func.func @transform_1(%arg0: i32) -> (i32, i32) {
    %c0_i32 = arith.constant 0 : i32
    %c0_i32_0 = arith.constant 0 : i32
    %c0_i32_1 = arith.constant 0 : i32
    return %c0_i32, %c0_i32_0 : i32, i32
  }
  func.func @transform_2(%arg0: i32) -> (i32, i32) {
    %c0_i32 = arith.constant 0 : i32
    %c0_i32_0 = arith.constant 0 : i32
    %c0_i32_1 = arith.constant 0 : i32
    return %c0_i32, %c0_i32_0 : i32, i32
  }
  func.func @transform_3(%arg0: i32) -> (i32, i32) {
    %c0_i32 = arith.constant 0 : i32
    %c0_i32_0 = arith.constant 0 : i32
    %c0_i32_1 = arith.constant 0 : i32
    return %c0_i32, %c0_i32_0 : i32, i32
  }
  func.func @transform_4(%arg0: i32) -> (i32, i32) {
    %c0_i32 = arith.constant 0 : i32
    %c0_i32_0 = arith.constant 0 : i32
    %c0_i32_1 = arith.constant 0 : i32
    return %c0_i32, %c0_i32_0 : i32, i32
  }
  func.func @transform_5(%arg0: i32) -> (i32, i32) {
    %c0_i32 = arith.constant 0 : i32
    %c0_i32_0 = arith.constant 0 : i32
    %c0_i32_1 = arith.constant 0 : i32
    return %c0_i32, %c0_i32_0 : i32, i32
  }
  func.func @transform_6(%arg0: i32) -> (i32, i32) {
    %c0_i32 = arith.constant 0 : i32
    %c0_i32_0 = arith.constant 0 : i32
    %c0_i32_1 = arith.constant 0 : i32
    return %c0_i32, %c0_i32_0 : i32, i32
  }
  func.func @transform_7(%arg0: i32) -> (i32, i32) {
    %c0_i32 = arith.constant 0 : i32
    %c0_i32_0 = arith.constant 0 : i32
    %c0_i32_1 = arith.constant 0 : i32
    return %c0_i32, %c0_i32_0 : i32, i32
  }
  func.func @transform_8(%arg0: i32) -> (i32, i32) {
    %c0_i32 = arith.constant 0 : i32
    %c0_i32_0 = arith.constant 0 : i32
    return %arg0, %c0_i32 : i32, i32
  }
}

</mosaic_0001>

<bundles_post_ra>
// kernel: time_series_lstm_forward.1
= control target key start
LH: loop header
LB: loop body
LE: loop exit
PB: predicated region body
PF: predicated region fallthrough
CT: control target
= control target key end

     0   :  { %13 = vsyncpa [#allocation4], 0  ;;  %s5701_s0 = inlined_call_operand.vmem [shape: bf16[1,64,128], index: 0, kind: input, shape index: {}]   ;;  %s5702_s1 = inlined_call_operand.hbm [shape: bf16[128,512], index: 1, kind: input, shape index: {}]   ;;  %s5703_s2 = inlined_call_operand.hbm [shape: bf16[128,512], index: 2, kind: input, shape index: {}]   ;;  %s5704_s3 = inlined_call_operand.vmem [shape: f32[1,512], index: 3, kind: input, shape index: {}]   ;;  %s5705_s4 = inlined_call_operand.hbm [shape: bf16[256,512], index: 4, kind: input, shape index: {}]   ;;  %s5706_s5 = inlined_call_operand.vmem [shape: f32[1,512], index: 5, kind: input, shape index: {}]   ;;  %s5707_s6 = inlined_call_operand.vmem [shape: bf16[128,128], index: 6, kind: input, shape index: {}]   ;;  %s5708_s7 = inlined_call_operand.vmem [shape: f32[1,128], index: 7, kind: input, shape index: {}]   ;;  %s5709_s8 = inlined_call_operand.vmem [shape: f32[8,128], index: 8, kind: output, shape index: {}]  }
   0x1   :  { %14 = vsyncpa [#allocation6], 0  ;;  %s3937_s27 = smov [#allocation5]   ;;  %s3938_s29 = smov [#allocation3]  }
   0x2   :  { %s34_s28 = sshll.u32 %s3937_s27, 4  ;;  %s22_s30 = sshll.u32 %s3938_s29, 4  ;;  %s35_s28 = int_to_ptr.vmem [resolvable:$true] %s34_s28  ;;  %s3991_s30 = int_to_ptr.vmem [resolvable:$true] %s22_s30 }
   0x3   :  { %s3867_s11 = scalar_lea.hbm %s5703_s2, 4096 }
   0x4   :  { %p3868_p0 = scmp.ne.s32.totalorder %s5703_s2, %s3867_s11  ;;  %p3871_p1 = scmp.lt.u32.totalorder %s3867_s11, %s5703_s2 }
   0x6   :  { %p3873_p2 = pnand %p3871_p1, %p3868_p0 }
   0x8   :  { %3876 = shalt.err (!%p3873_p2)
}
   0x9   :  { %s3877_s16 = scalar_lea.vmem %s35_s28, 4096  ;;  %p3882_p4 = scmp.lt.s32.totalorder %s35_s28, %s35_s28 }
   0xa   :  { %p3878_p3 = scmp.ne.s32.totalorder %s35_s28, %s3877_s16  ;;  %p3883_p5 = scmp.lt.s32.totalorder %s3877_s16, %s3877_s16 }
   0xc   :  { %p3884_p6 = por %p3883_p5, %p3882_p4 }
   0xe   :  { %p3885_p7 = pnand %p3884_p6, %p3878_p3 }
  0x10   :  { %3888 = shalt.err (!%p3885_p7)
}
  0x11   :  { %s3939_s17 = smov 256   ;;  %s3940_s18 = smov 16  }
  0x12   :  { %40 = dma.hbm_to_vmem [thread:$0]  %s5703_s2, 4096, %s35_s28, [#allocation6], %s3939_s17, %s3939_s17, %s3940_s18  }
  0x13   :  { %s3889_s23 = scalar_lea.hbm %s5702_s1, 4096 }
  0x14   :  { %p3890_p8 = scmp.ne.s32.totalorder %s5702_s1, %s3889_s23  ;;  %p3893_p9 = scmp.lt.u32.totalorder %s3889_s23, %s5702_s1 }
  0x16   :  { %p3895_p10 = pnand %p3893_p9, %p3890_p8 }
  0x18   :  { %3898 = shalt.err (!%p3895_p10)
}
  0x19   :  { %s3899_s29 = scalar_lea.vmem %s3991_s30, 4096  ;;  %p3904_p12 = scmp.lt.s32.totalorder %s3991_s30, %s3991_s30 }
  0x1a   :  { %p3900_p11 = scmp.ne.s32.totalorder %s3991_s30, %s3899_s29  ;;  %p3905_p13 = scmp.lt.s32.totalorder %s3899_s29, %s3899_s29 }
  0x1c   :  { %p3906_p0 = por %p3905_p13, %p3904_p12 }
  0x1e   :  { %p3907_p1 = pnand %p3906_p0, %p3900_p11 }
  0x20   :  { %3910 = shalt.err (!%p3907_p1)
}
  0x21   :  { %28 = dma.hbm_to_vmem [thread:$0]  %s5702_s1, 4096, %s3991_s30, [#allocation4], %s3939_s17, %s3939_s17, %s3940_s18  }
  0x22   :  { %s3941_s9 = smov [#allocation7]   ;;  %s3911_s13 = scalar_lea.hbm %s5705_s4, 8192 }
  0x23   :  { %s48_s10 = sshll.u32 %s3941_s9, 4  ;;  %p3912_p2 = scmp.ne.s32.totalorder %s5705_s4, %s3911_s13  ;;  %s49_s10 = int_to_ptr.vmem [resolvable:$true] %s48_s10 }
  0x24   :  { %p3915_p3 = scmp.lt.u32.totalorder %s3911_s13, %s5705_s4 }
  0x26   :  { %p3917_p4 = pnand %p3915_p3, %p3912_p2 }
  0x28   :  { %3920 = shalt.err (!%p3917_p4)
}
  0x29   :  { %s3921_s20 = scalar_lea.vmem %s49_s10, 8192  ;;  %p3926_p6 = scmp.lt.s32.totalorder %s49_s10, %s49_s10 }
  0x2a   :  { %p3922_p5 = scmp.ne.s32.totalorder %s49_s10, %s3921_s20  ;;  %p3927_p7 = scmp.lt.s32.totalorder %s3921_s20, %s3921_s20 }
  0x2c   :  { %p3928_p8 = por %p3927_p7, %p3926_p6 }
  0x2e   :  { %p3929_p9 = pnand %p3928_p8, %p3922_p5 }
  0x30   :  { %3932 = shalt.err (!%p3929_p9)
}
  0x31   :  { %54 = dma.hbm_to_vmem [thread:$0]  %s5705_s4, 8192, %s49_s10, [#allocation6], %s3939_s17, %s3939_s17, %s3940_s18  }
  0x32   :  { %3933 = dma.done.wait [#allocation4], 4096  }
  0x33   :  { %3934 = vsyncadd [#allocation4], 4294963200 }
  0x34   :  { %3935 = dma.done.wait [#allocation6], 12288  }
  0x35   :  { %3936 = vsyncadd [#allocation6], 4294955008  ;;  %v5710_v0 = vmov 0   ;;  %v3215_v1 = vld [vmem:[#allocation3 + $0x4] ss:$16 sps:$4 sm:$0xff]   ;;  %v3276_v44 = vld [vmem:[%s5701_s0 + $0x8] sm:$0xff]  }
  0x36   :  { %349 = vmatprep.mubr.bf16.mxu0 %v5710_v0  ;;  %422 = vmatprep.mubr.bf16.mxu1 %v5710_v0  ;;  %v3217_v2 = vld [vmem:[#allocation3 + $0xc] ss:$16 sps:$4 sm:$0xff]   ;;  %v3219_v3 = vld [vmem:[#allocation3] ss:$16 sps:$4 sm:$0xff]   ;;  %v3220_v4 = vld [vmem:[#allocation3 + $0x8] ss:$16 sps:$4 sm:$0xff]  }
  0x37   :  { %317 = vmatprep.subr.bf16.mxu0 %v3215_v1  ;;  %390 = vmatprep.subr.bf16.mxu1 %v3217_v2  ;;  %v3221_v5 = vld [vmem:[#allocation3 + $0x24] ss:$16 sps:$4 sm:$0xff]   ;;  %v3223_v6 = vld [vmem:[#allocation3 + $0x2c] ss:$16 sps:$4 sm:$0xff]   ;;  %v3225_v7 = vld [vmem:[#allocation3 + $0x20] ss:$16 sps:$4 sm:$0xff]  }
  0x38   :  { %318 = vmatpush1.bf16.msra.mxu0 %v3219_v3  ;;  %391 = vmatpush1.bf16.msra.mxu1 %v3220_v4  ;;  %v3226_v8 = vld [vmem:[#allocation3 + $0x28] ss:$16 sps:$4 sm:$0xff]   ;;  %v3227_v9 = vld [vmem:[#allocation3 + $0x44] ss:$16 sps:$4 sm:$0xff]   ;;  %v3229_v10 = vld [vmem:[#allocation3 + $0x4c] ss:$16 sps:$4 sm:$0xff]  }
  0x39   :  { %319 = vmatprep.subr.bf16.mxu0 %v3221_v5  ;;  %392 = vmatprep.subr.bf16.mxu1 %v3223_v6  ;;  %v3231_v11 = vld [vmem:[#allocation3 + $0x40] ss:$16 sps:$4 sm:$0xff]   ;;  %v3232_v12 = vld [vmem:[#allocation3 + $0x48] ss:$16 sps:$4 sm:$0xff]   ;;  %v3233_v13 = vld [vmem:[#allocation3 + $0x64] ss:$16 sps:$4 sm:$0xff]  }
  0x3a   :  { %v3235_v14 = vld [vmem:[#allocation3 + $0x6c] ss:$16 sps:$4 sm:$0xff]   ;;  %v3237_v15 = vld [vmem:[#allocation3 + $0x60] ss:$16 sps:$4 sm:$0xff]   ;;  %v3238_v16 = vld [vmem:[#allocation3 + $0x68] ss:$16 sps:$4 sm:$0xff]  }
  0x3b   :  { %v3239_v17 = vld [vmem:[#allocation3 + $0x84] ss:$16 sps:$4 sm:$0xff]   ;;  %v3241_v18 = vld [vmem:[#allocation3 + $0x8c] ss:$16 sps:$4 sm:$0xff]   ;;  %v3243_v19 = vld [vmem:[#allocation3 + $0x80] ss:$16 sps:$4 sm:$0xff]  }
  0x3c   :  { %320 = vmatpush1.bf16.msra.mxu0 %v3225_v7  ;;  %393 = vmatpush1.bf16.msra.mxu1 %v3226_v8  ;;  %v3244_v20 = vld [vmem:[#allocation3 + $0x88] ss:$16 sps:$4 sm:$0xff]   ;;  %v3245_v21 = vld [vmem:[#allocation3 + $0xa4] ss:$16 sps:$4 sm:$0xff]   ;;  %v3247_v22 = vld [vmem:[#allocation3 + $0xac] ss:$16 sps:$4 sm:$0xff]  }
  0x3d   :  { %321 = vmatprep.subr.bf16.mxu0 %v3227_v9  ;;  %394 = vmatprep.subr.bf16.mxu1 %v3229_v10  ;;  %v3249_v23 = vld [vmem:[#allocation3 + $0xa0] ss:$16 sps:$4 sm:$0xff]   ;;  %v3250_v24 = vld [vmem:[#allocation3 + $0xa8] ss:$16 sps:$4 sm:$0xff]   ;;  %v3251_v25 = vld [vmem:[#allocation3 + $0xc4] ss:$16 sps:$4 sm:$0xff]  }
  0x3e   :  { %v3253_v26 = vld [vmem:[#allocation3 + $0xcc] ss:$16 sps:$4 sm:$0xff]   ;;  %v3255_v27 = vld [vmem:[#allocation3 + $0xc0] ss:$16 sps:$4 sm:$0xff]   ;;  %v3256_v28 = vld [vmem:[#allocation3 + $0xc8] ss:$16 sps:$4 sm:$0xff]  }
  0x3f   :  { %v3257_v29 = vld [vmem:[#allocation3 + $0xe4] ss:$16 sps:$4 sm:$0xff]   ;;  %v3259_v30 = vld [vmem:[#allocation3 + $0xec] ss:$16 sps:$4 sm:$0xff]   ;;  %v3261_v31 = vld [vmem:[#allocation3 + $0xe0] ss:$16 sps:$4 sm:$0xff]  }
  0x40   :  { %322 = vmatpush1.bf16.msra.mxu0 %v3231_v11  ;;  %395 = vmatpush1.bf16.msra.mxu1 %v3232_v12  ;;  %v3262_v32 = vld [vmem:[#allocation3 + $0xe8] ss:$16 sps:$4 sm:$0xff]   ;;  %v4045_v33 = vld [vmem:[#allocation5 + $0x4] ss:$16 sps:$4 sm:$0xff]   ;;  %v4047_v34 = vld [vmem:[#allocation5 + $0xc] ss:$16 sps:$4 sm:$0xff]  }
  0x41   :  { %323 = vmatprep.subr.bf16.mxu0 %v3233_v13  ;;  %396 = vmatprep.subr.bf16.mxu1 %v3235_v14  ;;  %v3263_v35 = vld [vmem:[%s5701_s0] sm:$0xff]   ;;  %v4054_v37 = vld [vmem:[#allocation5 + $0x8] ss:$16 sps:$4 sm:$0xff]   ;;  %v4060_v39 = vld [vmem:[#allocation5 + $0x2c] ss:$16 sps:$4 sm:$0xff]   ;;  %vm3945_vm0 = vmmov 0  }
  0x42   :  { %v4052_v36 = vld [vmem:[#allocation5] ss:$16 sps:$4 sm:$0xff]   ;;  %v4058_v38 = vld [vmem:[#allocation5 + $0x24] ss:$16 sps:$4 sm:$0xff]   ;;  %v4066_v41 = vld [vmem:[#allocation5 + $0x28] ss:$16 sps:$4 sm:$0xff]  }
  0x43   :  { %v4062_v40 = vld [vmem:[#allocation5 + $0x20] ss:$16 sps:$4 sm:$0xff]   ;;  %v4070_v42 = vld [vmem:[#allocation5 + $0x44] ss:$16 sps:$4 sm:$0xff]   ;;  %v4072_v43 = vld [vmem:[#allocation5 + $0x4c] ss:$16 sps:$4 sm:$0xff]  }
  0x44   :  { %324 = vmatpush1.bf16.msra.mxu0 %v3237_v15  ;;  %397 = vmatpush1.bf16.msra.mxu1 %v3238_v16  ;;  %v4079_v45 = vld [vmem:[#allocation5 + $0x40] ss:$16 sps:$4 sm:$0xff]   ;;  %v4081_v46 = vld [vmem:[#allocation5 + $0x48] ss:$16 sps:$4 sm:$0xff]   ;;  %v4085_v47 = vld [vmem:[#allocation5 + $0x64] ss:$16 sps:$4 sm:$0xff]  }
  0x45   :  { %325 = vmatprep.subr.bf16.mxu0 %v3239_v17  ;;  %398 = vmatprep.subr.bf16.mxu1 %v3241_v18  ;;  %v4089_v48 = vld [vmem:[#allocation5 + $0x6c] ss:$16 sps:$4 sm:$0xff]   ;;  %v4091_v49 = vld [vmem:[#allocation5 + $0x60] ss:$16 sps:$4 sm:$0xff]   ;;  %v4093_v50 = vld [vmem:[#allocation5 + $0x68] ss:$16 sps:$4 sm:$0xff]  }
  0x46   :  { %v4097_v51 = vld [vmem:[#allocation5 + $0x84] ss:$16 sps:$4 sm:$0xff]   ;;  %v4101_v52 = vld [vmem:[#allocation5 + $0x8c] ss:$16 sps:$4 sm:$0xff]   ;;  %v4108_v54 = vld [vmem:[#allocation5 + $0x80] ss:$16 sps:$4 sm:$0xff]  }
  0x47   :  { %v3289_v53 = vld [vmem:[%s5701_s0 + $0x10] sm:$0xff]   ;;  %v4110_v55 = vld [vmem:[#allocation5 + $0x88] ss:$16 sps:$4 sm:$0xff]   ;;  %v4114_v57 = vld [vmem:[#allocation5 + $0xac] ss:$16 sps:$4 sm:$0xff]  }
  0x48   :  { %326 = vmatpush1.bf16.msra.mxu0 %v3243_v19  ;;  %399 = vmatpush1.bf16.msra.mxu1 %v3244_v20  ;;  %v4112_v56 = vld [vmem:[#allocation5 + $0xa4] ss:$16 sps:$4 sm:$0xff]   ;;  %v4120_v58 = vld [vmem:[#allocation5 + $0xa0] ss:$16 sps:$4 sm:$0xff]   ;;  %v4122_v59 = vld [vmem:[#allocation5 + $0xa8] ss:$16 sps:$4 sm:$0xff]  }
  0x49   :  { %327 = vmatprep.subr.bf16.mxu0 %v3245_v21  ;;  %400 = vmatprep.subr.bf16.mxu1 %v3247_v22  ;;  %v4124_v60 = vld [vmem:[#allocation5 + $0xc4] ss:$16 sps:$4 sm:$0xff]   ;;  %v4126_v61 = vld [vmem:[#allocation5 + $0xcc] ss:$16 sps:$4 sm:$0xff]   ;;  %v4137_v63 = vld [vmem:[#allocation5 + $0xc0] ss:$16 sps:$4 sm:$0xff]  }
  0x4a   :  { %v3302_v62 = vld [vmem:[%s5701_s0 + $0x18] sm:$0xff]   ;;  %v4141_v2 = vld [vmem:[#allocation5 + $0xe4] ss:$16 sps:$4 sm:$0xff]   ;;  %v4149_v4 = vld [vmem:[#allocation5 + $0xe0] ss:$16 sps:$4 sm:$0xff]  }
  0x4b   :  { %v4139_v1 = vld [vmem:[#allocation5 + $0xc8] ss:$16 sps:$4 sm:$0xff]   ;;  %v4143_v3 = vld [vmem:[#allocation5 + $0xec] ss:$16 sps:$4 sm:$0xff]   ;;  %v4163_v6 = vld [vmem:[#allocation7 + $0x4] ss:$16 sps:$4 sm:$0xff]  }
  0x4c   :  { %328 = vmatpush1.bf16.msra.mxu0 %v3249_v23  ;;  %401 = vmatpush1.bf16.msra.mxu1 %v3250_v24  ;;  %v4151_v5 = vld [vmem:[#allocation5 + $0xe8] ss:$16 sps:$4 sm:$0xff]   ;;  %v4165_v7 = vld [vmem:[#allocation7 + $0xc] ss:$16 sps:$4 sm:$0xff]   ;;  %v4167_v8 = vld [vmem:[#allocation7] ss:$16 sps:$4 sm:$0xff]  }
  0x4d   :  { %329 = vmatprep.subr.bf16.mxu0 %v3251_v25  ;;  %402 = vmatprep.subr.bf16.mxu1 %v3253_v26  ;;  %v4169_v9 = vld [vmem:[#allocation7 + $0x8] ss:$16 sps:$4 sm:$0xff]   ;;  %v4175_v10 = vld [vmem:[#allocation7 + $0x24] ss:$16 sps:$4 sm:$0xff]   ;;  %v4177_v11 = vld [vmem:[#allocation7 + $0x2c] ss:$16 sps:$4 sm:$0xff]  }
  0x4e   :  { %v4179_v12 = vld [vmem:[#allocation7 + $0x20] ss:$16 sps:$4 sm:$0xff]   ;;  %v4181_v13 = vld [vmem:[#allocation7 + $0x28] ss:$16 sps:$4 sm:$0xff]   ;;  %v4187_v14 = vld [vmem:[#allocation7 + $0x44] ss:$16 sps:$4 sm:$0xff]  }
  0x4f   :  { %v4189_v15 = vld [vmem:[#allocation7 + $0x4c] ss:$16 sps:$4 sm:$0xff]   ;;  %v4191_v16 = vld [vmem:[#allocation7 + $0x40] ss:$16 sps:$4 sm:$0xff]   ;;  %v4193_v17 = vld [vmem:[#allocation7 + $0x48] ss:$16 sps:$4 sm:$0xff]  }
  0x50   :  { %330 = vmatpush1.bf16.msra.mxu0 %v3255_v27  ;;  %403 = vmatpush1.bf16.msra.mxu1 %v3256_v28  ;;  %6053 = vst [vmem:[#allocation10_spill] sm:$0xff] %v4189_v15  ;;  %6054 = vst [vmem:[#allocation11_spill] sm:$0xff] %v4191_v16  ;;  %v4199_v18 = vld [vmem:[#allocation7 + $0x64] ss:$16 sps:$4 sm:$0xff]   ;;  %v4201_v19 = vld [vmem:[#allocation7 + $0x6c] ss:$16 sps:$4 sm:$0xff]  }
  0x51   :  { %331 = vmatprep.subr.bf16.mxu0 %v3257_v29  ;;  %404 = vmatprep.subr.bf16.mxu1 %v3259_v30  ;;  %6055 = vst [vmem:[#allocation12_spill] sm:$0xff] %v4193_v17  ;;  %6056 = vst [vmem:[#allocation13_spill] sm:$0xff] %v4199_v18  ;;  %v4203_v20 = vld [vmem:[#allocation7 + $0x60] ss:$16 sps:$4 sm:$0xff]   ;;  %v4205_v21 = vld [vmem:[#allocation7 + $0x68] ss:$16 sps:$4 sm:$0xff]  }
  0x52   :  { %6057 = vst [vmem:[#allocation14_spill] sm:$0xff] %v4201_v19  ;;  %6058 = vst [vmem:[#allocation15_spill] sm:$0xff] %v4203_v20  ;;  %v4211_v22 = vld [vmem:[#allocation7 + $0x84] ss:$16 sps:$4 sm:$0xff]   ;;  %v4213_v23 = vld [vmem:[#allocation7 + $0x8c] ss:$16 sps:$4 sm:$0xff]  }
  0x53   :  { %6059 = vst [vmem:[#allocation16_spill] sm:$0xff] %v4205_v21  ;;  %6060 = vst [vmem:[#allocation17_spill] sm:$0xff] %v4211_v22  ;;  %v4217_v24 = vld [vmem:[#allocation7 + $0x80] ss:$16 sps:$4 sm:$0xff]   ;;  %v4219_v25 = vld [vmem:[#allocation7 + $0x88] ss:$16 sps:$4 sm:$0xff]  }
  0x54   :  { %332 = vmatpush1.bf16.msra.mxu0 %v3261_v31  ;;  %405 = vmatpush1.bf16.msra.mxu1 %v3262_v32  ;;  %6061 = vst [vmem:[#allocation18_spill] sm:$0xff] %v4213_v23  ;;  %6062 = vst [vmem:[#allocation19_spill] sm:$0xff] %v4217_v24  ;;  %v4223_v26 = vld [vmem:[#allocation7 + $0xa4] ss:$16 sps:$4 sm:$0xff]   ;;  %v4225_v27 = vld [vmem:[#allocation7 + $0xac] ss:$16 sps:$4 sm:$0xff]  }
  0x55   :  { %756 = vmatprep.subr.bf16.mxu0 %v4045_v33  ;;  %797 = vmatprep.subr.bf16.mxu1 %v4047_v34  ;;  %6063 = vst [vmem:[#allocation20_spill] sm:$0xff] %v4219_v25  ;;  %6064 = vst [vmem:[#allocation21_spill] sm:$0xff] %v4223_v26  ;;  %v4227_v28 = vld [vmem:[#allocation7 + $0xa0] ss:$16 sps:$4 sm:$0xff]   ;;  %v4229_v29 = vld [vmem:[#allocation7 + $0xa8] ss:$16 sps:$4 sm:$0xff]  }
  0x56   :  { %6065 = vst [vmem:[#allocation22_spill] sm:$0xff] %v4225_v27  ;;  %6066 = vst [vmem:[#allocation23_spill] sm:$0xff] %v4227_v28  ;;  %v4235_v30 = vld [vmem:[#allocation7 + $0xc4] ss:$16 sps:$4 sm:$0xff]   ;;  %v4237_v31 = vld [vmem:[#allocation7 + $0xcc] ss:$16 sps:$4 sm:$0xff]  }
  0x57   :  { %350 = vmatmul.mubr.bf16.vlgmr.msra.gmra.mrb[0].mxu0 %v3263_v35  ;;  %423 = vmatmul.mubr.bf16.vlgmr.msra.gmra.mrb[0].mxu1 %v3263_v35  ;;  %6067 = vst [vmem:[#allocation24_spill] sm:$0xff] %v4229_v29  ;;  %6068 = vst [vmem:[#allocation25_spill] sm:$0xff] %v4235_v30  ;;  %v4239_v32 = vld [vmem:[#allocation7 + $0xc0] ss:$16 sps:$4 sm:$0xff]   ;;  %v4241_v35 = vld [vmem:[#allocation7 + $0xc8] ss:$16 sps:$4 sm:$0xff]  }
  0x58   :  { %757 = vmatpush1.bf16.msra.mxu0 %v4052_v36  ;;  %798 = vmatpush1.bf16.msra.mxu1 %v4054_v37  ;;  %6069 = vst [vmem:[#allocation26_spill] sm:$0xff] %v4237_v31  ;;  %6070 = vst [vmem:[#allocation27_spill] sm:$0xff] %v4239_v32 }
  0x59   :  { %758 = vmatprep.subr.bf16.mxu0 %v4058_v38  ;;  %799 = vmatprep.subr.bf16.mxu1 %v4060_v39  ;;  %6071 = vst [vmem:[#allocation28_spill] sm:$0xff] %v4241_v35 }
  0x5a   :  { %359 = vmatprep.mubr.bf16.mxu0 %v5710_v0  ;;  %432 = vmatprep.mubr.bf16.mxu1 %v5710_v0 }
  0x5c   :  { %759 = vmatpush1.bf16.msra.mxu0 %v4062_v40  ;;  %800 = vmatpush1.bf16.msra.mxu1 %v4066_v41 }
  0x5d   :  { %760 = vmatprep.subr.bf16.mxu0 %v4070_v42  ;;  %801 = vmatprep.subr.bf16.mxu1 %v4072_v43 }
  0x5f   :  { %360 = vmatmul.mubr.bf16.gmra.mrb[4].mxu0 %v3276_v44  ;;  %433 = vmatmul.mubr.bf16.gmra.mrb[4].mxu1 %v3276_v44  ;;  %v4247_v44 = vld [vmem:[#allocation7 + $0xe4] ss:$16 sps:$4 sm:$0xff]  }
  0x60   :  { %761 = vmatpush1.bf16.msra.mxu0 %v4079_v45  ;;  %802 = vmatpush1.bf16.msra.mxu1 %v4081_v46  ;;  %6072 = vst [vmem:[#allocation29_spill] sm:$0xff] %v4247_v44 }
  0x61   :  { %762 = vmatprep.subr.bf16.mxu0 %v4085_v47  ;;  %803 = vmatprep.subr.bf16.mxu1 %v4089_v48 }
  0x62   :  { %369 = vmatprep.mubr.bf16.mxu0 %v5710_v0  ;;  %442 = vmatprep.mubr.bf16.mxu1 %v5710_v0 }
  0x64   :  { %763 = vmatpush1.bf16.msra.mxu0 %v4091_v49  ;;  %804 = vmatpush1.bf16.msra.mxu1 %v4093_v50 }
  0x65   :  { %764 = vmatprep.subr.bf16.mxu0 %v4097_v51  ;;  %805 = vmatprep.subr.bf16.mxu1 %v4101_v52 }
  0x67   :  { %370 = vmatmul.mubr.bf16.gmra.mrb[8].mxu0 %v3289_v53  ;;  %443 = vmatmul.mubr.bf16.gmra.mrb[8].mxu1 %v3289_v53  ;;  %v4249_v53 = vld [vmem:[#allocation7 + $0xec] ss:$16 sps:$4 sm:$0xff]  }
  0x68   :  { %765 = vmatpush1.bf16.msra.mxu0 %v4108_v54  ;;  %806 = vmatpush1.bf16.msra.mxu1 %v4110_v55  ;;  %6073 = vst [vmem:[#allocation30_spill] sm:$0xff] %v4249_v53 }
  0x69   :  { %766 = vmatprep.subr.bf16.mxu0 %v4112_v56  ;;  %807 = vmatprep.subr.bf16.mxu1 %v4114_v57 }
  0x6a   :  { %379 = vmatprep.mubr.bf16.mxu0 %v5710_v0  ;;  %452 = vmatprep.mubr.bf16.mxu1 %v5710_v0 }
  0x6c   :  { %767 = vmatpush1.bf16.msra.mxu0 %v4120_v58  ;;  %808 = vmatpush1.bf16.msra.mxu1 %v4122_v59 }
  0x6d   :  { %768 = vmatprep.subr.bf16.mxu0 %v4124_v60  ;;  %809 = vmatprep.subr.bf16.mxu1 %v4126_v61 }
  0x6f   :  { %380 = vmatmul.mubr.bf16.gmra.mrb[12].mxu0 %v3302_v62  ;;  %453 = vmatmul.mubr.bf16.gmra.mrb[12].mxu1 %v3302_v62  ;;  %v4251_v62 = vld [vmem:[#allocation7 + $0xe0] ss:$16 sps:$4 sm:$0xff]  }
  0x70   :  { %769 = vmatpush1.bf16.msra.mxu0 %v4137_v63  ;;  %810 = vmatpush1.bf16.msra.mxu1 %v4139_v1  ;;  %6074 = vst [vmem:[#allocation31_spill] sm:$0xff] %v4251_v62 }
  0x71   :  { %770 = vmatprep.subr.bf16.mxu0 %v4141_v2  ;;  %811 = vmatprep.subr.bf16.mxu1 %v4143_v3 }
  0x72   :  { %788 = vmatprep.mubr.bf16.mxu0 %v5710_v0  ;;  %829 = vmatprep.mubr.bf16.mxu1 %v5710_v0 }
  0x74   :  { %771 = vmatpush1.bf16.msra.mxu0 %v4149_v4  ;;  %812 = vmatpush1.bf16.msra.mxu1 %v4151_v5 }
  0x75   :  { %1209 = vmatprep.subr.bf16.mxu0 %v4163_v6  ;;  %1250 = vmatprep.subr.bf16.mxu1 %v4165_v7 }
  0x77   :  { %789 = vmatmul.mubr.bf16.vlgmr.msra.gmra.mrb[16].mxu0 %v5710_v0  ;;  %830 = vmatmul.mubr.bf16.vlgmr.msra.gmra.mrb[16].mxu1 %v5710_v0  ;;  %v4253_v0 = vld [vmem:[#allocation7 + $0xe8] ss:$16 sps:$4 sm:$0xff]  }
  0x78   :  { %1210 = vmatpush1.bf16.msra.mxu0 %v4167_v8  ;;  %1251 = vmatpush1.bf16.msra.mxu1 %v4169_v9  ;;  %6075 = vst [vmem:[#allocation32_spill] sm:$0xff] %v4253_v0 }
  0x79   :  { %1211 = vmatprep.subr.bf16.mxu0 %v4175_v10  ;;  %1252 = vmatprep.subr.bf16.mxu1 %v4177_v11 }
  0x7c   :  { %1212 = vmatpush1.bf16.msra.mxu0 %v4179_v12  ;;  %1253 = vmatpush1.bf16.msra.mxu1 %v4181_v13 }
  0x7d   :  { %1213 = vmatprep.subr.bf16.mxu0 %v4187_v14  ;;  %1254 = vmatprep.subr.bf16.mxu1 %v4189_v15 }
  0x80   :  { %1214 = vmatpush1.bf16.msra.mxu0 %v4191_v16  ;;  %1255 = vmatpush1.bf16.msra.mxu1 %v4193_v17 }
  0x81   :  { %1215 = vmatprep.subr.bf16.mxu0 %v4199_v18  ;;  %1256 = vmatprep.subr.bf16.mxu1 %v4201_v19 }
  0x84   :  { %1216 = vmatpush1.bf16.msra.mxu0 %v4203_v20  ;;  %1257 = vmatpush1.bf16.msra.mxu1 %v4205_v21 }
  0x85   :  { %1217 = vmatprep.subr.bf16.mxu0 %v4211_v22  ;;  %1258 = vmatprep.subr.bf16.mxu1 %v4213_v23 }
  0x88   :  { %1218 = vmatpush1.bf16.msra.mxu0 %v4217_v24  ;;  %1259 = vmatpush1.bf16.msra.mxu1 %v4219_v25 }
  0x89   :  { %1219 = vmatprep.subr.bf16.mxu0 %v4223_v26  ;;  %1260 = vmatprep.subr.bf16.mxu1 %v4225_v27  ;;  %v3943_v27 = vmov 0.0|0.0  }
  0x8a   :  { %1241 = vmatprep.mubr.bf16.mxu0 %v3943_v27  ;;  %1282 = vmatprep.mubr.bf16.mxu1 %v3943_v27  ;;  %v113_v27 = vlaneseq }
  0x8c   :  { %1220 = vmatpush1.bf16.msra.mxu0 %v4227_v28  ;;  %1261 = vmatpush1.bf16.msra.mxu1 %v4229_v29  ;;  %v4327_v29 = vld [vmem:[#allocation7 + $0x1c4] ss:$16 sps:$4 sm:$0xff]   ;;  %v4329_v28 = vld [vmem:[#allocation7 + $0x1cc] ss:$16 sps:$4 sm:$0xff]  }
  0x8d   :  { %1221 = vmatprep.subr.bf16.mxu0 %v4235_v30  ;;  %1262 = vmatprep.subr.bf16.mxu1 %v4237_v31  ;;  %v4259_v31 = vld [vmem:[#allocation7 + $0x104] ss:$16 sps:$4 sm:$0xff]   ;;  %v4265_v30 = vld [vmem:[#allocation7 + $0x108] ss:$16 sps:$4 sm:$0xff]   ;;  %6100 = vst [vmem:[#allocation57_spill] sm:$0xff] %v4327_v29  ;;  %6101 = vst [vmem:[#allocation58_spill] sm:$0xff] %v4329_v28 }
  0x8e   :  { %6076 = vst [vmem:[#allocation33_spill] sm:$0xff] %v4259_v31  ;;  %6079 = vst [vmem:[#allocation36_spill] sm:$0xff] %v4265_v30 }
  0x90   :  { %1222 = vmatpush1.bf16.msra.mxu0 %v4239_v32  ;;  %1263 = vmatpush1.bf16.msra.mxu1 %v4241_v35  ;;  %v4261_v32 = vld [vmem:[#allocation7 + $0x10c] ss:$16 sps:$4 sm:$0xff]   ;;  %v4263_v35 = vld [vmem:[#allocation7 + $0x100] ss:$16 sps:$4 sm:$0xff]  }
  0x91   :  { %1223 = vmatprep.subr.bf16.mxu0 %v4247_v44  ;;  %1264 = vmatprep.subr.bf16.mxu1 %v4249_v53  ;;  %6077 = vst [vmem:[#allocation34_spill] sm:$0xff] %v4261_v32  ;;  %6078 = vst [vmem:[#allocation35_spill] sm:$0xff] %v4263_v35  ;;  %v4271_v53 = vld [vmem:[#allocation7 + $0x124] ss:$16 sps:$4 sm:$0xff]   ;;  %v4277_v44 = vld [vmem:[#allocation7 + $0x128] ss:$16 sps:$4 sm:$0xff]  }
  0x92   :  { %6080 = vst [vmem:[#allocation37_spill] sm:$0xff] %v4271_v53  ;;  %6083 = vst [vmem:[#allocation40_spill] sm:$0xff] %v4277_v44 }
  0x94   :  { %1224 = vmatpush1.bf16.msra.mxu0 %v4251_v62  ;;  %1265 = vmatpush1.bf16.msra.mxu1 %v4253_v0  ;;  %v4273_v62 = vld [vmem:[#allocation7 + $0x12c] ss:$16 sps:$4 sm:$0xff]   ;;  %v4275_v0 = vld [vmem:[#allocation7 + $0x120] ss:$16 sps:$4 sm:$0xff]  }
  0x95   :  { %1225 = vmatprep.subr.bf16.mxu0 %v4259_v31  ;;  %1266 = vmatprep.subr.bf16.mxu1 %v4261_v32  ;;  %6081 = vst [vmem:[#allocation38_spill] sm:$0xff] %v4273_v62  ;;  %6082 = vst [vmem:[#allocation39_spill] sm:$0xff] %v4275_v0  ;;  %v4283_v32 = vld [vmem:[#allocation7 + $0x144] ss:$16 sps:$4 sm:$0xff]   ;;  %v4289_v31 = vld [vmem:[#allocation7 + $0x148] ss:$16 sps:$4 sm:$0xff]  }
  0x96   :  { %6084 = vst [vmem:[#allocation41_spill] sm:$0xff] %v4283_v32  ;;  %6087 = vst [vmem:[#allocation44_spill] sm:$0xff] %v4289_v31 }
  0x98   :  { %1226 = vmatpush1.bf16.msra.mxu0 %v4263_v35  ;;  %1267 = vmatpush1.bf16.msra.mxu1 %v4265_v30  ;;  %v4285_v35 = vld [vmem:[#allocation7 + $0x14c] ss:$16 sps:$4 sm:$0xff]   ;;  %v4287_v30 = vld [vmem:[#allocation7 + $0x140] ss:$16 sps:$4 sm:$0xff]  }
  0x99   :  { %1227 = vmatprep.subr.bf16.mxu0 %v4271_v53  ;;  %1268 = vmatprep.subr.bf16.mxu1 %v4273_v62  ;;  %6085 = vst [vmem:[#allocation42_spill] sm:$0xff] %v4285_v35  ;;  %6086 = vst [vmem:[#allocation43_spill] sm:$0xff] %v4287_v30  ;;  %v4295_v62 = vld [vmem:[#allocation7 + $0x164] ss:$16 sps:$4 sm:$0xff]   ;;  %v4301_v53 = vld [vmem:[#allocation7 + $0x168] ss:$16 sps:$4 sm:$0xff]  }
  0x9a   :  { %6088 = vst [vmem:[#allocation45_spill] sm:$0xff] %v4295_v62  ;;  %6091 = vst [vmem:[#allocation48_spill] sm:$0xff] %v4301_v53 }
  0x9c   :  { %1228 = vmatpush1.bf16.msra.mxu0 %v4275_v0  ;;  %1269 = vmatpush1.bf16.msra.mxu1 %v4277_v44  ;;  %v4297_v0 = vld [vmem:[#allocation7 + $0x16c] ss:$16 sps:$4 sm:$0xff]   ;;  %v4299_v44 = vld [vmem:[#allocation7 + $0x160] ss:$16 sps:$4 sm:$0xff]  }
  0x9d   :  { %1229 = vmatprep.subr.bf16.mxu0 %v4283_v32  ;;  %1270 = vmatprep.subr.bf16.mxu1 %v4285_v35  ;;  %6089 = vst [vmem:[#allocation46_spill] sm:$0xff] %v4297_v0  ;;  %6090 = vst [vmem:[#allocation47_spill] sm:$0xff] %v4299_v44  ;;  %v4307_v35 = vld [vmem:[#allocation7 + $0x184] ss:$16 sps:$4 sm:$0xff]   ;;  %v4313_v32 = vld [vmem:[#allocation7 + $0x188] ss:$16 sps:$4 sm:$0xff]  }
  0x9e   :  { %6092 = vst [vmem:[#allocation49_spill] sm:$0xff] %v4307_v35  ;;  %6095 = vst [vmem:[#allocation52_spill] sm:$0xff] %v4313_v32 }
  0xa0   :  { %1230 = vmatpush1.bf16.msra.mxu0 %v4287_v30  ;;  %1271 = vmatpush1.bf16.msra.mxu1 %v4289_v31  ;;  %v4309_v30 = vld [vmem:[#allocation7 + $0x18c] ss:$16 sps:$4 sm:$0xff]   ;;  %v4311_v31 = vld [vmem:[#allocation7 + $0x180] ss:$16 sps:$4 sm:$0xff]  }
  0xa1   :  { %1231 = vmatprep.subr.bf16.mxu0 %v4295_v62  ;;  %1272 = vmatprep.subr.bf16.mxu1 %v4297_v0  ;;  %6093 = vst [vmem:[#allocation50_spill] sm:$0xff] %v4309_v30  ;;  %6094 = vst [vmem:[#allocation51_spill] sm:$0xff] %v4311_v31  ;;  %v4319_v0 = vld [vmem:[#allocation7 + $0x1a4] ss:$16 sps:$4 sm:$0xff]   ;;  %v4325_v62 = vld [vmem:[#allocation7 + $0x1a8] ss:$16 sps:$4 sm:$0xff]  }
  0xa2   :  { %6096 = vst [vmem:[#allocation53_spill] sm:$0xff] %v4319_v0  ;;  %6099 = vst [vmem:[#allocation56_spill] sm:$0xff] %v4325_v62 }
  0xa4   :  { %1232 = vmatpush1.bf16.msra.mxu0 %v4299_v44  ;;  %1273 = vmatpush1.bf16.msra.mxu1 %v4301_v53  ;;  %v4321_v44 = vld [vmem:[#allocation7 + $0x1ac] ss:$16 sps:$4 sm:$0xff]   ;;  %v4323_v53 = vld [vmem:[#allocation7 + $0x1a0] ss:$16 sps:$4 sm:$0xff]  }
  0xa5   :  { %1233 = vmatprep.subr.bf16.mxu0 %v4307_v35  ;;  %1274 = vmatprep.subr.bf16.mxu1 %v4309_v30  ;;  %6097 = vst [vmem:[#allocation54_spill] sm:$0xff] %v4321_v44  ;;  %6098 = vst [vmem:[#allocation55_spill] sm:$0xff] %v4323_v53  ;;  %v4341_v30 = vld [vmem:[#allocation7 + $0x1e4] ss:$16 sps:$4 sm:$0xff]   ;;  %v4343_v35 = vld [vmem:[#allocation7 + $0x1ec] ss:$16 sps:$4 sm:$0xff]  }
  0xa6   :  { %6104 = vst [vmem:[#allocation61_spill] sm:$0xff] %v4341_v30  ;;  %6105 = vst [vmem:[#allocation62_spill] sm:$0xff] %v4343_v35 }
  0xa8   :  { %1234 = vmatpush1.bf16.msra.mxu0 %v4311_v31  ;;  %1275 = vmatpush1.bf16.msra.mxu1 %v4313_v32  ;;  %v4335_v32 = vld [vmem:[#allocation7 + $0x1c0] ss:$16 sps:$4 sm:$0xff]   ;;  %v4337_v31 = vld [vmem:[#allocation7 + $0x1c8] ss:$16 sps:$4 sm:$0xff]  }
  0xa9   :  { %1235 = vmatprep.subr.bf16.mxu0 %v4319_v0  ;;  %1276 = vmatprep.subr.bf16.mxu1 %v4321_v44  ;;  %6102 = vst [vmem:[#allocation59_spill] sm:$0xff] %v4335_v32  ;;  %6103 = vst [vmem:[#allocation60_spill] sm:$0xff] %v4337_v31 }
  0xac   :  { %1236 = vmatpush1.bf16.msra.mxu0 %v4323_v53  ;;  %1277 = vmatpush1.bf16.msra.mxu1 %v4325_v62  ;;  %v4347_v62 = vld [vmem:[#allocation7 + $0x1e0] ss:$16 sps:$4 sm:$0xff]   ;;  %v4349_v53 = vld [vmem:[#allocation7 + $0x1e8] ss:$16 sps:$4 sm:$0xff]  }
  0xad   :  { %1237 = vmatprep.subr.bf16.mxu0 %v4327_v29  ;;  %1278 = vmatprep.subr.bf16.mxu1 %v4329_v28  ;;  %6106 = vst [vmem:[#allocation63_spill] sm:$0xff] %v4347_v62  ;;  %6107 = vst [vmem:[#allocation64_spill] sm:$0xff] %v4349_v53 }
  0xb0   :  { %1238 = vmatpush1.bf16.msra.mxu0 %v4335_v32  ;;  %1279 = vmatpush1.bf16.msra.mxu1 %v4337_v31  ;;  %v4357_v32 = vshrl.u32 %v113_v27, 7 }
  0xb1   :  { %1239 = vmatprep.subr.bf16.mxu0 %v4341_v30  ;;  %1280 = vmatprep.subr.bf16.mxu1 %v4343_v35  ;;  %v111_v35 = vld [vmem:[%s5704_s3] sm:$0xf] }
  0xb2   :  { %6108 = vst [vmem:[#allocation65_spill] sm:$0xff] %v4357_v32  ;;  %v5804_v31 = vsub.s32 2, %v4357_v32  ;;  %v5813_v28 = vsub.s32 3, %v4357_v32  ;;  %v5814_v29 = vsub.s32 0, %v4357_v32 }
  0xb4   :  { %1240 = vmatpush1.bf16.msra.mxu0 %v4347_v62  ;;  %1281 = vmatpush1.bf16.msra.mxu1 %v4349_v53  ;;  %v5821_v62 = vsub.s32 1, %v4357_v32  ;;  %v4376_v53 = vrot.slane %v111_v35, %v5813_v28  ;;  %v116_v30 = vrot.slane %v111_v35, %v5814_v29 }
  0xb5   :  { %1319 = vmatprep.subr.bf16.mxu0 %v4045_v33  ;;  %1360 = vmatprep.subr.bf16.mxu1 %v4047_v34  ;;  %v4368_v33 = vrot.slane %v111_v35, %v5804_v31 }
  0xb6   :  { %v120_v26 = vrot.slane %v111_v35, %v5821_v62 }
 0x12a   :  { %v4370_v34 = vpop.f32.mrb[0].mxu0  ;;  %v4372_v27 = vpop.f32.mrb[0].mxu1 }
 0x12b   :  { %v353_v44 = vpop.f32.mrb[1].mxu0  ;;  %v426_v0 = vpop.f32.mrb[1].mxu1 }
 0x12c   :  { %v355_v25 = vpop.f32.mrb[2].mxu0  ;;  %v428_v24 = vpop.f32.mrb[2].mxu1 }
 0x12d   :  { %v4382_v31 = vadd.f32 %v355_v25, %v116_v30  ;;  %v357_v23 = vpop.f32.mrb[3].mxu0  ;;  %v4385_v22 = vadd.f32 %v428_v24, %v4368_v33  ;;  %v430_v21 = vpop.f32.mrb[3].mxu1 }
 0x12e   :  { %v4387_v20 = vadd.f32 %v357_v23, %v120_v26  ;;  %v4390_v28 = vadd.f32 %v430_v21, %v4376_v53 }
 0x12f   :  { %6109 = vst [vmem:[#allocation66_spill] sm:$0xff] %v4382_v31  ;;  %6110 = vst [vmem:[#allocation67_spill] sm:$0xff] %v4385_v22 }
 0x130   :  { %6111 = vst [vmem:[#allocation68_spill] sm:$0xff] %v4387_v20  ;;  %6112 = vst [vmem:[#allocation69_spill] sm:$0xff] %v4390_v28 }
 0x132   :  { %v361_v29 = vpop.f32.mrb[4].mxu0  ;;  %v434_v19 = vpop.f32.mrb[4].mxu1 }
 0x133   :  { %v4392_v18 = vadd.f32 %v361_v29, %v116_v30  ;;  %v363_v32 = vpop.f32.mrb[5].mxu0  ;;  %v4395_v35 = vadd.f32 %v434_v19, %v4368_v33  ;;  %v436_v25 = vpop.f32.mrb[5].mxu1 }
 0x134   :  { %v4397_v62 = vadd.f32 %v363_v32, %v120_v26  ;;  %v365_v31 = vpop.f32.mrb[6].mxu0  ;;  %v4400_v24 = vadd.f32 %v436_v25, %v4376_v53  ;;  %v438_v23 = vpop.f32.mrb[6].mxu1 }
 0x135   :  { %6113 = vst [vmem:[#allocation70_spill] sm:$0xff] %v4392_v18  ;;  %6114 = vst [vmem:[#allocation71_spill] sm:$0xff] %v4395_v35  ;;  %v4402_v20 = vadd.f32 %v365_v31, %v116_v30  ;;  %v367_v21 = vpop.f32.mrb[7].mxu0  ;;  %v4405_v28 = vadd.f32 %v438_v23, %v4368_v33  ;;  %v440_v29 = vpop.f32.mrb[7].mxu1 }
 0x136   :  { %6115 = vst [vmem:[#allocation72_spill] sm:$0xff] %v4397_v62  ;;  %6116 = vst [vmem:[#allocation73_spill] sm:$0xff] %v4400_v24  ;;  %v4407_v18 = vadd.f32 %v367_v21, %v120_v26  ;;  %v4410_v19 = vadd.f32 %v440_v29, %v4376_v53 }
 0x137   :  { %6117 = vst [vmem:[#allocation74_spill] sm:$0xff] %v4402_v20  ;;  %6118 = vst [vmem:[#allocation75_spill] sm:$0xff] %v4405_v28 }
 0x138   :  { %6119 = vst [vmem:[#allocation76_spill] sm:$0xff] %v4407_v18  ;;  %6120 = vst [vmem:[#allocation77_spill] sm:$0xff] %v4410_v19 }
 0x13a   :  { %v371_v35 = vpop.f32.mrb[8].mxu0  ;;  %v444_v32 = vpop.f32.mrb[8].mxu1 }
 0x13b   :  { %v4412_v62 = vadd.f32 %v371_v35, %v116_v30  ;;  %v373_v22 = vpop.f32.mrb[9].mxu0  ;;  %v4415_v25 = vadd.f32 %v444_v32, %v4368_v33  ;;  %v446_v31 = vpop.f32.mrb[9].mxu1 }
 0x13c   :  { %v4417_v20 = vadd.f32 %v373_v22, %v120_v26  ;;  %v375_v24 = vpop.f32.mrb[10].mxu0  ;;  %v4420_v23 = vadd.f32 %v446_v31, %v4376_v53  ;;  %v448_v21 = vpop.f32.mrb[10].mxu1 }
 0x13d   :  { %6121 = vst [vmem:[#allocation78_spill] sm:$0xff] %v4412_v62  ;;  %6122 = vst [vmem:[#allocation79_spill] sm:$0xff] %v4415_v25  ;;  %v4422_v18 = vadd.f32 %v375_v24, %v116_v30  ;;  %v377_v29 = vpop.f32.mrb[11].mxu0  ;;  %v4425_v19 = vadd.f32 %v448_v21, %v4368_v33  ;;  %v450_v35 = vpop.f32.mrb[11].mxu1 }
 0x13e   :  { %6123 = vst [vmem:[#allocation80_spill] sm:$0xff] %v4417_v20  ;;  %6124 = vst [vmem:[#allocation81_spill] sm:$0xff] %v4420_v23  ;;  %v4427_v62 = vadd.f32 %v377_v29, %v120_v26  ;;  %v4430_v32 = vadd.f32 %v450_v35, %v4376_v53 }
 0x13f   :  { %6125 = vst [vmem:[#allocation82_spill] sm:$0xff] %v4422_v18  ;;  %6126 = vst [vmem:[#allocation83_spill] sm:$0xff] %v4425_v19 }
 0x140   :  { %6127 = vst [vmem:[#allocation84_spill] sm:$0xff] %v4427_v62  ;;  %6128 = vst [vmem:[#allocation85_spill] sm:$0xff] %v4430_v32 }
 0x142   :  { %v381_v25 = vpop.f32.mrb[12].mxu0  ;;  %v454_v22 = vpop.f32.mrb[12].mxu1 }
 0x143   :  { %v4432_v20 = vadd.f32 %v381_v25, %v116_v30  ;;  %v383_v28 = vpop.f32.mrb[13].mxu0  ;;  %v4435_v31 = vadd.f32 %v454_v22, %v4368_v33  ;;  %v456_v24 = vpop.f32.mrb[13].mxu1 }
 0x144   :  { %v4437_v18 = vadd.f32 %v383_v28, %v120_v26  ;;  %v385_v23 = vpop.f32.mrb[14].mxu0  ;;  %v4440_v21 = vadd.f32 %v456_v24, %v4376_v53  ;;  %v458_v29 = vpop.f32.mrb[14].mxu1  ;;  %v352_v28 = vadd.f32 %v4370_v34, %v116_v30  ;;  %v354_v24 = vadd.f32 %v353_v44, %v120_v26 }
 0x145   :  { %6129 = vst [vmem:[#allocation86_spill] sm:$0xff] %v4432_v20  ;;  %6130 = vst [vmem:[#allocation87_spill] sm:$0xff] %v4435_v31  ;;  %v4442_v62 = vadd.f32 %v385_v23, %v116_v30  ;;  %v387_v35 = vpop.f32.mrb[15].mxu0  ;;  %v4445_v32 = vadd.f32 %v458_v29, %v4368_v33  ;;  %v460_v25 = vpop.f32.mrb[15].mxu1 }
 0x146   :  { %6131 = vst [vmem:[#allocation88_spill] sm:$0xff] %v4437_v18  ;;  %6132 = vst [vmem:[#allocation89_spill] sm:$0xff] %v4440_v21  ;;  %v4447_v20 = vadd.f32 %v387_v35, %v120_v26  ;;  %v4450_v22 = vadd.f32 %v460_v25, %v4376_v53  ;;  %v425_v18 = vadd.f32 %v4372_v27, %v4368_v33 }
 0x147   :  { %6133 = vst [vmem:[#allocation90_spill] sm:$0xff] %v4442_v62  ;;  %6134 = vst [vmem:[#allocation91_spill] sm:$0xff] %v4445_v32  ;;  %v427_v21 = vadd.f32 %v426_v0, %v4376_v53 }
 0x148   :  { %6135 = vst [vmem:[#allocation92_spill] sm:$0xff] %v4447_v20  ;;  %6136 = vst [vmem:[#allocation93_spill] sm:$0xff] %v4450_v22 }
 0x14a   :  { %v790_v23 = vpop.f32.mrb[16].mxu0  ;;  %v831_v62 = vpop.f32.mrb[16].mxu1 }
 0x14b   :  { %v838_v31 = vadd.f32 %v790_v23, %v352_v28  ;;  %v840_v19 = vadd.f32 %v831_v62, %v425_v18  ;;  %v792_v29 = vpop.f32.mrb[17].mxu0  ;;  %v833_v32 = vpop.f32.mrb[17].mxu1  ;;  %v6168_v28 = vld [vmem:[#allocation40_spill] sm:$0xff]  ;;  %v6170_v23 = vld [vmem:[#allocation42_spill] sm:$0xff] }
 0x14c   :  { %v839_v17 = vadd.f32 %v792_v29, %v354_v24  ;;  %v841_v35 = vadd.f32 %v833_v32, %v427_v21  ;;  %v794_v20 = vpop.f32.mrb[18].mxu0  ;;  %v835_v16 = vpop.f32.mrb[18].mxu1  ;;  %v6169_v24 = vld [vmem:[#allocation41_spill] sm:$0xff]  ;;  %v6171_v29 = vld [vmem:[#allocation43_spill] sm:$0xff] }
 0x14d   :  { %v3056_v25 = vmul.f32 -1.442695, %v838_v31  ;;  %v795_v22 = vpop.f32.mrb[19].mxu0  ;;  %v836_v15 = vpop.f32.mrb[19].mxu1 }
 0x14e   :  { %v3057_v30 = vmul.f32 -1.442695, %v839_v17  ;;  %v3058_v33 = vmul.f32 -1.442695, %v841_v35  ;;  %v6172_v35 = vld [vmem:[#allocation44_spill] sm:$0xff] }
 0x14f   :  { %3419 = vpow2.f32 %v3056_v25  ;;  %v6173_v25 = vld [vmem:[#allocation45_spill] sm:$0xff] }
 0x150   :  { %3421 = vpow2.f32 %v3057_v30  ;;  %v6174_v30 = vld [vmem:[#allocation46_spill] sm:$0xff] }
 0x151   :  { %3423 = vpow2.f32 %v3058_v33  ;;  %v6175_v33 = vld [vmem:[#allocation47_spill] sm:$0xff] }
 0x152   :  { %3425 = vtanh.f32 %v840_v19  ;;  %v6137_v19 = vmov 0  }
 0x159   :  { %v3420_v26 = vpop.eup %3419 }
 0x15a   :  { %v3422_v44 = vpop.eup %3421  ;;  %v845_v0 = vadd.f32 1.0, %v3420_v26  ;;  %v6176_v26 = vld [vmem:[#allocation48_spill] sm:$0xff] }
 0x15b   :  { %v851_v53 = vadd.f32 1.0, %v3422_v44  ;;  %v3424_v18 = vpop.eup %3423  ;;  %v6177_v44 = vld [vmem:[#allocation49_spill] sm:$0xff] }
 0x15c   :  { %3427 = vrcp.f32 %v845_v0  ;;  %v3426_v62 = vpop.eup %3425  ;;  %v857_v27 = vadd.f32 1.0, %v3424_v18  ;;  %v6178_v0 = vld [vmem:[#allocation50_spill] sm:$0xff]  ;;  %v6180_v18 = vld [vmem:[#allocation52_spill] sm:$0xff] }
 0x15d   :  { %3429 = vrcp.f32 %v851_v53  ;;  %v6179_v53 = vld [vmem:[#allocation51_spill] sm:$0xff] }
 0x15e   :  { %3431 = vrcp.f32 %v857_v27  ;;  %v6185_v27 = vld [vmem:[#allocation57_spill] sm:$0xff] }
 0x166   :  { %v3428_v34 = vpop.eup %3427 }
 0x167   :  { %v3430_v20 = vpop.eup %3429  ;;  %v862_v16 = vmul.f32 %v3428_v34, %v3426_v62  ;;  %v6181_v62 = vld [vmem:[#allocation53_spill] sm:$0xff]  ;;  %v6182_v34 = vld [vmem:[#allocation54_spill] sm:$0xff] }
 0x168   :  { %v861_v32 = vmul.f32 0.0, %v3430_v20  ;;  %v3432_v17 = vpop.eup %3431  ;;  %v6183_v20 = vld [vmem:[#allocation55_spill] sm:$0xff] }
 0x16a   :  { %v4456_v15 = vadd.f32 %v862_v16, %v861_v32  ;;  %v6184_v16 = vld [vmem:[#allocation56_spill] sm:$0xff]  ;;  %v6186_v32 = vld [vmem:[#allocation58_spill] sm:$0xff] }
 0x16c   :  { %3433 = vtanh.f32 %v4456_v15 }
 0x176   :  { %v3434_v31 = vpop.eup %3433 }
 0x177   :  { %v865_v21 = vmul.f32 %v3434_v31, %v3432_v17  ;;  %v6187_v17 = vld [vmem:[#allocation59_spill] sm:$0xff]  ;;  %v6188_v31 = vld [vmem:[#allocation60_spill] sm:$0xff] }
 0x179   :  { %v866_v22 = vpack.c.bf16 %v865_v21, %v865_v21  ;;  %v6189_v21 = vld [vmem:[#allocation61_spill] sm:$0xff] }
 0x17b   :  { %1242 = vmatmul.mubr.bf16.vlgmr.msra.gmra.mrb[20].mxu0 %v866_v22  ;;  %1283 = vmatmul.mubr.bf16.vlgmr.msra.gmra.mrb[20].mxu1 %v866_v22 }
 0x17c   :  { %1320 = vmatpush1.bf16.msra.mxu0 %v4052_v36  ;;  %1361 = vmatpush1.bf16.msra.mxu1 %v4054_v37  ;;  %v6138_v36 = vld [vmem:[#allocation10_spill] sm:$0xff]  ;;  %v6139_v37 = vld [vmem:[#allocation11_spill] sm:$0xff] }
 0x17d   :  { %1321 = vmatprep.subr.bf16.mxu0 %v4058_v38  ;;  %1362 = vmatprep.subr.bf16.mxu1 %v4060_v39  ;;  %v6140_v38 = vld [vmem:[#allocation12_spill] sm:$0xff]  ;;  %v6141_v39 = vld [vmem:[#allocation13_spill] sm:$0xff] }
 0x17e   :  { %1351 = vmatprep.mubr.bf16.mxu0 %v6137_v19  ;;  %1392 = vmatprep.mubr.bf16.mxu1 %v6137_v19 }
 0x180   :  { %1322 = vmatpush1.bf16.msra.mxu0 %v4062_v40  ;;  %1363 = vmatpush1.bf16.msra.mxu1 %v4066_v41  ;;  %v6142_v40 = vld [vmem:[#allocation14_spill] sm:$0xff]  ;;  %v6143_v41 = vld [vmem:[#allocation15_spill] sm:$0xff] }
 0x181   :  { %1323 = vmatprep.subr.bf16.mxu0 %v4070_v42  ;;  %1364 = vmatprep.subr.bf16.mxu1 %v4072_v43  ;;  %v6144_v42 = vld [vmem:[#allocation16_spill] sm:$0xff]  ;;  %v6145_v43 = vld [vmem:[#allocation17_spill] sm:$0xff] }
 0x184   :  { %1324 = vmatpush1.bf16.msra.mxu0 %v4079_v45  ;;  %1365 = vmatpush1.bf16.msra.mxu1 %v4081_v46  ;;  %v6146_v45 = vld [vmem:[#allocation18_spill] sm:$0xff]  ;;  %v6147_v46 = vld [vmem:[#allocation19_spill] sm:$0xff] }
 0x185   :  { %1325 = vmatprep.subr.bf16.mxu0 %v4085_v47  ;;  %1366 = vmatprep.subr.bf16.mxu1 %v4089_v48  ;;  %v6148_v47 = vld [vmem:[#allocation20_spill] sm:$0xff]  ;;  %v6149_v48 = vld [vmem:[#allocation21_spill] sm:$0xff] }
 0x188   :  { %1326 = vmatpush1.bf16.msra.mxu0 %v4091_v49  ;;  %1367 = vmatpush1.bf16.msra.mxu1 %v4093_v50  ;;  %v6150_v49 = vld [vmem:[#allocation22_spill] sm:$0xff]  ;;  %v6151_v50 = vld [vmem:[#allocation23_spill] sm:$0xff] }
 0x189   :  { %1327 = vmatprep.subr.bf16.mxu0 %v4097_v51  ;;  %1368 = vmatprep.subr.bf16.mxu1 %v4101_v52  ;;  %v6152_v51 = vld [vmem:[#allocation24_spill] sm:$0xff]  ;;  %v6153_v52 = vld [vmem:[#allocation25_spill] sm:$0xff] }
 0x18c   :  { %1328 = vmatpush1.bf16.msra.mxu0 %v4108_v54  ;;  %1369 = vmatpush1.bf16.msra.mxu1 %v4110_v55  ;;  %v6154_v54 = vld [vmem:[#allocation26_spill] sm:$0xff]  ;;  %v6155_v55 = vld [vmem:[#allocation27_spill] sm:$0xff] }
 0x18d   :  { %1329 = vmatprep.subr.bf16.mxu0 %v4112_v56  ;;  %1370 = vmatprep.subr.bf16.mxu1 %v4114_v57  ;;  %v6156_v56 = vld [vmem:[#allocation28_spill] sm:$0xff]  ;;  %v6157_v57 = vld [vmem:[#allocation29_spill] sm:$0xff] }
 0x190   :  { %1330 = vmatpush1.bf16.msra.mxu0 %v4120_v58  ;;  %1371 = vmatpush1.bf16.msra.mxu1 %v4122_v59  ;;  %v6158_v58 = vld [vmem:[#allocation30_spill] sm:$0xff]  ;;  %v6159_v59 = vld [vmem:[#allocation31_spill] sm:$0xff] }
 0x191   :  { %1331 = vmatprep.subr.bf16.mxu0 %v4124_v60  ;;  %1372 = vmatprep.subr.bf16.mxu1 %v4126_v61  ;;  %v6160_v60 = vld [vmem:[#allocation32_spill] sm:$0xff]  ;;  %v6161_v61 = vld [vmem:[#allocation33_spill] sm:$0xff] }
 0x194   :  { %1332 = vmatpush1.bf16.msra.mxu0 %v4137_v63  ;;  %1373 = vmatpush1.bf16.msra.mxu1 %v4139_v1  ;;  %v6162_v63 = vld [vmem:[#allocation34_spill] sm:$0xff]  ;;  %v6163_v1 = vld [vmem:[#allocation35_spill] sm:$0xff] }
 0x195   :  { %1333 = vmatprep.subr.bf16.mxu0 %v4141_v2  ;;  %1374 = vmatprep.subr.bf16.mxu1 %v4143_v3  ;;  %v6164_v2 = vld [vmem:[#allocation36_spill] sm:$0xff]  ;;  %v6165_v3 = vld [vmem:[#allocation37_spill] sm:$0xff] }
 0x198   :  { %1334 = vmatpush1.bf16.msra.mxu0 %v4149_v4  ;;  %1375 = vmatpush1.bf16.msra.mxu1 %v4151_v5  ;;  %v6166_v4 = vld [vmem:[#allocation38_spill] sm:$0xff]  ;;  %v6167_v5 = vld [vmem:[#allocation39_spill] sm:$0xff] }
 0x199   :  { %1431 = vmatprep.subr.bf16.mxu0 %v4163_v6  ;;  %1472 = vmatprep.subr.bf16.mxu1 %v4165_v7 }
 0x19b   :  { %1352 = vmatmul.mubr.bf16.vlgmr.msra.gmra.mrb[24].mxu0 %v866_v22  ;;  %1393 = vmatmul.mubr.bf16.vlgmr.msra.gmra.mrb[24].mxu1 %v866_v22  ;;  %v6190_v22 = vld [vmem:[#allocation62_spill] sm:$0xff] }
 0x19c   :  { %1432 = vmatpush1.bf16.msra.mxu0 %v4167_v8  ;;  %1473 = vmatpush1.bf16.msra.mxu1 %v4169_v9 }
 0x19d   :  { %1433 = vmatprep.subr.bf16.mxu0 %v4175_v10  ;;  %1474 = vmatprep.subr.bf16.mxu1 %v4177_v11 }
 0x1a0   :  { %1434 = vmatpush1.bf16.msra.mxu0 %v4179_v12  ;;  %1475 = vmatpush1.bf16.msra.mxu1 %v4181_v13 }
 0x1a1   :  { %1435 = vmatprep.subr.bf16.mxu0 %v4187_v14  ;;  %1476 = vmatprep.subr.bf16.mxu1 %v6138_v36 }
 0x1a4   :  { %1436 = vmatpush1.bf16.msra.mxu0 %v6139_v37  ;;  %1477 = vmatpush1.bf16.msra.mxu1 %v6140_v38 }
 0x1a5   :  { %1437 = vmatprep.subr.bf16.mxu0 %v6141_v39  ;;  %1478 = vmatprep.subr.bf16.mxu1 %v6142_v40 }
 0x1a8   :  { %1438 = vmatpush1.bf16.msra.mxu0 %v6143_v41  ;;  %1479 = vmatpush1.bf16.msra.mxu1 %v6144_v42 }
 0x1a9   :  { %1439 = vmatprep.subr.bf16.mxu0 %v6145_v43  ;;  %1480 = vmatprep.subr.bf16.mxu1 %v6146_v45 }
 0x1ac   :  { %1440 = vmatpush1.bf16.msra.mxu0 %v6147_v46  ;;  %1481 = vmatpush1.bf16.msra.mxu1 %v6148_v47 }
 0x1ad   :  { %1441 = vmatprep.subr.bf16.mxu0 %v6149_v48  ;;  %1482 = vmatprep.subr.bf16.mxu1 %v6150_v49 }
 0x1b0   :  { %1442 = vmatpush1.bf16.msra.mxu0 %v6151_v50  ;;  %1483 = vmatpush1.bf16.msra.mxu1 %v6152_v51 }
 0x1b1   :  { %1443 = vmatprep.subr.bf16.mxu0 %v6153_v52  ;;  %1484 = vmatprep.subr.bf16.mxu1 %v6154_v54 }
 0x1b4   :  { %1444 = vmatpush1.bf16.msra.mxu0 %v6155_v55  ;;  %1485 = vmatpush1.bf16.msra.mxu1 %v6156_v56 }
 0x1b5   :  { %1445 = vmatprep.subr.bf16.mxu0 %v6157_v57  ;;  %1486 = vmatprep.subr.bf16.mxu1 %v6158_v58 }
 0x1b8   :  { %1446 = vmatpush1.bf16.msra.mxu0 %v6159_v59  ;;  %1487 = vmatpush1.bf16.msra.mxu1 %v6160_v60 }
 0x1b9   :  { %1447 = vmatprep.subr.bf16.mxu0 %v6161_v61  ;;  %1488 = vmatprep.subr.bf16.mxu1 %v6162_v63 }
 0x1bc   :  { %1448 = vmatpush1.bf16.msra.mxu0 %v6163_v1  ;;  %1489 = vmatpush1.bf16.msra.mxu1 %v6164_v2 }
 0x1bd   :  { %1449 = vmatprep.subr.bf16.mxu0 %v6165_v3  ;;  %1490 = vmatprep.subr.bf16.mxu1 %v6166_v4 }
 0x1c0   :  { %1450 = vmatpush1.bf16.msra.mxu0 %v6167_v5  ;;  %1491 = vmatpush1.bf16.msra.mxu1 %v6168_v28 }
 0x1c1   :  { %1451 = vmatprep.subr.bf16.mxu0 %v6169_v24  ;;  %1492 = vmatprep.subr.bf16.mxu1 %v6170_v23 }
 0x1c4   :  { %1452 = vmatpush1.bf16.msra.mxu0 %v6171_v29  ;;  %1493 = vmatpush1.bf16.msra.mxu1 %v6172_v35 }
 0x1c5   :  { %1453 = vmatprep.subr.bf16.mxu0 %v6173_v25  ;;  %1494 = vmatprep.subr.bf16.mxu1 %v6174_v30 }
 0x1c8   :  { %1454 = vmatpush1.bf16.msra.mxu0 %v6175_v33  ;;  %1495 = vmatpush1.bf16.msra.mxu1 %v6176_v26 }
 0x1c9   :  { %1455 = vmatprep.subr.bf16.mxu0 %v6177_v44  ;;  %1496 = vmatprep.subr.bf16.mxu1 %v6178_v0 }
 0x1cc   :  { %1456 = vmatpush1.bf16.msra.mxu0 %v6179_v53  ;;  %1497 = vmatpush1.bf16.msra.mxu1 %v6180_v18  ;;  %v6191_v18 = vld [vmem:[#allocation63_spill] sm:$0xff] }
 0x1cd   :  { %1457 = vmatprep.subr.bf16.mxu0 %v6181_v62  ;;  %1498 = vmatprep.subr.bf16.mxu1 %v6182_v34  ;;  %v6192_v62 = vld [vmem:[#allocation64_spill] sm:$0xff] }
 0x1ce   :  { %v4555_v34 = vld [vmem:[#allocation5 + $0x4] ss:$16 sps:$4 sm:$0xff]  }
 0x1cf   :  { %6193 = vst [vmem:[#allocation10_spill] sm:$0xff] %v4555_v34 }
 0x1d0   :  { %1458 = vmatpush1.bf16.msra.mxu0 %v6183_v20  ;;  %1499 = vmatpush1.bf16.msra.mxu1 %v6184_v16  ;;  %v4558_v16 = vld [vmem:[#allocation5 + $0xc] ss:$16 sps:$4 sm:$0xff]  }
 0x1d1   :  { %1459 = vmatprep.subr.bf16.mxu0 %v6185_v27  ;;  %1500 = vmatprep.subr.bf16.mxu1 %v6186_v32  ;;  %6194 = vst [vmem:[#allocation11_spill] sm:$0xff] %v4558_v16 }
 0x1d4   :  { %1460 = vmatpush1.bf16.msra.mxu0 %v6187_v17  ;;  %1501 = vmatpush1.bf16.msra.mxu1 %v6188_v31  ;;  %v591_v31 = vld [vmem:[%s5706_s5] sm:$0xf]  ;;  %v6195_v17 = vld [vmem:[#allocation65_spill] sm:$0xff] }
 0x1d5   :  { %1461 = vmatprep.subr.bf16.mxu0 %v6189_v21  ;;  %1502 = vmatprep.subr.bf16.mxu1 %v6190_v22  ;;  %v6196_v21 = vsub.s32 0, %v6195_v17 }
 0x1d7   :  { %v4566_v32 = vrot.slane %v591_v31, %v6196_v21  ;;  %v6200_v21 = vsub.s32 3, %v6195_v17 }
 0x1d8   :  { %1462 = vmatpush1.bf16.msra.mxu0 %v6191_v18  ;;  %1503 = vmatpush1.bf16.msra.mxu1 %v6192_v62  ;;  %v6198_v18 = vsub.s32 1, %v6195_v17 }
 0x1d9   :  { %1541 = vmatprep.subr.bf16.mxu0 %v4555_v34  ;;  %1582 = vmatprep.subr.bf16.mxu1 %v4558_v16  ;;  %6197 = vst [vmem:[#allocation12_spill] sm:$0xff] %v4566_v32  ;;  %v4576_v35 = vrot.slane %v591_v31, %v6200_v21 }
 0x1da   :  { %v4570_v22 = vrot.slane %v591_v31, %v6198_v18 }
 0x1db   :  { %6201 = vst [vmem:[#allocation14_spill] sm:$0xff] %v4576_v35 }
 0x1dc   :  { %6199 = vst [vmem:[#allocation13_spill] sm:$0xff] %v4570_v22 }
 0x24e   :  { %v1243_v62 = vpop.f32.mrb[20].mxu0  ;;  %v1284_v27 = vpop.f32.mrb[20].mxu1 }
 0x24f   :  { %v1244_v34 = vadd.f32 %v1243_v62, %v4566_v32  ;;  %v1245_v20 = vpop.f32.mrb[21].mxu0  ;;  %v1286_v53 = vpop.f32.mrb[21].mxu1  ;;  %v6202_v62 = vsub.s32 2, %v6195_v17 }
 0x250   :  { %v1246_v16 = vadd.f32 %v1245_v20, %v4570_v22  ;;  %v1247_v0 = vpop.f32.mrb[22].mxu0  ;;  %v1288_v44 = vpop.f32.mrb[22].mxu1  ;;  %v1287_v18 = vadd.f32 %v1286_v53, %v4576_v35  ;;  %v6208_v35 = vld [vmem:[#allocation69_spill] sm:$0xff] }
 0x251   :  { %v3123_v26 = vmul.f32 -1.442695, %v1244_v34  ;;  %v1248_v33 = vpop.f32.mrb[23].mxu0  ;;  %v1289_v30 = vpop.f32.mrb[23].mxu1  ;;  %v4581_v32 = vrot.slane %v591_v31, %v6202_v62 }
 0x252   :  { %v3124_v25 = vmul.f32 -1.442695, %v1246_v16  ;;  %v3125_v29 = vmul.f32 -1.442695, %v1287_v18 }
 0x253   :  { %3435 = vpow2.f32 %v3123_v26  ;;  %6203 = vst [vmem:[#allocation15_spill] sm:$0xff] %v4581_v32  ;;  %v1285_v0 = vadd.f32 %v1284_v27, %v4581_v32  ;;  %v6205_v27 = vld [vmem:[#allocation66_spill] sm:$0xff] }
 0x254   :  { %3437 = vpow2.f32 %v3124_v25 }
 0x255   :  { %3439 = vpow2.f32 %v3125_v29 }
 0x256   :  { %3441 = vtanh.f32 %v1285_v0 }
 0x25d   :  { %v3436_v44 = vpop.eup %3435 }
 0x25e   :  { %v3438_v34 = vpop.eup %3437  ;;  %v1294_v33 = vadd.f32 1.0, %v3436_v44  ;;  %v6206_v44 = vld [vmem:[#allocation67_spill] sm:$0xff] }
 0x25f   :  { %v1300_v30 = vadd.f32 1.0, %v3438_v34  ;;  %v3440_v20 = vpop.eup %3439 }
 0x260   :  { %3443 = vrcp.f32 %v1294_v33  ;;  %v3442_v26 = vpop.eup %3441  ;;  %v1306_v21 = vadd.f32 1.0, %v3440_v20  ;;  %v6207_v33 = vld [vmem:[#allocation68_spill] sm:$0xff] }
 0x261   :  { %3445 = vrcp.f32 %v1300_v30 }
 0x262   :  { %3447 = vrcp.f32 %v1306_v21 }
 0x26a   :  { %v3444_v25 = vpop.eup %3443 }
 0x26b   :  { %v3446_v16 = vpop.eup %3445  ;;  %v1311_v53 = vmul.f32 %v3444_v25, %v3442_v26 }
 0x26c   :  { %v1310_v17 = vmul.f32 0.0, %v3446_v16  ;;  %v3448_v21 = vpop.eup %3447 }
 0x26e   :  { %v4584_v31 = vadd.f32 %v1311_v53, %v1310_v17  ;;  %v1353_v18 = vpop.f32.mrb[24].mxu0  ;;  %v1394_v62 = vpop.f32.mrb[24].mxu1 }
 0x26f   :  { %v1401_v32 = vadd.f32 %v1353_v18, %v6205_v27  ;;  %v1403_v29 = vadd.f32 %v1394_v62, %v6206_v44  ;;  %v1355_v0 = vpop.f32.mrb[25].mxu0  ;;  %v1396_v34 = vpop.f32.mrb[25].mxu1 }
 0x270   :  { %6204 = vst [vmem:[#allocation16_spill] sm:$0xff] %v4584_v31  ;;  %3449 = vtanh.f32 %v4584_v31  ;;  %v1402_v30 = vadd.f32 %v1355_v0, %v6207_v33  ;;  %v1404_v22 = vadd.f32 %v1396_v34, %v6208_v35  ;;  %v1357_v26 = vpop.f32.mrb[26].mxu0  ;;  %v1398_v20 = vpop.f32.mrb[26].mxu1 }
 0x271   :  { %v3126_v25 = vmul.f32 -1.442695, %v1401_v32  ;;  %v1358_v16 = vpop.f32.mrb[27].mxu0  ;;  %v1399_v53 = vpop.f32.mrb[27].mxu1 }
 0x272   :  { %v3127_v17 = vmul.f32 -1.442695, %v1402_v30  ;;  %v3128_v27 = vmul.f32 -1.442695, %v1404_v22  ;;  %v4608_v53 = vld [vmem:[#allocation5 + $0x2c] ss:$16 sps:$4 sm:$0xff]  }
 0x273   :  { %3451 = vpow2.f32 %v3126_v25 }
 0x274   :  { %3453 = vpow2.f32 %v3127_v17  ;;  %v4613_v17 = vld [vmem:[#allocation5 + $0x20] ss:$16 sps:$4 sm:$0xff]  }
 0x275   :  { %3455 = vpow2.f32 %v3128_v27  ;;  %v4622_v27 = vld [vmem:[#allocation5 + $0x4c] ss:$16 sps:$4 sm:$0xff]  }
 0x276   :  { %3457 = vtanh.f32 %v1403_v29 }
 0x27a   :  { %v3450_v18 = vpop.eup %3449 }
 0x27b   :  { %v1314_v62 = vmul.f32 %v3450_v18, %v3448_v21  ;;  %v4616_v21 = vld [vmem:[#allocation5 + $0x28] ss:$16 sps:$4 sm:$0xff]   ;;  %v4619_v18 = vld [vmem:[#allocation5 + $0x44] ss:$16 sps:$4 sm:$0xff]  }
 0x27d   :  { %v3452_v44 = vpop.eup %3451  ;;  %v1430_v23 = vpack.c.bf16 %v1314_v62, %v1314_v62  ;;  %v4625_v62 = vld [vmem:[#allocation5 + $0x40] ss:$16 sps:$4 sm:$0xff]  }
 0x27e   :  { %v3454_v24 = vpop.eup %3453  ;;  %v1408_v31 = vadd.f32 1.0, %v3452_v44  ;;  %v4628_v44 = vld [vmem:[#allocation5 + $0x48] ss:$16 sps:$4 sm:$0xff]  }
 0x27f   :  { %v1414_v0 = vadd.f32 1.0, %v3454_v24  ;;  %1463 = vmatprep.mubr.bf16.mxu0 %v1430_v23  ;;  %1504 = vmatprep.mubr.bf16.mxu1 %v1430_v23  ;;  %v3456_v35 = vpop.eup %3455  ;;  %v4599_v23 = vld [vmem:[#allocation5] ss:$16 sps:$4 sm:$0xff]  }
 0x280   :  { %3459 = vrcp.f32 %v1408_v31  ;;  %v3458_v32 = vpop.eup %3457  ;;  %v1420_v26 = vadd.f32 1.0, %v3456_v35  ;;  %v4602_v31 = vld [vmem:[#allocation5 + $0x8] ss:$16 sps:$4 sm:$0xff]   ;;  %v4634_v35 = vld [vmem:[#allocation5 + $0x6c] ss:$16 sps:$4 sm:$0xff]  }
 0x281   :  { %3461 = vrcp.f32 %v1414_v0  ;;  %v4631_v0 = vld [vmem:[#allocation5 + $0x64] ss:$16 sps:$4 sm:$0xff]  }
 0x282   :  { %3463 = vrcp.f32 %v1420_v26  ;;  %v4649_v26 = vld [vmem:[#allocation5 + $0x80] ss:$16 sps:$4 sm:$0xff]  }
 0x283   :  { %6210 = vst [vmem:[#allocation18_spill] sm:$0xff] %v4649_v26 }
 0x28a   :  { %v3460_v34 = vpop.eup %3459 }
 0x28b   :  { %v3462_v33 = vpop.eup %3461  ;;  %v1425_v30 = vmul.f32 %v3460_v34, %v3458_v32  ;;  %v4637_v32 = vld [vmem:[#allocation5 + $0x60] ss:$16 sps:$4 sm:$0xff]   ;;  %v4640_v34 = vld [vmem:[#allocation5 + $0x68] ss:$16 sps:$4 sm:$0xff]  }
 0x28c   :  { %v1424_v22 = vmul.f32 %v3462_v33, %v4456_v15  ;;  %v3464_v25 = vpop.eup %3463  ;;  %v4605_v15 = vld [vmem:[#allocation5 + $0x24] ss:$16 sps:$4 sm:$0xff]  }
 0x28d   :  { %v4643_v33 = vld [vmem:[#allocation5 + $0x84] ss:$16 sps:$4 sm:$0xff]  }
 0x28e   :  { %v4592_v20 = vadd.f32 %v1425_v30, %v1424_v22  ;;  %v4646_v30 = vld [vmem:[#allocation5 + $0x8c] ss:$16 sps:$4 sm:$0xff]   ;;  %v4652_v22 = vld [vmem:[#allocation5 + $0x88] ss:$16 sps:$4 sm:$0xff]  }
 0x28f   :  { %6209 = vst [vmem:[#allocation17_spill] sm:$0xff] %v4646_v30  ;;  %6211 = vst [vmem:[#allocation19_spill] sm:$0xff] %v4652_v22 }
 0x290   :  { %3465 = vtanh.f32 %v4592_v20 }
 0x29a   :  { %v3466_v29 = vpop.eup %3465 }
 0x29b   :  { %v1428_v24 = vmul.f32 %v3466_v29, %v3464_v25  ;;  %v4655_v25 = vld [vmem:[#allocation5 + $0xa4] ss:$16 sps:$4 sm:$0xff]   ;;  %v4658_v29 = vld [vmem:[#allocation5 + $0xac] ss:$16 sps:$4 sm:$0xff]  }
 0x29c   :  { %6212 = vst [vmem:[#allocation20_spill] sm:$0xff] %v4655_v25  ;;  %6213 = vst [vmem:[#allocation21_spill] sm:$0xff] %v4658_v29 }
 0x29d   :  { %v4595_v16 = vpack.c.bf16 %v1428_v24, %v1428_v24  ;;  %v4661_v24 = vld [vmem:[#allocation5 + $0xa0] ss:$16 sps:$4 sm:$0xff]  }
 0x29e   :  { %6214 = vst [vmem:[#allocation22_spill] sm:$0xff] %v4661_v24 }
 0x29f   :  { %1464 = vmatmul.mubr.bf16.vlgmr.msra.gmra.mrb[28].mxu0 %v4595_v16  ;;  %1505 = vmatmul.mubr.bf16.vlgmr.msra.gmra.mrb[28].mxu1 %v4595_v16 }
 0x2a0   :  { %1542 = vmatpush1.bf16.msra.mxu0 %v4599_v23  ;;  %1583 = vmatpush1.bf16.msra.mxu1 %v4602_v31 }
 0x2a1   :  { %1543 = vmatprep.subr.bf16.mxu0 %v4605_v15  ;;  %1584 = vmatprep.subr.bf16.mxu1 %v4608_v53 }
 0x2a2   :  { %1573 = vmatprep.mubr.bf16.mxu0 %v6137_v19  ;;  %1614 = vmatprep.mubr.bf16.mxu1 %v6137_v19 }
 0x2a4   :  { %1544 = vmatpush1.bf16.msra.mxu0 %v4613_v17  ;;  %1585 = vmatpush1.bf16.msra.mxu1 %v4616_v21 }
 0x2a5   :  { %1545 = vmatprep.subr.bf16.mxu0 %v4619_v18  ;;  %1586 = vmatprep.subr.bf16.mxu1 %v4622_v27 }
 0x2a8   :  { %1546 = vmatpush1.bf16.msra.mxu0 %v4625_v62  ;;  %1587 = vmatpush1.bf16.msra.mxu1 %v4628_v44 }
 0x2a9   :  { %1547 = vmatprep.subr.bf16.mxu0 %v4631_v0  ;;  %1588 = vmatprep.subr.bf16.mxu1 %v4634_v35 }
 0x2ac   :  { %1548 = vmatpush1.bf16.msra.mxu0 %v4637_v32  ;;  %1589 = vmatpush1.bf16.msra.mxu1 %v4640_v34 }
 0x2ad   :  { %1549 = vmatprep.subr.bf16.mxu0 %v4643_v33  ;;  %1590 = vmatprep.subr.bf16.mxu1 %v4646_v30  ;;  %v4664_v30 = vld [vmem:[#allocation5 + $0xa8] ss:$16 sps:$4 sm:$0xff]  }
 0x2ae   :  { %6215 = vst [vmem:[#allocation23_spill] sm:$0xff] %v4664_v30 }
 0x2b0   :  { %1550 = vmatpush1.bf16.msra.mxu0 %v4649_v26  ;;  %1591 = vmatpush1.bf16.msra.mxu1 %v4652_v22  ;;  %v4667_v26 = vld [vmem:[#allocation5 + $0xc4] ss:$16 sps:$4 sm:$0xff]   ;;  %v4670_v22 = vld [vmem:[#allocation5 + $0xcc] ss:$16 sps:$4 sm:$0xff]  }
 0x2b1   :  { %1551 = vmatprep.subr.bf16.mxu0 %v4655_v25  ;;  %1592 = vmatprep.subr.bf16.mxu1 %v4658_v29  ;;  %6216 = vst [vmem:[#allocation24_spill] sm:$0xff] %v4667_v26  ;;  %6217 = vst [vmem:[#allocation25_spill] sm:$0xff] %v4670_v22  ;;  %v4673_v25 = vld [vmem:[#allocation5 + $0xc0] ss:$16 sps:$4 sm:$0xff]   ;;  %v4676_v29 = vld [vmem:[#allocation5 + $0xc8] ss:$16 sps:$4 sm:$0xff]  }
 0x2b4   :  { %1552 = vmatpush1.bf16.msra.mxu0 %v4661_v24  ;;  %1593 = vmatpush1.bf16.msra.mxu1 %v4664_v30  ;;  %v4679_v24 = vld [vmem:[#allocation5 + $0xe4] ss:$16 sps:$4 sm:$0xff]   ;;  %v4682_v30 = vld [vmem:[#allocation5 + $0xec] ss:$16 sps:$4 sm:$0xff]  }
 0x2b5   :  { %1553 = vmatprep.subr.bf16.mxu0 %v4667_v26  ;;  %1594 = vmatprep.subr.bf16.mxu1 %v4670_v22  ;;  %v4685_v26 = vld [vmem:[#allocation5 + $0xe0] ss:$16 sps:$4 sm:$0xff]   ;;  %v4688_v22 = vld [vmem:[#allocation5 + $0xe8] ss:$16 sps:$4 sm:$0xff]  }
 0x2b8   :  { %1554 = vmatpush1.bf16.msra.mxu0 %v4673_v25  ;;  %1595 = vmatpush1.bf16.msra.mxu1 %v4676_v29 }
 0x2b9   :  { %1555 = vmatprep.subr.bf16.mxu0 %v4679_v24  ;;  %1596 = vmatprep.subr.bf16.mxu1 %v4682_v30 }
 0x2bc   :  { %1556 = vmatpush1.bf16.msra.mxu0 %v4685_v26  ;;  %1597 = vmatpush1.bf16.msra.mxu1 %v4688_v22 }
 0x2bd   :  { %1653 = vmatprep.subr.bf16.mxu0 %v4163_v6  ;;  %1694 = vmatprep.subr.bf16.mxu1 %v4165_v7  ;;  %v6218_v6 = vld [vmem:[#allocation41_spill] sm:$0xff]  ;;  %v6219_v7 = vld [vmem:[#allocation42_spill] sm:$0xff] }
 0x2bf   :  { %1574 = vmatmul.mubr.bf16.vlgmr.msra.gmra.mrb[32].mxu0 %v4595_v16  ;;  %1615 = vmatmul.mubr.bf16.vlgmr.msra.gmra.mrb[32].mxu1 %v4595_v16  ;;  %v6246_v16 = vld [vmem:[#allocation14_spill] sm:$0xff] }
 0x2c0   :  { %1654 = vmatpush1.bf16.msra.mxu0 %v4167_v8  ;;  %1695 = vmatpush1.bf16.msra.mxu1 %v4169_v9  ;;  %v6220_v8 = vld [vmem:[#allocation43_spill] sm:$0xff]  ;;  %v6221_v9 = vld [vmem:[#allocation44_spill] sm:$0xff] }
 0x2c1   :  { %1655 = vmatprep.subr.bf16.mxu0 %v4175_v10  ;;  %1696 = vmatprep.subr.bf16.mxu1 %v4177_v11  ;;  %v6222_v10 = vld [vmem:[#allocation45_spill] sm:$0xff]  ;;  %v6223_v11 = vld [vmem:[#allocation46_spill] sm:$0xff] }
 0x2c4   :  { %1656 = vmatpush1.bf16.msra.mxu0 %v4179_v12  ;;  %1697 = vmatpush1.bf16.msra.mxu1 %v4181_v13  ;;  %v6224_v12 = vld [vmem:[#allocation47_spill] sm:$0xff]  ;;  %v6225_v13 = vld [vmem:[#allocation48_spill] sm:$0xff] }
 0x2c5   :  { %1657 = vmatprep.subr.bf16.mxu0 %v4187_v14  ;;  %1698 = vmatprep.subr.bf16.mxu1 %v6138_v36  ;;  %v6226_v14 = vld [vmem:[#allocation49_spill] sm:$0xff]  ;;  %v6227_v36 = vld [vmem:[#allocation50_spill] sm:$0xff] }
 0x2c8   :  { %1658 = vmatpush1.bf16.msra.mxu0 %v6139_v37  ;;  %1699 = vmatpush1.bf16.msra.mxu1 %v6140_v38  ;;  %v6228_v37 = vld [vmem:[#allocation51_spill] sm:$0xff]  ;;  %v6229_v38 = vld [vmem:[#allocation52_spill] sm:$0xff] }
 0x2c9   :  { %1659 = vmatprep.subr.bf16.mxu0 %v6141_v39  ;;  %1700 = vmatprep.subr.bf16.mxu1 %v6142_v40  ;;  %v6230_v39 = vld [vmem:[#allocation53_spill] sm:$0xff]  ;;  %v6231_v40 = vld [vmem:[#allocation54_spill] sm:$0xff] }
 0x2cc   :  { %1660 = vmatpush1.bf16.msra.mxu0 %v6143_v41  ;;  %1701 = vmatpush1.bf16.msra.mxu1 %v6144_v42  ;;  %v6232_v41 = vld [vmem:[#allocation55_spill] sm:$0xff]  ;;  %v6233_v42 = vld [vmem:[#allocation56_spill] sm:$0xff] }
 0x2cd   :  { %1661 = vmatprep.subr.bf16.mxu0 %v6145_v43  ;;  %1702 = vmatprep.subr.bf16.mxu1 %v6146_v45  ;;  %v6234_v43 = vld [vmem:[#allocation57_spill] sm:$0xff]  ;;  %v6235_v45 = vld [vmem:[#allocation58_spill] sm:$0xff] }
 0x2d0   :  { %1662 = vmatpush1.bf16.msra.mxu0 %v6147_v46  ;;  %1703 = vmatpush1.bf16.msra.mxu1 %v6148_v47  ;;  %v6236_v46 = vld [vmem:[#allocation59_spill] sm:$0xff]  ;;  %v6237_v47 = vld [vmem:[#allocation60_spill] sm:$0xff] }
 0x2d1   :  { %1663 = vmatprep.subr.bf16.mxu0 %v6149_v48  ;;  %1704 = vmatprep.subr.bf16.mxu1 %v6150_v49  ;;  %v6238_v48 = vld [vmem:[#allocation61_spill] sm:$0xff]  ;;  %v6239_v49 = vld [vmem:[#allocation62_spill] sm:$0xff] }
 0x2d4   :  { %1664 = vmatpush1.bf16.msra.mxu0 %v6151_v50  ;;  %1705 = vmatpush1.bf16.msra.mxu1 %v6152_v51  ;;  %v6240_v50 = vld [vmem:[#allocation63_spill] sm:$0xff]  ;;  %v6241_v51 = vld [vmem:[#allocation64_spill] sm:$0xff] }
 0x2d5   :  { %1665 = vmatprep.subr.bf16.mxu0 %v6153_v52  ;;  %1706 = vmatprep.subr.bf16.mxu1 %v6154_v54  ;;  %v6242_v52 = vld [vmem:[#allocation10_spill] sm:$0xff]  ;;  %v6243_v54 = vld [vmem:[#allocation11_spill] sm:$0xff] }
 0x2d8   :  { %1666 = vmatpush1.bf16.msra.mxu0 %v6155_v55  ;;  %1707 = vmatpush1.bf16.msra.mxu1 %v6156_v56 }
 0x2d9   :  { %1667 = vmatprep.subr.bf16.mxu0 %v6157_v57  ;;  %1708 = vmatprep.subr.bf16.mxu1 %v6158_v58  ;;  %v6244_v57 = vld [vmem:[#allocation12_spill] sm:$0xff] }
 0x2dc   :  { %1668 = vmatpush1.bf16.msra.mxu0 %v6159_v59  ;;  %1709 = vmatpush1.bf16.msra.mxu1 %v6160_v60 }
 0x2dd   :  { %1669 = vmatprep.subr.bf16.mxu0 %v6161_v61  ;;  %1710 = vmatprep.subr.bf16.mxu1 %v6162_v63  ;;  %v6245_v61 = vld [vmem:[#allocation13_spill] sm:$0xff] }
 0x2e0   :  { %1670 = vmatpush1.bf16.msra.mxu0 %v6163_v1  ;;  %1711 = vmatpush1.bf16.msra.mxu1 %v6164_v2 }
 0x2e1   :  { %1671 = vmatprep.subr.bf16.mxu0 %v6165_v3  ;;  %1712 = vmatprep.subr.bf16.mxu1 %v6166_v4 }
 0x2e4   :  { %1672 = vmatpush1.bf16.msra.mxu0 %v6167_v5  ;;  %1713 = vmatpush1.bf16.msra.mxu1 %v6168_v28 }
 0x2e5   :  { %1673 = vmatprep.subr.bf16.mxu0 %v6218_v6  ;;  %1714 = vmatprep.subr.bf16.mxu1 %v6219_v7 }
 0x2e8   :  { %1674 = vmatpush1.bf16.msra.mxu0 %v6220_v8  ;;  %1715 = vmatpush1.bf16.msra.mxu1 %v6221_v9  ;;  %v6247_v8 = vld [vmem:[#allocation15_spill] sm:$0xff] }
 0x2e9   :  { %1675 = vmatprep.subr.bf16.mxu0 %v6222_v10  ;;  %1716 = vmatprep.subr.bf16.mxu1 %v6223_v11 }
 0x2ec   :  { %1676 = vmatpush1.bf16.msra.mxu0 %v6224_v12  ;;  %1717 = vmatpush1.bf16.msra.mxu1 %v6225_v13 }
 0x2ed   :  { %1677 = vmatprep.subr.bf16.mxu0 %v6226_v14  ;;  %1718 = vmatprep.subr.bf16.mxu1 %v6227_v36 }
 0x2f0   :  { %1678 = vmatpush1.bf16.msra.mxu0 %v6228_v37  ;;  %1719 = vmatpush1.bf16.msra.mxu1 %v6229_v38 }
 0x2f1   :  { %1679 = vmatprep.subr.bf16.mxu0 %v6230_v39  ;;  %1720 = vmatprep.subr.bf16.mxu1 %v6231_v40 }
 0x2f4   :  { %1680 = vmatpush1.bf16.msra.mxu0 %v6232_v41  ;;  %1721 = vmatpush1.bf16.msra.mxu1 %v6233_v42  ;;  %v6248_v41 = vld [vmem:[#allocation16_spill] sm:$0xff] }
 0x2f5   :  { %1681 = vmatprep.subr.bf16.mxu0 %v6234_v43  ;;  %1722 = vmatprep.subr.bf16.mxu1 %v6235_v45 }
 0x2f8   :  { %1682 = vmatpush1.bf16.msra.mxu0 %v6236_v46  ;;  %1723 = vmatpush1.bf16.msra.mxu1 %v6237_v47  ;;  %v6249_v47 = vld [vmem:[#allocation70_spill] sm:$0xff] }
 0x2f9   :  { %1683 = vmatprep.subr.bf16.mxu0 %v6238_v48  ;;  %1724 = vmatprep.subr.bf16.mxu1 %v6239_v49  ;;  %v6250_v49 = vld [vmem:[#allocation71_spill] sm:$0xff] }
 0x2fc   :  { %1684 = vmatpush1.bf16.msra.mxu0 %v6240_v50  ;;  %1725 = vmatpush1.bf16.msra.mxu1 %v6241_v51 }
 0x2fd   :  { %1763 = vmatprep.subr.bf16.mxu0 %v6242_v52  ;;  %1804 = vmatprep.subr.bf16.mxu1 %v6243_v54 }
 0x372   :  { %v1465_v55 = vpop.f32.mrb[28].mxu0  ;;  %v1506_v56 = vpop.f32.mrb[28].mxu1 }
 0x373   :  { %v1466_v58 = vadd.f32 %v1465_v55, %v6244_v57  ;;  %v1467_v59 = vpop.f32.mrb[29].mxu0  ;;  %v1508_v60 = vpop.f32.mrb[29].mxu1  ;;  %v1507_v9 = vadd.f32 %v1506_v56, %v6247_v8  ;;  %v6251_v56 = vld [vmem:[#allocation72_spill] sm:$0xff] }
 0x374   :  { %v1468_v63 = vadd.f32 %v1467_v59, %v6245_v61  ;;  %v1469_v1 = vpop.f32.mrb[30].mxu0  ;;  %v1510_v2 = vpop.f32.mrb[30].mxu1  ;;  %v1509_v6 = vadd.f32 %v1508_v60, %v6246_v16  ;;  %v6252_v59 = vld [vmem:[#allocation73_spill] sm:$0xff] }
 0x375   :  { %v3129_v3 = vmul.f32 -1.442695, %v1466_v58  ;;  %v1470_v4 = vpop.f32.mrb[31].mxu0  ;;  %v1511_v5 = vpop.f32.mrb[31].mxu1 }
 0x376   :  { %v3130_v28 = vmul.f32 -1.442695, %v1468_v63  ;;  %v3131_v7 = vmul.f32 -1.442695, %v1509_v6 }
 0x377   :  { %3467 = vpow2.f32 %v3129_v3 }
 0x378   :  { %3469 = vpow2.f32 %v3130_v28 }
 0x379   :  { %3471 = vpow2.f32 %v3131_v7 }
 0x37a   :  { %3473 = vtanh.f32 %v1507_v9 }
 0x381   :  { %v3468_v10 = vpop.eup %3467 }
 0x382   :  { %v3470_v11 = vpop.eup %3469  ;;  %v1516_v12 = vadd.f32 1.0, %v3468_v10 }
 0x383   :  { %v1522_v13 = vadd.f32 1.0, %v3470_v11  ;;  %v3472_v14 = vpop.eup %3471 }
 0x384   :  { %3475 = vrcp.f32 %v1516_v12  ;;  %v3474_v36 = vpop.eup %3473  ;;  %v1528_v40 = vadd.f32 1.0, %v3472_v14 }
 0x385   :  { %3477 = vrcp.f32 %v1522_v13 }
 0x386   :  { %3479 = vrcp.f32 %v1528_v40 }
 0x38e   :  { %v3476_v37 = vpop.eup %3475 }
 0x38f   :  { %v3478_v38 = vpop.eup %3477  ;;  %v1533_v39 = vmul.f32 %v3476_v37, %v3474_v36 }
 0x390   :  { %v1532_v42 = vmul.f32 %v3478_v38, %v6248_v41  ;;  %v3480_v28 = vpop.eup %3479 }
 0x392   :  { %v1575_v43 = vpop.f32.mrb[32].mxu0  ;;  %v1616_v45 = vpop.f32.mrb[32].mxu1  ;;  %v4764_v46 = vadd.f32 %v1533_v39, %v1532_v42 }
 0x393   :  { %v1623_v48 = vadd.f32 %v1575_v43, %v6249_v47  ;;  %v1625_v50 = vadd.f32 %v1616_v45, %v6250_v49  ;;  %v1577_v51 = vpop.f32.mrb[33].mxu0  ;;  %v1618_v55 = vpop.f32.mrb[33].mxu1 }
 0x394   :  { %v1624_v58 = vadd.f32 %v1577_v51, %v6251_v56  ;;  %v1626_v60 = vadd.f32 %v1618_v55, %v6252_v59  ;;  %v1579_v63 = vpop.f32.mrb[34].mxu0  ;;  %v1620_v1 = vpop.f32.mrb[34].mxu1  ;;  %3481 = vtanh.f32 %v4764_v46  ;;  %v6255_v51 = vld [vmem:[#allocation19_spill] sm:$0xff]  ;;  %v6256_v55 = vld [vmem:[#allocation20_spill] sm:$0xff]  ;;  %v6257_v56 = vld [vmem:[#allocation21_spill] sm:$0xff] }
 0x395   :  { %v3132_v2 = vmul.f32 -1.442695, %v1623_v48  ;;  %v1580_v3 = vpop.f32.mrb[35].mxu0  ;;  %v1621_v4 = vpop.f32.mrb[35].mxu1  ;;  %v6259_v59 = vld [vmem:[#allocation23_spill] sm:$0xff]  ;;  %v6261_v63 = vld [vmem:[#allocation25_spill] sm:$0xff] }
 0x396   :  { %v3133_v5 = vmul.f32 -1.442695, %v1624_v58  ;;  %v3134_v7 = vmul.f32 -1.442695, %v1626_v60  ;;  %v6258_v58 = vld [vmem:[#allocation22_spill] sm:$0xff]  ;;  %v6260_v60 = vld [vmem:[#allocation24_spill] sm:$0xff] }
 0x397   :  { %3483 = vpow2.f32 %v3132_v2  ;;  %v4807_v1 = vld [vmem:[#allocation7 + $0x4] ss:$16 sps:$4 sm:$0xff]   ;;  %v4810_v2 = vld [vmem:[#allocation7 + $0xc] ss:$16 sps:$4 sm:$0xff]   ;;  %v4813_v3 = vld [vmem:[#allocation7] ss:$16 sps:$4 sm:$0xff]  }
 0x398   :  { %3485 = vpow2.f32 %v3133_v5  ;;  %v4816_v4 = vld [vmem:[#allocation7 + $0x8] ss:$16 sps:$4 sm:$0xff]   ;;  %v4819_v5 = vld [vmem:[#allocation7 + $0x24] ss:$16 sps:$4 sm:$0xff]  }
 0x399   :  { %3487 = vpow2.f32 %v3134_v7  ;;  %v4828_v7 = vld [vmem:[#allocation7 + $0x28] ss:$16 sps:$4 sm:$0xff]  }
 0x39a   :  { %3489 = vtanh.f32 %v1625_v50  ;;  %v6254_v50 = vld [vmem:[#allocation18_spill] sm:$0xff] }
 0x39e   :  { %v3482_v6 = vpop.eup %3481 }
 0x39f   :  { %v1536_v9 = vmul.f32 %v3482_v6, %v3480_v28  ;;  %v4822_v28 = vld [vmem:[#allocation7 + $0x2c] ss:$16 sps:$4 sm:$0xff]   ;;  %v4825_v6 = vld [vmem:[#allocation7 + $0x20] ss:$16 sps:$4 sm:$0xff]  }
 0x3a1   :  { %v3484_v10 = vpop.eup %3483  ;;  %v1652_v11 = vpack.c.bf16 %v1536_v9, %v1536_v9  ;;  %v4831_v9 = vld [vmem:[#allocation7 + $0x44] ss:$16 sps:$4 sm:$0xff]  }
 0x3a2   :  { %v3486_v12 = vpop.eup %3485  ;;  %v1630_v13 = vadd.f32 1.0, %v3484_v10  ;;  %v4834_v10 = vld [vmem:[#allocation7 + $0x4c] ss:$16 sps:$4 sm:$0xff]  }
 0x3a3   :  { %v1636_v14 = vadd.f32 1.0, %v3486_v12  ;;  %1685 = vmatprep.mubr.bf16.mxu0 %v1652_v11  ;;  %1726 = vmatprep.mubr.bf16.mxu1 %v1652_v11  ;;  %v3488_v36 = vpop.eup %3487  ;;  %v4837_v11 = vld [vmem:[#allocation7 + $0x40] ss:$16 sps:$4 sm:$0xff]   ;;  %v4840_v12 = vld [vmem:[#allocation7 + $0x48] ss:$16 sps:$4 sm:$0xff]  }
 0x3a4   :  { %3491 = vrcp.f32 %v1630_v13  ;;  %v3490_v37 = vpop.eup %3489  ;;  %v1642_v41 = vadd.f32 1.0, %v3488_v36  ;;  %6262 = vst [vmem:[#allocation26_spill] sm:$0xff] %v4837_v11  ;;  %6263 = vst [vmem:[#allocation27_spill] sm:$0xff] %v4840_v12  ;;  %v4843_v13 = vld [vmem:[#allocation7 + $0x64] ss:$16 sps:$4 sm:$0xff]  }
 0x3a5   :  { %3493 = vrcp.f32 %v1636_v14  ;;  %6264 = vst [vmem:[#allocation28_spill] sm:$0xff] %v4843_v13  ;;  %v4846_v14 = vld [vmem:[#allocation7 + $0x6c] ss:$16 sps:$4 sm:$0xff]   ;;  %v4849_v36 = vld [vmem:[#allocation7 + $0x60] ss:$16 sps:$4 sm:$0xff]  }
 0x3a6   :  { %3495 = vrcp.f32 %v1642_v41  ;;  %6265 = vst [vmem:[#allocation29_spill] sm:$0xff] %v4846_v14  ;;  %6266 = vst [vmem:[#allocation30_spill] sm:$0xff] %v4849_v36  ;;  %v4864_v41 = vld [vmem:[#allocation7 + $0x88] ss:$16 sps:$4 sm:$0xff]  }
 0x3a7   :  { %6271 = vst [vmem:[#allocation35_spill] sm:$0xff] %v4864_v41 }
 0x3ae   :  { %v3492_v38 = vpop.eup %3491 }
 0x3af   :  { %v3494_v39 = vpop.eup %3493  ;;  %v1647_v40 = vmul.f32 %v3492_v38, %v3490_v37  ;;  %v4852_v37 = vld [vmem:[#allocation7 + $0x68] ss:$16 sps:$4 sm:$0xff]   ;;  %v4855_v38 = vld [vmem:[#allocation7 + $0x84] ss:$16 sps:$4 sm:$0xff]  }
 0x3b0   :  { %v1646_v42 = vmul.f32 %v3494_v39, %v4592_v20  ;;  %v3496_v45 = vpop.eup %3495  ;;  %v6253_v20 = vld [vmem:[#allocation17_spill] sm:$0xff]  ;;  %6267 = vst [vmem:[#allocation31_spill] sm:$0xff] %v4852_v37  ;;  %6268 = vst [vmem:[#allocation32_spill] sm:$0xff] %v4855_v38 }
 0x3b1   :  { %v4858_v39 = vld [vmem:[#allocation7 + $0x8c] ss:$16 sps:$4 sm:$0xff]  }
 0x3b2   :  { %v4772_v43 = vadd.f32 %v1647_v40, %v1646_v42  ;;  %6269 = vst [vmem:[#allocation33_spill] sm:$0xff] %v4858_v39  ;;  %v4861_v40 = vld [vmem:[#allocation7 + $0x80] ss:$16 sps:$4 sm:$0xff]   ;;  %v4867_v42 = vld [vmem:[#allocation7 + $0xa4] ss:$16 sps:$4 sm:$0xff]  }
 0x3b3   :  { %6270 = vst [vmem:[#allocation34_spill] sm:$0xff] %v4861_v40  ;;  %6272 = vst [vmem:[#allocation36_spill] sm:$0xff] %v4867_v42 }
 0x3b4   :  { %3497 = vtanh.f32 %v4772_v43 }
 0x3be   :  { %v3498_v47 = vpop.eup %3497 }
 0x3bf   :  { %v1650_v48 = vmul.f32 %v3498_v47, %v3496_v45  ;;  %v4870_v45 = vld [vmem:[#allocation7 + $0xac] ss:$16 sps:$4 sm:$0xff]   ;;  %v4873_v47 = vld [vmem:[#allocation7 + $0xa0] ss:$16 sps:$4 sm:$0xff]  }
 0x3c0   :  { %6273 = vst [vmem:[#allocation37_spill] sm:$0xff] %v4870_v45  ;;  %6274 = vst [vmem:[#allocation38_spill] sm:$0xff] %v4873_v47 }
 0x3c1   :  { %v1651_v49 = vpack.c.bf16 %v1650_v48, %v1650_v48  ;;  %v4876_v48 = vld [vmem:[#allocation7 + $0xa8] ss:$16 sps:$4 sm:$0xff]  }
 0x3c2   :  { %6275 = vst [vmem:[#allocation39_spill] sm:$0xff] %v4876_v48 }
 0x3c3   :  { %1686 = vmatmul.mubr.bf16.vlgmr.msra.gmra.mrb[36].mxu0 %v1651_v49  ;;  %1727 = vmatmul.mubr.bf16.vlgmr.msra.gmra.mrb[36].mxu1 %v1651_v49 }
 0x3c4   :  { %1764 = vmatpush1.bf16.msra.mxu0 %v4599_v23  ;;  %1805 = vmatpush1.bf16.msra.mxu1 %v4602_v31 }
 0x3c5   :  { %1765 = vmatprep.subr.bf16.mxu0 %v4605_v15  ;;  %1806 = vmatprep.subr.bf16.mxu1 %v4608_v53 }
 0x3c6   :  { %1795 = vmatprep.mubr.bf16.mxu0 %v6137_v19  ;;  %1836 = vmatprep.mubr.bf16.mxu1 %v6137_v19 }
 0x3c8   :  { %1766 = vmatpush1.bf16.msra.mxu0 %v4613_v17  ;;  %1807 = vmatpush1.bf16.msra.mxu1 %v4616_v21 }
 0x3c9   :  { %1767 = vmatprep.subr.bf16.mxu0 %v4619_v18  ;;  %1808 = vmatprep.subr.bf16.mxu1 %v4622_v27 }
 0x3cc   :  { %1768 = vmatpush1.bf16.msra.mxu0 %v4625_v62  ;;  %1809 = vmatpush1.bf16.msra.mxu1 %v4628_v44 }
 0x3cd   :  { %1769 = vmatprep.subr.bf16.mxu0 %v4631_v0  ;;  %1810 = vmatprep.subr.bf16.mxu1 %v4634_v35 }
 0x3d0   :  { %1770 = vmatpush1.bf16.msra.mxu0 %v4637_v32  ;;  %1811 = vmatpush1.bf16.msra.mxu1 %v4640_v34 }
 0x3d1   :  { %1771 = vmatprep.subr.bf16.mxu0 %v4643_v33  ;;  %1812 = vmatprep.subr.bf16.mxu1 %v6253_v20 }
 0x3d4   :  { %1772 = vmatpush1.bf16.msra.mxu0 %v6254_v50  ;;  %1813 = vmatpush1.bf16.msra.mxu1 %v6255_v51 }
 0x3d5   :  { %1773 = vmatprep.subr.bf16.mxu0 %v6256_v55  ;;  %1814 = vmatprep.subr.bf16.mxu1 %v6257_v56 }
 0x3d8   :  { %1774 = vmatpush1.bf16.msra.mxu0 %v6258_v58  ;;  %1815 = vmatpush1.bf16.msra.mxu1 %v6259_v59 }
 0x3d9   :  { %1775 = vmatprep.subr.bf16.mxu0 %v6260_v60  ;;  %1816 = vmatprep.subr.bf16.mxu1 %v6261_v63 }
 0x3dc   :  { %1776 = vmatpush1.bf16.msra.mxu0 %v4673_v25  ;;  %1817 = vmatpush1.bf16.msra.mxu1 %v4676_v29 }
 0x3dd   :  { %1777 = vmatprep.subr.bf16.mxu0 %v4679_v24  ;;  %1818 = vmatprep.subr.bf16.mxu1 %v4682_v30 }
 0x3e0   :  { %1778 = vmatpush1.bf16.msra.mxu0 %v4685_v26  ;;  %1819 = vmatpush1.bf16.msra.mxu1 %v4688_v22 }
 0x3e1   :  { %1875 = vmatprep.subr.bf16.mxu0 %v4807_v1  ;;  %1916 = vmatprep.subr.bf16.mxu1 %v4810_v2 }
 0x3e3   :  { %1796 = vmatmul.mubr.bf16.vlgmr.msra.gmra.mrb[40].mxu0 %v1651_v49  ;;  %1837 = vmatmul.mubr.bf16.vlgmr.msra.gmra.mrb[40].mxu1 %v1651_v49  ;;  %v4879_v49 = vld [vmem:[#allocation7 + $0xc4] ss:$16 sps:$4 sm:$0xff]  }
 0x3e4   :  { %1876 = vmatpush1.bf16.msra.mxu0 %v4813_v3  ;;  %1917 = vmatpush1.bf16.msra.mxu1 %v4816_v4  ;;  %6276 = vst [vmem:[#allocation40_spill] sm:$0xff] %v4879_v49 }
 0x3e5   :  { %1877 = vmatprep.subr.bf16.mxu0 %v4819_v5  ;;  %1918 = vmatprep.subr.bf16.mxu1 %v4822_v28 }
 0x3e8   :  { %1878 = vmatpush1.bf16.msra.mxu0 %v4825_v6  ;;  %1919 = vmatpush1.bf16.msra.mxu1 %v4828_v7 }
 0x3e9   :  { %1879 = vmatprep.subr.bf16.mxu0 %v4831_v9  ;;  %1920 = vmatprep.subr.bf16.mxu1 %v4834_v10 }
 0x3ec   :  { %1880 = vmatpush1.bf16.msra.mxu0 %v4837_v11  ;;  %1921 = vmatpush1.bf16.msra.mxu1 %v4840_v12 }
 0x3ed   :  { %1881 = vmatprep.subr.bf16.mxu0 %v4843_v13  ;;  %1922 = vmatprep.subr.bf16.mxu1 %v4846_v14 }
 0x3f0   :  { %1882 = vmatpush1.bf16.msra.mxu0 %v4849_v36  ;;  %1923 = vmatpush1.bf16.msra.mxu1 %v4852_v37 }
 0x3f1   :  { %1883 = vmatprep.subr.bf16.mxu0 %v4855_v38  ;;  %1924 = vmatprep.subr.bf16.mxu1 %v4858_v39 }
 0x3f4   :  { %1884 = vmatpush1.bf16.msra.mxu0 %v4861_v40  ;;  %1925 = vmatpush1.bf16.msra.mxu1 %v4864_v41  ;;  %v4882_v41 = vld [vmem:[#allocation7 + $0xcc] ss:$16 sps:$4 sm:$0xff]  }
 0x3f5   :  { %1885 = vmatprep.subr.bf16.mxu0 %v4867_v42  ;;  %1926 = vmatprep.subr.bf16.mxu1 %v4870_v45  ;;  %6277 = vst [vmem:[#allocation65_spill] sm:$0xff] %v4882_v41  ;;  %v4885_v42 = vld [vmem:[#allocation7 + $0xc0] ss:$16 sps:$4 sm:$0xff]   ;;  %v4888_v45 = vld [vmem:[#allocation7 + $0xc8] ss:$16 sps:$4 sm:$0xff]  }
 0x3f6   :  { %6278 = vst [vmem:[#allocation66_spill] sm:$0xff] %v4885_v42  ;;  %6279 = vst [vmem:[#allocation67_spill] sm:$0xff] %v4888_v45 }
 0x3f8   :  { %1886 = vmatpush1.bf16.msra.mxu0 %v4873_v47  ;;  %1927 = vmatpush1.bf16.msra.mxu1 %v4876_v48  ;;  %v4891_v47 = vld [vmem:[#allocation7 + $0xe4] ss:$16 sps:$4 sm:$0xff]   ;;  %v4894_v48 = vld [vmem:[#allocation7 + $0xec] ss:$16 sps:$4 sm:$0xff]  }
 0x3f9   :  { %1887 = vmatprep.subr.bf16.mxu0 %v4879_v49  ;;  %1928 = vmatprep.subr.bf16.mxu1 %v4882_v41  ;;  %6280 = vst [vmem:[#allocation68_spill] sm:$0xff] %v4891_v47  ;;  %6281 = vst [vmem:[#allocation69_spill] sm:$0xff] %v4894_v48  ;;  %v4897_v49 = vld [vmem:[#allocation7 + $0xe0] ss:$16 sps:$4 sm:$0xff]   ;;  %v4900_v41 = vld [vmem:[#allocation7 + $0xe8] ss:$16 sps:$4 sm:$0xff]  }
 0x3fa   :  { %6282 = vst [vmem:[#allocation41_spill] sm:$0xff] %v4897_v49  ;;  %6283 = vst [vmem:[#allocation42_spill] sm:$0xff] %v4900_v41 }
 0x3fc   :  { %1888 = vmatpush1.bf16.msra.mxu0 %v4885_v42  ;;  %1929 = vmatpush1.bf16.msra.mxu1 %v4888_v45  ;;  %v4903_v42 = vld [vmem:[#allocation7 + $0x104] ss:$16 sps:$4 sm:$0xff]   ;;  %v4906_v45 = vld [vmem:[#allocation7 + $0x10c] ss:$16 sps:$4 sm:$0xff]  }
 0x3fd   :  { %1889 = vmatprep.subr.bf16.mxu0 %v4891_v47  ;;  %1930 = vmatprep.subr.bf16.mxu1 %v4894_v48  ;;  %6284 = vst [vmem:[#allocation43_spill] sm:$0xff] %v4903_v42  ;;  %6285 = vst [vmem:[#allocation44_spill] sm:$0xff] %v4906_v45  ;;  %v4909_v47 = vld [vmem:[#allocation7 + $0x100] ss:$16 sps:$4 sm:$0xff]   ;;  %v4912_v48 = vld [vmem:[#allocation7 + $0x108] ss:$16 sps:$4 sm:$0xff]  }
 0x3fe   :  { %6286 = vst [vmem:[#allocation45_spill] sm:$0xff] %v4909_v47  ;;  %6287 = vst [vmem:[#allocation46_spill] sm:$0xff] %v4912_v48 }
 0x400   :  { %1890 = vmatpush1.bf16.msra.mxu0 %v4897_v49  ;;  %1931 = vmatpush1.bf16.msra.mxu1 %v4900_v41  ;;  %v4915_v49 = vld [vmem:[#allocation7 + $0x124] ss:$16 sps:$4 sm:$0xff]   ;;  %v4918_v41 = vld [vmem:[#allocation7 + $0x12c] ss:$16 sps:$4 sm:$0xff]  }
 0x401   :  { %1891 = vmatprep.subr.bf16.mxu0 %v4903_v42  ;;  %1932 = vmatprep.subr.bf16.mxu1 %v4906_v45  ;;  %6288 = vst [vmem:[#allocation47_spill] sm:$0xff] %v4915_v49  ;;  %6289 = vst [vmem:[#allocation48_spill] sm:$0xff] %v4918_v41  ;;  %v4921_v42 = vld [vmem:[#allocation7 + $0x120] ss:$16 sps:$4 sm:$0xff]   ;;  %v4924_v45 = vld [vmem:[#allocation7 + $0x128] ss:$16 sps:$4 sm:$0xff]  }
 0x402   :  { %6290 = vst [vmem:[#allocation49_spill] sm:$0xff] %v4921_v42  ;;  %6291 = vst [vmem:[#allocation50_spill] sm:$0xff] %v4924_v45 }
 0x404   :  { %1892 = vmatpush1.bf16.msra.mxu0 %v4909_v47  ;;  %1933 = vmatpush1.bf16.msra.mxu1 %v4912_v48  ;;  %v4927_v47 = vld [vmem:[#allocation7 + $0x144] ss:$16 sps:$4 sm:$0xff]   ;;  %v4930_v48 = vld [vmem:[#allocation7 + $0x14c] ss:$16 sps:$4 sm:$0xff]  }
 0x405   :  { %1893 = vmatprep.subr.bf16.mxu0 %v4915_v49  ;;  %1934 = vmatprep.subr.bf16.mxu1 %v4918_v41  ;;  %6292 = vst [vmem:[#allocation51_spill] sm:$0xff] %v4927_v47  ;;  %6293 = vst [vmem:[#allocation52_spill] sm:$0xff] %v4930_v48  ;;  %v4933_v49 = vld [vmem:[#allocation7 + $0x140] ss:$16 sps:$4 sm:$0xff]   ;;  %v4936_v41 = vld [vmem:[#allocation7 + $0x148] ss:$16 sps:$4 sm:$0xff]  }
 0x406   :  { %6294 = vst [vmem:[#allocation53_spill] sm:$0xff] %v4933_v49  ;;  %6295 = vst [vmem:[#allocation54_spill] sm:$0xff] %v4936_v41 }
 0x408   :  { %1894 = vmatpush1.bf16.msra.mxu0 %v4921_v42  ;;  %1935 = vmatpush1.bf16.msra.mxu1 %v4924_v45  ;;  %v4939_v42 = vld [vmem:[#allocation7 + $0x164] ss:$16 sps:$4 sm:$0xff]   ;;  %v4942_v45 = vld [vmem:[#allocation7 + $0x16c] ss:$16 sps:$4 sm:$0xff]  }
 0x409   :  { %1895 = vmatprep.subr.bf16.mxu0 %v4927_v47  ;;  %1936 = vmatprep.subr.bf16.mxu1 %v4930_v48  ;;  %6296 = vst [vmem:[#allocation55_spill] sm:$0xff] %v4939_v42  ;;  %6297 = vst [vmem:[#allocation56_spill] sm:$0xff] %v4942_v45  ;;  %v4945_v47 = vld [vmem:[#allocation7 + $0x160] ss:$16 sps:$4 sm:$0xff]   ;;  %v4948_v48 = vld [vmem:[#allocation7 + $0x168] ss:$16 sps:$4 sm:$0xff]  }
 0x40a   :  { %6298 = vst [vmem:[#allocation57_spill] sm:$0xff] %v4945_v47  ;;  %6299 = vst [vmem:[#allocation58_spill] sm:$0xff] %v4948_v48 }
 0x40c   :  { %1896 = vmatpush1.bf16.msra.mxu0 %v4933_v49  ;;  %1937 = vmatpush1.bf16.msra.mxu1 %v4936_v41  ;;  %v4951_v49 = vld [vmem:[#allocation7 + $0x184] ss:$16 sps:$4 sm:$0xff]   ;;  %v4954_v41 = vld [vmem:[#allocation7 + $0x18c] ss:$16 sps:$4 sm:$0xff]  }
 0x40d   :  { %1897 = vmatprep.subr.bf16.mxu0 %v4939_v42  ;;  %1938 = vmatprep.subr.bf16.mxu1 %v4942_v45  ;;  %6300 = vst [vmem:[#allocation59_spill] sm:$0xff] %v4951_v49  ;;  %6301 = vst [vmem:[#allocation60_spill] sm:$0xff] %v4954_v41  ;;  %v4957_v42 = vld [vmem:[#allocation7 + $0x180] ss:$16 sps:$4 sm:$0xff]   ;;  %v4960_v45 = vld [vmem:[#allocation7 + $0x188] ss:$16 sps:$4 sm:$0xff]  }
 0x40e   :  { %6302 = vst [vmem:[#allocation61_spill] sm:$0xff] %v4957_v42  ;;  %6303 = vst [vmem:[#allocation62_spill] sm:$0xff] %v4960_v45 }
 0x410   :  { %1898 = vmatpush1.bf16.msra.mxu0 %v4945_v47  ;;  %1939 = vmatpush1.bf16.msra.mxu1 %v4948_v48  ;;  %v4963_v47 = vld [vmem:[#allocation7 + $0x1a4] ss:$16 sps:$4 sm:$0xff]   ;;  %v4966_v48 = vld [vmem:[#allocation7 + $0x1ac] ss:$16 sps:$4 sm:$0xff]  }
 0x411   :  { %1899 = vmatprep.subr.bf16.mxu0 %v4951_v49  ;;  %1940 = vmatprep.subr.bf16.mxu1 %v4954_v41  ;;  %6304 = vst [vmem:[#allocation63_spill] sm:$0xff] %v4963_v47  ;;  %6305 = vst [vmem:[#allocation64_spill] sm:$0xff] %v4966_v48  ;;  %v4969_v49 = vld [vmem:[#allocation7 + $0x1a0] ss:$16 sps:$4 sm:$0xff]   ;;  %v4972_v41 = vld [vmem:[#allocation7 + $0x1a8] ss:$16 sps:$4 sm:$0xff]  }
 0x412   :  { %6306 = vst [vmem:[#allocation10_spill] sm:$0xff] %v4969_v49  ;;  %6307 = vst [vmem:[#allocation11_spill] sm:$0xff] %v4972_v41 }
 0x414   :  { %1900 = vmatpush1.bf16.msra.mxu0 %v4957_v42  ;;  %1941 = vmatpush1.bf16.msra.mxu1 %v4960_v45  ;;  %v4975_v42 = vld [vmem:[#allocation7 + $0x1c4] ss:$16 sps:$4 sm:$0xff]   ;;  %v4978_v45 = vld [vmem:[#allocation7 + $0x1cc] ss:$16 sps:$4 sm:$0xff]  }
 0x415   :  { %1901 = vmatprep.subr.bf16.mxu0 %v4963_v47  ;;  %1942 = vmatprep.subr.bf16.mxu1 %v4966_v48  ;;  %6308 = vst [vmem:[#allocation16_spill] sm:$0xff] %v4975_v42  ;;  %6309 = vst [vmem:[#allocation70_spill] sm:$0xff] %v4978_v45  ;;  %v4981_v47 = vld [vmem:[#allocation7 + $0x1c0] ss:$16 sps:$4 sm:$0xff]   ;;  %v4984_v48 = vld [vmem:[#allocation7 + $0x1c8] ss:$16 sps:$4 sm:$0xff]  }
 0x416   :  { %6310 = vst [vmem:[#allocation71_spill] sm:$0xff] %v4981_v47  ;;  %6311 = vst [vmem:[#allocation72_spill] sm:$0xff] %v4984_v48 }
 0x418   :  { %1902 = vmatpush1.bf16.msra.mxu0 %v4969_v49  ;;  %1943 = vmatpush1.bf16.msra.mxu1 %v4972_v41  ;;  %v4987_v49 = vld [vmem:[#allocation7 + $0x1e4] ss:$16 sps:$4 sm:$0xff]   ;;  %v4990_v41 = vld [vmem:[#allocation7 + $0x1ec] ss:$16 sps:$4 sm:$0xff]  }
 0x419   :  { %1903 = vmatprep.subr.bf16.mxu0 %v4975_v42  ;;  %1944 = vmatprep.subr.bf16.mxu1 %v4978_v45  ;;  %6312 = vst [vmem:[#allocation73_spill] sm:$0xff] %v4987_v49  ;;  %6313 = vst [vmem:[#allocation17_spill] sm:$0xff] %v4990_v41  ;;  %v4993_v42 = vld [vmem:[#allocation7 + $0x1e0] ss:$16 sps:$4 sm:$0xff]   ;;  %v4996_v45 = vld [vmem:[#allocation7 + $0x1e8] ss:$16 sps:$4 sm:$0xff]  }
 0x41a   :  { %6314 = vst [vmem:[#allocation18_spill] sm:$0xff] %v4993_v42  ;;  %6315 = vst [vmem:[#allocation19_spill] sm:$0xff] %v4996_v45 }
 0x41c   :  { %1904 = vmatpush1.bf16.msra.mxu0 %v4981_v47  ;;  %1945 = vmatpush1.bf16.msra.mxu1 %v4984_v48 }
 0x41d   :  { %1905 = vmatprep.subr.bf16.mxu0 %v4987_v49  ;;  %1946 = vmatprep.subr.bf16.mxu1 %v4990_v41 }
 0x420   :  { %1906 = vmatpush1.bf16.msra.mxu0 %v4993_v42  ;;  %1947 = vmatpush1.bf16.msra.mxu1 %v4996_v45 }
 0x421   :  { %1985 = vmatprep.subr.bf16.mxu0 %v6242_v52  ;;  %2026 = vmatprep.subr.bf16.mxu1 %v6243_v54 }
 0x496   :  { %v1687_v48 = vpop.f32.mrb[36].mxu0  ;;  %v1728_v47 = vpop.f32.mrb[36].mxu1 }
 0x497   :  { %v1688_v49 = vadd.f32 %v1687_v48, %v6244_v57  ;;  %v1689_v40 = vpop.f32.mrb[37].mxu0  ;;  %v1730_v39 = vpop.f32.mrb[37].mxu1  ;;  %v1729_v54 = vadd.f32 %v1728_v47, %v6247_v8  ;;  %v6316_v47 = vld [vmem:[#allocation74_spill] sm:$0xff]  ;;  %v6319_v8 = vld [vmem:[#allocation77_spill] sm:$0xff] }
 0x498   :  { %v1690_v41 = vadd.f32 %v1689_v40, %v6245_v61  ;;  %v1691_v38 = vpop.f32.mrb[38].mxu0  ;;  %v1732_v37 = vpop.f32.mrb[38].mxu1  ;;  %v1731_v52 = vadd.f32 %v1730_v39, %v6246_v16 }
 0x499   :  { %v3135_v36 = vmul.f32 -1.442695, %v1688_v49  ;;  %v1692_v42 = vpop.f32.mrb[39].mxu0  ;;  %v1733_v14 = vpop.f32.mrb[39].mxu1 }
 0x49a   :  { %v3136_v13 = vmul.f32 -1.442695, %v1690_v41  ;;  %v3137_v45 = vmul.f32 -1.442695, %v1731_v52 }
 0x49b   :  { %3499 = vpow2.f32 %v3135_v36 }
 0x49c   :  { %3501 = vpow2.f32 %v3136_v13 }
 0x49d   :  { %3503 = vpow2.f32 %v3137_v45  ;;  %v6317_v45 = vld [vmem:[#allocation75_spill] sm:$0xff] }
 0x49e   :  { %3505 = vtanh.f32 %v1729_v54 }
 0x4a5   :  { %v3500_v12 = vpop.eup %3499 }
 0x4a6   :  { %v3502_v11 = vpop.eup %3501  ;;  %v1738_v48 = vadd.f32 1.0, %v3500_v12 }
 0x4a7   :  { %v1744_v57 = vadd.f32 1.0, %v3502_v11  ;;  %v3504_v37 = vpop.eup %3503 }
 0x4a8   :  { %3507 = vrcp.f32 %v1738_v48  ;;  %v3506_v38 = vpop.eup %3505  ;;  %v1750_v36 = vadd.f32 1.0, %v3504_v37 }
 0x4a9   :  { %3509 = vrcp.f32 %v1744_v57  ;;  %v6318_v57 = vld [vmem:[#allocation76_spill] sm:$0xff] }
 0x4aa   :  { %3511 = vrcp.f32 %v1750_v36 }
 0x4b2   :  { %v3508_v40 = vpop.eup %3507 }
 0x4b3   :  { %v3510_v14 = vpop.eup %3509  ;;  %v1755_v41 = vmul.f32 %v3508_v40, %v3506_v38 }
 0x4b4   :  { %v1754_v13 = vmul.f32 %v3510_v14, %v4764_v46 }
 0x4b6   :  { %v1797_v39 = vpop.f32.mrb[40].mxu0  ;;  %v1838_v42 = vpop.f32.mrb[40].mxu1  ;;  %v5006_v49 = vadd.f32 %v1755_v41, %v1754_v13 }
 0x4b7   :  { %v1845_v12 = vadd.f32 %v1797_v39, %v6316_v47  ;;  %v1847_v52 = vadd.f32 %v1838_v42, %v6317_v45  ;;  %v1799_v11 = vpop.f32.mrb[41].mxu0  ;;  %v1840_v54 = vpop.f32.mrb[41].mxu1 }
 0x4b8   :  { %v1846_v48 = vadd.f32 %v1799_v11, %v6318_v57  ;;  %v1848_v16 = vadd.f32 %v1840_v54, %v6319_v8  ;;  %v1801_v61 = vpop.f32.mrb[42].mxu0  ;;  %v1842_v38 = vpop.f32.mrb[42].mxu1  ;;  %3513 = vtanh.f32 %v5006_v49 }
 0x4b9   :  { %v3138_v46 = vmul.f32 -1.442695, %v1845_v12  ;;  %v1802_v37 = vpop.f32.mrb[43].mxu0  ;;  %v1843_v40 = vpop.f32.mrb[43].mxu1 }
 0x4ba   :  { %v3139_v14 = vmul.f32 -1.442695, %v1846_v48  ;;  %v3512_v41 = vpop.eup %3511  ;;  %v3140_v13 = vmul.f32 -1.442695, %v1848_v16 }
 0x4bb   :  { %3515 = vpow2.f32 %v3138_v46 }
 0x4bc   :  { %3517 = vpow2.f32 %v3139_v14 }
 0x4bd   :  { %3519 = vpow2.f32 %v3140_v13  ;;  %v6353_v13 = vld [vmem:[#allocation54_spill] sm:$0xff] }
 0x4be   :  { %3521 = vtanh.f32 %v1847_v52 }
 0x4c2   :  { %v3514_v36 = vpop.eup %3513 }
 0x4c3   :  { %v1758_v39 = vmul.f32 %v3514_v36, %v3512_v41  ;;  %v6351_v41 = vld [vmem:[#allocation52_spill] sm:$0xff]  ;;  %v6352_v36 = vld [vmem:[#allocation53_spill] sm:$0xff] }
 0x4c5   :  { %v3516_v42 = vpop.eup %3515  ;;  %v1874_v47 = vpack.c.bf16 %v1758_v39, %v1758_v39  ;;  %v6354_v39 = vld [vmem:[#allocation55_spill] sm:$0xff] }
 0x4c6   :  { %v3518_v45 = vpop.eup %3517  ;;  %v1852_v11 = vadd.f32 1.0, %v3516_v42  ;;  %v6355_v42 = vld [vmem:[#allocation56_spill] sm:$0xff] }
 0x4c7   :  { %v1858_v61 = vadd.f32 1.0, %v3518_v45  ;;  %1907 = vmatprep.mubr.bf16.mxu0 %v1874_v47  ;;  %1948 = vmatprep.mubr.bf16.mxu1 %v1874_v47  ;;  %v3520_v8 = vpop.eup %3519  ;;  %v6356_v47 = vld [vmem:[#allocation57_spill] sm:$0xff]  ;;  %v6357_v45 = vld [vmem:[#allocation58_spill] sm:$0xff] }
 0x4c8   :  { %3523 = vrcp.f32 %v1852_v11  ;;  %v3522_v12 = vpop.eup %3521  ;;  %v1864_v38 = vadd.f32 1.0, %v3520_v8  ;;  %v6358_v11 = vld [vmem:[#allocation59_spill] sm:$0xff]  ;;  %v6360_v8 = vld [vmem:[#allocation61_spill] sm:$0xff] }
 0x4c9   :  { %3525 = vrcp.f32 %v1858_v61  ;;  %v6359_v61 = vld [vmem:[#allocation60_spill] sm:$0xff] }
 0x4ca   :  { %3527 = vrcp.f32 %v1864_v38  ;;  %v6365_v38 = vld [vmem:[#allocation11_spill] sm:$0xff] }
 0x4d2   :  { %v3524_v54 = vpop.eup %3523 }
 0x4d3   :  { %v3526_v57 = vpop.eup %3525  ;;  %v1869_v48 = vmul.f32 %v3524_v54, %v3522_v12  ;;  %v6361_v12 = vld [vmem:[#allocation62_spill] sm:$0xff]  ;;  %v6362_v54 = vld [vmem:[#allocation63_spill] sm:$0xff] }
 0x4d4   :  { %v1868_v16 = vmul.f32 %v3526_v57, %v4772_v43  ;;  %v3528_v37 = vpop.eup %3527  ;;  %v6341_v43 = vld [vmem:[#allocation42_spill] sm:$0xff]  ;;  %v6363_v57 = vld [vmem:[#allocation64_spill] sm:$0xff] }
 0x4d6   :  { %v5014_v46 = vadd.f32 %v1869_v48, %v1868_v16  ;;  %v6364_v48 = vld [vmem:[#allocation10_spill] sm:$0xff]  ;;  %v6366_v16 = vld [vmem:[#allocation16_spill] sm:$0xff] }
 0x4d8   :  { %3529 = vtanh.f32 %v5014_v46 }
 0x4e2   :  { %v3530_v52 = vpop.eup %3529 }
 0x4e3   :  { %v1872_v40 = vmul.f32 %v3530_v52, %v3528_v37  ;;  %v6367_v37 = vld [vmem:[#allocation70_spill] sm:$0xff]  ;;  %v6368_v52 = vld [vmem:[#allocation71_spill] sm:$0xff] }
 0x4e5   :  { %v1873_v14 = vpack.c.bf16 %v1872_v40, %v1872_v40  ;;  %v6369_v40 = vld [vmem:[#allocation72_spill] sm:$0xff] }
 0x4e7   :  { %1908 = vmatmul.mubr.bf16.vlgmr.msra.gmra.mrb[44].mxu0 %v1873_v14  ;;  %1949 = vmatmul.mubr.bf16.vlgmr.msra.gmra.mrb[44].mxu1 %v1873_v14 }
 0x4e8   :  { %1986 = vmatpush1.bf16.msra.mxu0 %v4599_v23  ;;  %2027 = vmatpush1.bf16.msra.mxu1 %v4602_v31  ;;  %v6320_v23 = vld [vmem:[#allocation26_spill] sm:$0xff]  ;;  %v6321_v31 = vld [vmem:[#allocation27_spill] sm:$0xff] }
 0x4e9   :  { %1987 = vmatprep.subr.bf16.mxu0 %v4605_v15  ;;  %2028 = vmatprep.subr.bf16.mxu1 %v4608_v53  ;;  %v6322_v15 = vld [vmem:[#allocation28_spill] sm:$0xff]  ;;  %v6323_v53 = vld [vmem:[#allocation29_spill] sm:$0xff] }
 0x4ea   :  { %2017 = vmatprep.mubr.bf16.mxu0 %v6137_v19  ;;  %2058 = vmatprep.mubr.bf16.mxu1 %v6137_v19 }
 0x4ec   :  { %1988 = vmatpush1.bf16.msra.mxu0 %v4613_v17  ;;  %2029 = vmatpush1.bf16.msra.mxu1 %v4616_v21  ;;  %v6324_v17 = vld [vmem:[#allocation30_spill] sm:$0xff]  ;;  %v6325_v21 = vld [vmem:[#allocation31_spill] sm:$0xff] }
 0x4ed   :  { %1989 = vmatprep.subr.bf16.mxu0 %v4619_v18  ;;  %2030 = vmatprep.subr.bf16.mxu1 %v4622_v27  ;;  %v6326_v18 = vld [vmem:[#allocation32_spill] sm:$0xff]  ;;  %v6327_v27 = vld [vmem:[#allocation33_spill] sm:$0xff] }
 0x4f0   :  { %1990 = vmatpush1.bf16.msra.mxu0 %v4625_v62  ;;  %2031 = vmatpush1.bf16.msra.mxu1 %v4628_v44  ;;  %v6328_v62 = vld [vmem:[#allocation34_spill] sm:$0xff]  ;;  %v6329_v44 = vld [vmem:[#allocation35_spill] sm:$0xff] }
 0x4f1   :  { %1991 = vmatprep.subr.bf16.mxu0 %v4631_v0  ;;  %2032 = vmatprep.subr.bf16.mxu1 %v4634_v35  ;;  %v6330_v0 = vld [vmem:[#allocation36_spill] sm:$0xff]  ;;  %v6331_v35 = vld [vmem:[#allocation37_spill] sm:$0xff] }
 0x4f4   :  { %1992 = vmatpush1.bf16.msra.mxu0 %v4637_v32  ;;  %2033 = vmatpush1.bf16.msra.mxu1 %v4640_v34  ;;  %v6332_v32 = vld [vmem:[#allocation38_spill] sm:$0xff]  ;;  %v6333_v34 = vld [vmem:[#allocation39_spill] sm:$0xff] }
 0x4f5   :  { %1993 = vmatprep.subr.bf16.mxu0 %v4643_v33  ;;  %2034 = vmatprep.subr.bf16.mxu1 %v6253_v20  ;;  %v6334_v33 = vld [vmem:[#allocation40_spill] sm:$0xff]  ;;  %v6342_v20 = vld [vmem:[#allocation43_spill] sm:$0xff] }
 0x4f8   :  { %1994 = vmatpush1.bf16.msra.mxu0 %v6254_v50  ;;  %2035 = vmatpush1.bf16.msra.mxu1 %v6255_v51  ;;  %v6343_v50 = vld [vmem:[#allocation44_spill] sm:$0xff]  ;;  %v6344_v51 = vld [vmem:[#allocation45_spill] sm:$0xff] }
 0x4f9   :  { %1995 = vmatprep.subr.bf16.mxu0 %v6256_v55  ;;  %2036 = vmatprep.subr.bf16.mxu1 %v6257_v56  ;;  %v6345_v55 = vld [vmem:[#allocation46_spill] sm:$0xff]  ;;  %v6346_v56 = vld [vmem:[#allocation47_spill] sm:$0xff] }
 0x4fc   :  { %1996 = vmatpush1.bf16.msra.mxu0 %v6258_v58  ;;  %2037 = vmatpush1.bf16.msra.mxu1 %v6259_v59  ;;  %v6347_v58 = vld [vmem:[#allocation48_spill] sm:$0xff]  ;;  %v6348_v59 = vld [vmem:[#allocation49_spill] sm:$0xff] }
 0x4fd   :  { %1997 = vmatprep.subr.bf16.mxu0 %v6260_v60  ;;  %2038 = vmatprep.subr.bf16.mxu1 %v6261_v63  ;;  %v6349_v60 = vld [vmem:[#allocation50_spill] sm:$0xff]  ;;  %v6350_v63 = vld [vmem:[#allocation51_spill] sm:$0xff] }
 0x500   :  { %1998 = vmatpush1.bf16.msra.mxu0 %v4673_v25  ;;  %2039 = vmatpush1.bf16.msra.mxu1 %v4676_v29  ;;  %v6338_v25 = vld [vmem:[#allocation68_spill] sm:$0xff]  ;;  %v6339_v29 = vld [vmem:[#allocation69_spill] sm:$0xff] }
 0x501   :  { %1999 = vmatprep.subr.bf16.mxu0 %v4679_v24  ;;  %2040 = vmatprep.subr.bf16.mxu1 %v4682_v30  ;;  %v6335_v30 = vld [vmem:[#allocation65_spill] sm:$0xff] }
 0x502   :  { %v6340_v24 = vld [vmem:[#allocation41_spill] sm:$0xff] }
 0x504   :  { %2000 = vmatpush1.bf16.msra.mxu0 %v4685_v26  ;;  %2041 = vmatpush1.bf16.msra.mxu1 %v4688_v22  ;;  %v6336_v26 = vld [vmem:[#allocation66_spill] sm:$0xff]  ;;  %v6337_v22 = vld [vmem:[#allocation67_spill] sm:$0xff] }
 0x505   :  { %2097 = vmatprep.subr.bf16.mxu0 %v4807_v1  ;;  %2138 = vmatprep.subr.bf16.mxu1 %v4810_v2 }
 0x507   :  { %2018 = vmatmul.mubr.bf16.vlgmr.msra.gmra.mrb[48].mxu0 %v1873_v14  ;;  %2059 = vmatmul.mubr.bf16.vlgmr.msra.gmra.mrb[48].mxu1 %v1873_v14  ;;  %v6370_v14 = vld [vmem:[#allocation73_spill] sm:$0xff] }
 0x508   :  { %2098 = vmatpush1.bf16.msra.mxu0 %v4813_v3  ;;  %2139 = vmatpush1.bf16.msra.mxu1 %v4816_v4 }
 0x509   :  { %2099 = vmatprep.subr.bf16.mxu0 %v4819_v5  ;;  %2140 = vmatprep.subr.bf16.mxu1 %v4822_v28 }
 0x50c   :  { %2100 = vmatpush1.bf16.msra.mxu0 %v4825_v6  ;;  %2141 = vmatpush1.bf16.msra.mxu1 %v4828_v7 }
 0x50d   :  { %2101 = vmatprep.subr.bf16.mxu0 %v4831_v9  ;;  %2142 = vmatprep.subr.bf16.mxu1 %v4834_v10 }
 0x510   :  { %2102 = vmatpush1.bf16.msra.mxu0 %v6320_v23  ;;  %2143 = vmatpush1.bf16.msra.mxu1 %v6321_v31 }
 0x511   :  { %2103 = vmatprep.subr.bf16.mxu0 %v6322_v15  ;;  %2144 = vmatprep.subr.bf16.mxu1 %v6323_v53 }
 0x514   :  { %2104 = vmatpush1.bf16.msra.mxu0 %v6324_v17  ;;  %2145 = vmatpush1.bf16.msra.mxu1 %v6325_v21 }
 0x515   :  { %2105 = vmatprep.subr.bf16.mxu0 %v6326_v18  ;;  %2146 = vmatprep.subr.bf16.mxu1 %v6327_v27 }
 0x518   :  { %2106 = vmatpush1.bf16.msra.mxu0 %v6328_v62  ;;  %2147 = vmatpush1.bf16.msra.mxu1 %v6329_v44 }
 0x519   :  { %2107 = vmatprep.subr.bf16.mxu0 %v6330_v0  ;;  %2148 = vmatprep.subr.bf16.mxu1 %v6331_v35 }
 0x51c   :  { %2108 = vmatpush1.bf16.msra.mxu0 %v6332_v32  ;;  %2149 = vmatpush1.bf16.msra.mxu1 %v6333_v34 }
 0x51d   :  { %2109 = vmatprep.subr.bf16.mxu0 %v6334_v33  ;;  %2150 = vmatprep.subr.bf16.mxu1 %v6335_v30 }
 0x520   :  { %2110 = vmatpush1.bf16.msra.mxu0 %v6336_v26  ;;  %2151 = vmatpush1.bf16.msra.mxu1 %v6337_v22 }
 0x521   :  { %2111 = vmatprep.subr.bf16.mxu0 %v6338_v25  ;;  %2152 = vmatprep.subr.bf16.mxu1 %v6339_v29 }
 0x524   :  { %2112 = vmatpush1.bf16.msra.mxu0 %v6340_v24  ;;  %2153 = vmatpush1.bf16.msra.mxu1 %v6341_v43 }
 0x525   :  { %2113 = vmatprep.subr.bf16.mxu0 %v6342_v20  ;;  %2154 = vmatprep.subr.bf16.mxu1 %v6343_v50 }
 0x528   :  { %2114 = vmatpush1.bf16.msra.mxu0 %v6344_v51  ;;  %2155 = vmatpush1.bf16.msra.mxu1 %v6345_v55 }
 0x529   :  { %2115 = vmatprep.subr.bf16.mxu0 %v6346_v56  ;;  %2156 = vmatprep.subr.bf16.mxu1 %v6347_v58 }
 0x52c   :  { %2116 = vmatpush1.bf16.msra.mxu0 %v6348_v59  ;;  %2157 = vmatpush1.bf16.msra.mxu1 %v6349_v60 }
 0x52d   :  { %2117 = vmatprep.subr.bf16.mxu0 %v6350_v63  ;;  %2158 = vmatprep.subr.bf16.mxu1 %v6351_v41 }
 0x530   :  { %2118 = vmatpush1.bf16.msra.mxu0 %v6352_v36  ;;  %2159 = vmatpush1.bf16.msra.mxu1 %v6353_v13 }
 0x531   :  { %2119 = vmatprep.subr.bf16.mxu0 %v6354_v39  ;;  %2160 = vmatprep.subr.bf16.mxu1 %v6355_v42 }
 0x534   :  { %2120 = vmatpush1.bf16.msra.mxu0 %v6356_v47  ;;  %2161 = vmatpush1.bf16.msra.mxu1 %v6357_v45 }
 0x535   :  { %2121 = vmatprep.subr.bf16.mxu0 %v6358_v11  ;;  %2162 = vmatprep.subr.bf16.mxu1 %v6359_v61  ;;  %v6377_v61 = vld [vmem:[#allocation13_spill] sm:$0xff] }
 0x538   :  { %2122 = vmatpush1.bf16.msra.mxu0 %v6360_v8  ;;  %2163 = vmatpush1.bf16.msra.mxu1 %v6361_v12  ;;  %v6371_v8 = vld [vmem:[#allocation17_spill] sm:$0xff]  ;;  %v6372_v12 = vld [vmem:[#allocation18_spill] sm:$0xff] }
 0x539   :  { %2123 = vmatprep.subr.bf16.mxu0 %v6362_v54  ;;  %2164 = vmatprep.subr.bf16.mxu1 %v6363_v57  ;;  %v6373_v54 = vld [vmem:[#allocation19_spill] sm:$0xff]  ;;  %v5113_v57 = vld [vmem:[#allocation5 + $0x4] ss:$16 sps:$4 sm:$0xff]  }
 0x53a   :  { %6374 = vst [vmem:[#allocation20_spill] sm:$0xff] %v5113_v57 }
 0x53c   :  { %2124 = vmatpush1.bf16.msra.mxu0 %v6364_v48  ;;  %2165 = vmatpush1.bf16.msra.mxu1 %v6365_v38  ;;  %v5116_v38 = vld [vmem:[#allocation5 + $0xc] ss:$16 sps:$4 sm:$0xff]  }
 0x53d   :  { %2125 = vmatprep.subr.bf16.mxu0 %v6366_v16  ;;  %2166 = vmatprep.subr.bf16.mxu1 %v6367_v37  ;;  %6375 = vst [vmem:[#allocation21_spill] sm:$0xff] %v5116_v38  ;;  %v6376_v16 = vld [vmem:[#allocation12_spill] sm:$0xff] }
 0x540   :  { %2126 = vmatpush1.bf16.msra.mxu0 %v6368_v52  ;;  %2167 = vmatpush1.bf16.msra.mxu1 %v6369_v40 }
 0x541   :  { %2127 = vmatprep.subr.bf16.mxu0 %v6370_v14  ;;  %2168 = vmatprep.subr.bf16.mxu1 %v6371_v8 }
 0x544   :  { %2128 = vmatpush1.bf16.msra.mxu0 %v6372_v12  ;;  %2169 = vmatpush1.bf16.msra.mxu1 %v6373_v54 }
 0x545   :  { %2207 = vmatprep.subr.bf16.mxu0 %v5113_v57  ;;  %2248 = vmatprep.subr.bf16.mxu1 %v5116_v38  ;;  %v6378_v57 = vld [vmem:[#allocation14_spill] sm:$0xff]  ;;  %v6379_v38 = vld [vmem:[#allocation15_spill] sm:$0xff] }
 0x5ba   :  { %v1909_v37 = vpop.f32.mrb[44].mxu0  ;;  %v1950_v52 = vpop.f32.mrb[44].mxu1 }
 0x5bb   :  { %v1910_v40 = vadd.f32 %v1909_v37, %v6376_v16  ;;  %v1911_v48 = vpop.f32.mrb[45].mxu0  ;;  %v1952_v14 = vpop.f32.mrb[45].mxu1  ;;  %v1951_v36 = vadd.f32 %v1950_v52, %v6379_v38  ;;  %v6380_v52 = vld [vmem:[#allocation78_spill] sm:$0xff]  ;;  %v6383_v38 = vld [vmem:[#allocation81_spill] sm:$0xff] }
 0x5bc   :  { %v1912_v8 = vadd.f32 %v1911_v48, %v6377_v61  ;;  %v1913_v11 = vpop.f32.mrb[46].mxu0  ;;  %v1954_v12 = vpop.f32.mrb[46].mxu1  ;;  %v1953_v39 = vadd.f32 %v1952_v14, %v6378_v57 }
 0x5bd   :  { %v3141_v45 = vmul.f32 -1.442695, %v1910_v40  ;;  %v1914_v54 = vpop.f32.mrb[47].mxu0  ;;  %v1955_v47 = vpop.f32.mrb[47].mxu1 }
 0x5be   :  { %v3142_v42 = vmul.f32 -1.442695, %v1912_v8  ;;  %v3143_v13 = vmul.f32 -1.442695, %v1953_v39 }
 0x5bf   :  { %3531 = vpow2.f32 %v3141_v45 }
 0x5c0   :  { %3533 = vpow2.f32 %v3142_v42 }
 0x5c1   :  { %3535 = vpow2.f32 %v3143_v13  ;;  %v6381_v13 = vld [vmem:[#allocation79_spill] sm:$0xff] }
 0x5c2   :  { %3537 = vtanh.f32 %v1951_v36 }
 0x5c9   :  { %v3532_v41 = vpop.eup %3531 }
 0x5ca   :  { %v3534_v63 = vpop.eup %3533  ;;  %v1960_v37 = vadd.f32 1.0, %v3532_v41 }
 0x5cb   :  { %v1966_v16 = vadd.f32 1.0, %v3534_v63  ;;  %v3536_v11 = vpop.eup %3535 }
 0x5cc   :  { %3539 = vrcp.f32 %v1960_v37  ;;  %v3538_v12 = vpop.eup %3537  ;;  %v1972_v45 = vadd.f32 1.0, %v3536_v11 }
 0x5cd   :  { %3541 = vrcp.f32 %v1966_v16  ;;  %v6382_v16 = vld [vmem:[#allocation80_spill] sm:$0xff] }
 0x5ce   :  { %3543 = vrcp.f32 %v1972_v45 }
 0x5d6   :  { %v3540_v54 = vpop.eup %3539 }
 0x5d7   :  { %v3542_v47 = vpop.eup %3541  ;;  %v1977_v8 = vmul.f32 %v3540_v54, %v3538_v12 }
 0x5d8   :  { %v1976_v42 = vmul.f32 %v3542_v47, %v5006_v49 }
 0x5da   :  { %v2019_v48 = vpop.f32.mrb[48].mxu0  ;;  %v2060_v39 = vpop.f32.mrb[48].mxu1  ;;  %v5124_v40 = vadd.f32 %v1977_v8, %v1976_v42 }
 0x5db   :  { %v2067_v41 = vadd.f32 %v2019_v48, %v6380_v52  ;;  %v2069_v36 = vadd.f32 %v2060_v39, %v6381_v13  ;;  %v2021_v63 = vpop.f32.mrb[49].mxu0  ;;  %v2062_v14 = vpop.f32.mrb[49].mxu1 }
 0x5dc   :  { %v2068_v37 = vadd.f32 %v2021_v63, %v6382_v16  ;;  %v2070_v57 = vadd.f32 %v2062_v14, %v6383_v38  ;;  %v2023_v61 = vpop.f32.mrb[50].mxu0  ;;  %v2064_v12 = vpop.f32.mrb[50].mxu1  ;;  %3545 = vtanh.f32 %v5124_v40 }
 0x5dd   :  { %v3144_v49 = vmul.f32 -1.442695, %v2067_v41  ;;  %v2024_v11 = vpop.f32.mrb[51].mxu0  ;;  %v2065_v54 = vpop.f32.mrb[51].mxu1 }
 0x5de   :  { %v3145_v47 = vmul.f32 -1.442695, %v2068_v37  ;;  %v3544_v8 = vpop.eup %3543  ;;  %v3146_v42 = vmul.f32 -1.442695, %v2070_v57 }
 0x5df   :  { %3547 = vpow2.f32 %v3144_v49 }
 0x5e0   :  { %3549 = vpow2.f32 %v3145_v47 }
 0x5e1   :  { %3551 = vpow2.f32 %v3146_v42  ;;  %v5148_v42 = vld [vmem:[#allocation5 + $0x2c] ss:$16 sps:$4 sm:$0xff]  }
 0x5e2   :  { %3553 = vtanh.f32 %v2069_v36 }
 0x5e6   :  { %v3546_v45 = vpop.eup %3545 }
 0x5e7   :  { %v1980_v48 = vmul.f32 %v3546_v45, %v3544_v8  ;;  %v5139_v8 = vld [vmem:[#allocation5] ss:$16 sps:$4 sm:$0xff]   ;;  %v5142_v45 = vld [vmem:[#allocation5 + $0x8] ss:$16 sps:$4 sm:$0xff]  }
 0x5e9   :  { %v3548_v39 = vpop.eup %3547  ;;  %v2096_v52 = vpack.c.bf16 %v1980_v48, %v1980_v48  ;;  %v5153_v48 = vld [vmem:[#allocation5 + $0x20] ss:$16 sps:$4 sm:$0xff]  }
 0x5ea   :  { %v3550_v13 = vpop.eup %3549  ;;  %v2074_v63 = vadd.f32 1.0, %v3548_v39  ;;  %v5156_v39 = vld [vmem:[#allocation5 + $0x28] ss:$16 sps:$4 sm:$0xff]  }
 0x5eb   :  { %v2080_v61 = vadd.f32 1.0, %v3550_v13  ;;  %2129 = vmatprep.mubr.bf16.mxu0 %v2096_v52  ;;  %2170 = vmatprep.mubr.bf16.mxu1 %v2096_v52  ;;  %v3552_v38 = vpop.eup %3551  ;;  %v5159_v52 = vld [vmem:[#allocation5 + $0x44] ss:$16 sps:$4 sm:$0xff]   ;;  %v5162_v13 = vld [vmem:[#allocation5 + $0x4c] ss:$16 sps:$4 sm:$0xff]  }
 0x5ec   :  { %3555 = vrcp.f32 %v2074_v63  ;;  %v3554_v41 = vpop.eup %3553  ;;  %v2086_v12 = vadd.f32 1.0, %v3552_v38  ;;  %v5165_v63 = vld [vmem:[#allocation5 + $0x40] ss:$16 sps:$4 sm:$0xff]   ;;  %v5171_v38 = vld [vmem:[#allocation5 + $0x64] ss:$16 sps:$4 sm:$0xff]  }
 0x5ed   :  { %3557 = vrcp.f32 %v2080_v61  ;;  %v5168_v61 = vld [vmem:[#allocation5 + $0x48] ss:$16 sps:$4 sm:$0xff]  }
 0x5ee   :  { %3559 = vrcp.f32 %v2086_v12  ;;  %v5186_v12 = vld [vmem:[#allocation5 + $0x8c] ss:$16 sps:$4 sm:$0xff]  }
 0x5ef   :  { %6385 = vst [vmem:[#allocation23_spill] sm:$0xff] %v5186_v12 }
 0x5f6   :  { %v3556_v14 = vpop.eup %3555 }
 0x5f7   :  { %v3558_v16 = vpop.eup %3557  ;;  %v2091_v37 = vmul.f32 %v3556_v14, %v3554_v41  ;;  %v5174_v41 = vld [vmem:[#allocation5 + $0x6c] ss:$16 sps:$4 sm:$0xff]   ;;  %v5177_v14 = vld [vmem:[#allocation5 + $0x60] ss:$16 sps:$4 sm:$0xff]  }
 0x5f8   :  { %v2090_v57 = vmul.f32 %v3558_v16, %v5014_v46  ;;  %v3560_v11 = vpop.eup %3559  ;;  %v5145_v46 = vld [vmem:[#allocation5 + $0x24] ss:$16 sps:$4 sm:$0xff]   ;;  %v5180_v16 = vld [vmem:[#allocation5 + $0x68] ss:$16 sps:$4 sm:$0xff]  }
 0x5fa   :  { %v5132_v49 = vadd.f32 %v2091_v37, %v2090_v57  ;;  %v5183_v37 = vld [vmem:[#allocation5 + $0x84] ss:$16 sps:$4 sm:$0xff]   ;;  %v5189_v57 = vld [vmem:[#allocation5 + $0x80] ss:$16 sps:$4 sm:$0xff]  }
 0x5fb   :  { %6384 = vst [vmem:[#allocation22_spill] sm:$0xff] %v5183_v37  ;;  %6386 = vst [vmem:[#allocation24_spill] sm:$0xff] %v5189_v57 }
 0x5fc   :  { %3561 = vtanh.f32 %v5132_v49 }
 0x606   :  { %v3562_v36 = vpop.eup %3561 }
 0x607   :  { %v2094_v54 = vmul.f32 %v3562_v36, %v3560_v11  ;;  %v5192_v11 = vld [vmem:[#allocation5 + $0x88] ss:$16 sps:$4 sm:$0xff]   ;;  %v5195_v36 = vld [vmem:[#allocation5 + $0xa4] ss:$16 sps:$4 sm:$0xff]  }
 0x608   :  { %6387 = vst [vmem:[#allocation25_spill] sm:$0xff] %v5192_v11  ;;  %6388 = vst [vmem:[#allocation74_spill] sm:$0xff] %v5195_v36 }
 0x609   :  { %v5135_v47 = vpack.c.bf16 %v2094_v54, %v2094_v54  ;;  %v5198_v54 = vld [vmem:[#allocation5 + $0xac] ss:$16 sps:$4 sm:$0xff]  }
 0x60a   :  { %6389 = vst [vmem:[#allocation75_spill] sm:$0xff] %v5198_v54 }
 0x60b   :  { %2130 = vmatmul.mubr.bf16.vlgmr.msra.gmra.mrb[52].mxu0 %v5135_v47  ;;  %2171 = vmatmul.mubr.bf16.vlgmr.msra.gmra.mrb[52].mxu1 %v5135_v47 }
 0x60c   :  { %2208 = vmatpush1.bf16.msra.mxu0 %v5139_v8  ;;  %2249 = vmatpush1.bf16.msra.mxu1 %v5142_v45 }
 0x60d   :  { %2209 = vmatprep.subr.bf16.mxu0 %v5145_v46  ;;  %2250 = vmatprep.subr.bf16.mxu1 %v5148_v42 }
 0x60e   :  { %2239 = vmatprep.mubr.bf16.mxu0 %v6137_v19  ;;  %2280 = vmatprep.mubr.bf16.mxu1 %v6137_v19 }
 0x610   :  { %2210 = vmatpush1.bf16.msra.mxu0 %v5153_v48  ;;  %2251 = vmatpush1.bf16.msra.mxu1 %v5156_v39 }
 0x611   :  { %2211 = vmatprep.subr.bf16.mxu0 %v5159_v52  ;;  %2252 = vmatprep.subr.bf16.mxu1 %v5162_v13 }
 0x614   :  { %2212 = vmatpush1.bf16.msra.mxu0 %v5165_v63  ;;  %2253 = vmatpush1.bf16.msra.mxu1 %v5168_v61 }
 0x615   :  { %2213 = vmatprep.subr.bf16.mxu0 %v5171_v38  ;;  %2254 = vmatprep.subr.bf16.mxu1 %v5174_v41 }
 0x618   :  { %2214 = vmatpush1.bf16.msra.mxu0 %v5177_v14  ;;  %2255 = vmatpush1.bf16.msra.mxu1 %v5180_v16 }
 0x619   :  { %2215 = vmatprep.subr.bf16.mxu0 %v5183_v37  ;;  %2256 = vmatprep.subr.bf16.mxu1 %v5186_v12  ;;  %v5201_v37 = vld [vmem:[#allocation5 + $0xa0] ss:$16 sps:$4 sm:$0xff]   ;;  %v5204_v12 = vld [vmem:[#allocation5 + $0xa8] ss:$16 sps:$4 sm:$0xff]  }
 0x61a   :  { %6390 = vst [vmem:[#allocation76_spill] sm:$0xff] %v5201_v37  ;;  %6391 = vst [vmem:[#allocation77_spill] sm:$0xff] %v5204_v12 }
 0x61c   :  { %2216 = vmatpush1.bf16.msra.mxu0 %v5189_v57  ;;  %2257 = vmatpush1.bf16.msra.mxu1 %v5192_v11  ;;  %v5207_v57 = vld [vmem:[#allocation5 + $0xc4] ss:$16 sps:$4 sm:$0xff]   ;;  %v5210_v11 = vld [vmem:[#allocation5 + $0xcc] ss:$16 sps:$4 sm:$0xff]  }
 0x61d   :  { %2217 = vmatprep.subr.bf16.mxu0 %v5195_v36  ;;  %2258 = vmatprep.subr.bf16.mxu1 %v5198_v54  ;;  %6392 = vst [vmem:[#allocation26_spill] sm:$0xff] %v5207_v57  ;;  %6393 = vst [vmem:[#allocation27_spill] sm:$0xff] %v5210_v11  ;;  %v5213_v36 = vld [vmem:[#allocation5 + $0xc0] ss:$16 sps:$4 sm:$0xff]   ;;  %v5216_v54 = vld [vmem:[#allocation5 + $0xc8] ss:$16 sps:$4 sm:$0xff]  }
 0x620   :  { %2218 = vmatpush1.bf16.msra.mxu0 %v5201_v37  ;;  %2259 = vmatpush1.bf16.msra.mxu1 %v5204_v12  ;;  %v5219_v37 = vld [vmem:[#allocation5 + $0xe4] ss:$16 sps:$4 sm:$0xff]   ;;  %v5222_v12 = vld [vmem:[#allocation5 + $0xec] ss:$16 sps:$4 sm:$0xff]  }
 0x621   :  { %2219 = vmatprep.subr.bf16.mxu0 %v5207_v57  ;;  %2260 = vmatprep.subr.bf16.mxu1 %v5210_v11  ;;  %v5225_v57 = vld [vmem:[#allocation5 + $0xe0] ss:$16 sps:$4 sm:$0xff]   ;;  %v5228_v11 = vld [vmem:[#allocation5 + $0xe8] ss:$16 sps:$4 sm:$0xff]  }
 0x624   :  { %2220 = vmatpush1.bf16.msra.mxu0 %v5213_v36  ;;  %2261 = vmatpush1.bf16.msra.mxu1 %v5216_v54 }
 0x625   :  { %2221 = vmatprep.subr.bf16.mxu0 %v5219_v37  ;;  %2262 = vmatprep.subr.bf16.mxu1 %v5222_v12 }
 0x628   :  { %2222 = vmatpush1.bf16.msra.mxu0 %v5225_v57  ;;  %2263 = vmatpush1.bf16.msra.mxu1 %v5228_v11 }
 0x629   :  { %2319 = vmatprep.subr.bf16.mxu0 %v4807_v1  ;;  %2360 = vmatprep.subr.bf16.mxu1 %v4810_v2  ;;  %v6394_v1 = vld [vmem:[#allocation51_spill] sm:$0xff]  ;;  %v6395_v2 = vld [vmem:[#allocation52_spill] sm:$0xff] }
 0x62b   :  { %2240 = vmatmul.mubr.bf16.vlgmr.msra.gmra.mrb[56].mxu0 %v5135_v47  ;;  %2281 = vmatmul.mubr.bf16.vlgmr.msra.gmra.mrb[56].mxu1 %v5135_v47  ;;  %v6422_v47 = vld [vmem:[#allocation14_spill] sm:$0xff] }
 0x62c   :  { %2320 = vmatpush1.bf16.msra.mxu0 %v4813_v3  ;;  %2361 = vmatpush1.bf16.msra.mxu1 %v4816_v4  ;;  %v6396_v3 = vld [vmem:[#allocation53_spill] sm:$0xff]  ;;  %v6397_v4 = vld [vmem:[#allocation54_spill] sm:$0xff] }
 0x62d   :  { %2321 = vmatprep.subr.bf16.mxu0 %v4819_v5  ;;  %2362 = vmatprep.subr.bf16.mxu1 %v4822_v28  ;;  %v6398_v5 = vld [vmem:[#allocation55_spill] sm:$0xff]  ;;  %v6399_v28 = vld [vmem:[#allocation56_spill] sm:$0xff] }
 0x630   :  { %2322 = vmatpush1.bf16.msra.mxu0 %v4825_v6  ;;  %2363 = vmatpush1.bf16.msra.mxu1 %v4828_v7  ;;  %v6400_v6 = vld [vmem:[#allocation57_spill] sm:$0xff]  ;;  %v6401_v7 = vld [vmem:[#allocation58_spill] sm:$0xff] }
 0x631   :  { %2323 = vmatprep.subr.bf16.mxu0 %v4831_v9  ;;  %2364 = vmatprep.subr.bf16.mxu1 %v4834_v10  ;;  %v6402_v9 = vld [vmem:[#allocation59_spill] sm:$0xff]  ;;  %v6403_v10 = vld [vmem:[#allocation60_spill] sm:$0xff] }
 0x634   :  { %2324 = vmatpush1.bf16.msra.mxu0 %v6320_v23  ;;  %2365 = vmatpush1.bf16.msra.mxu1 %v6321_v31  ;;  %v6404_v23 = vld [vmem:[#allocation61_spill] sm:$0xff]  ;;  %v6405_v31 = vld [vmem:[#allocation62_spill] sm:$0xff] }
 0x635   :  { %2325 = vmatprep.subr.bf16.mxu0 %v6322_v15  ;;  %2366 = vmatprep.subr.bf16.mxu1 %v6323_v53  ;;  %v6406_v15 = vld [vmem:[#allocation63_spill] sm:$0xff]  ;;  %v6407_v53 = vld [vmem:[#allocation64_spill] sm:$0xff] }
 0x638   :  { %2326 = vmatpush1.bf16.msra.mxu0 %v6324_v17  ;;  %2367 = vmatpush1.bf16.msra.mxu1 %v6325_v21  ;;  %v6408_v17 = vld [vmem:[#allocation10_spill] sm:$0xff]  ;;  %v6409_v21 = vld [vmem:[#allocation11_spill] sm:$0xff] }
 0x639   :  { %2327 = vmatprep.subr.bf16.mxu0 %v6326_v18  ;;  %2368 = vmatprep.subr.bf16.mxu1 %v6327_v27  ;;  %v6410_v18 = vld [vmem:[#allocation16_spill] sm:$0xff]  ;;  %v6411_v27 = vld [vmem:[#allocation70_spill] sm:$0xff] }
 0x63c   :  { %2328 = vmatpush1.bf16.msra.mxu0 %v6328_v62  ;;  %2369 = vmatpush1.bf16.msra.mxu1 %v6329_v44  ;;  %v6412_v62 = vld [vmem:[#allocation71_spill] sm:$0xff]  ;;  %v6413_v44 = vld [vmem:[#allocation72_spill] sm:$0xff] }
 0x63d   :  { %2329 = vmatprep.subr.bf16.mxu0 %v6330_v0  ;;  %2370 = vmatprep.subr.bf16.mxu1 %v6331_v35  ;;  %v6414_v0 = vld [vmem:[#allocation73_spill] sm:$0xff] }
 0x63e   :  { %v6415_v35 = vld [vmem:[#allocation17_spill] sm:$0xff] }
 0x640   :  { %2330 = vmatpush1.bf16.msra.mxu0 %v6332_v32  ;;  %2371 = vmatpush1.bf16.msra.mxu1 %v6333_v34  ;;  %v6416_v32 = vld [vmem:[#allocation18_spill] sm:$0xff]  ;;  %v6417_v34 = vld [vmem:[#allocation19_spill] sm:$0xff] }
 0x641   :  { %2331 = vmatprep.subr.bf16.mxu0 %v6334_v33  ;;  %2372 = vmatprep.subr.bf16.mxu1 %v6335_v30  ;;  %v6418_v33 = vld [vmem:[#allocation20_spill] sm:$0xff]  ;;  %v6419_v30 = vld [vmem:[#allocation21_spill] sm:$0xff] }
 0x644   :  { %2332 = vmatpush1.bf16.msra.mxu0 %v6336_v26  ;;  %2373 = vmatpush1.bf16.msra.mxu1 %v6337_v22 }
 0x645   :  { %2333 = vmatprep.subr.bf16.mxu0 %v6338_v25  ;;  %2374 = vmatprep.subr.bf16.mxu1 %v6339_v29  ;;  %v6420_v25 = vld [vmem:[#allocation12_spill] sm:$0xff] }
 0x648   :  { %2334 = vmatpush1.bf16.msra.mxu0 %v6340_v24  ;;  %2375 = vmatpush1.bf16.msra.mxu1 %v6341_v43 }
 0x649   :  { %2335 = vmatprep.subr.bf16.mxu0 %v6342_v20  ;;  %2376 = vmatprep.subr.bf16.mxu1 %v6343_v50  ;;  %v6421_v20 = vld [vmem:[#allocation13_spill] sm:$0xff] }
 0x64c   :  { %2336 = vmatpush1.bf16.msra.mxu0 %v6344_v51  ;;  %2377 = vmatpush1.bf16.msra.mxu1 %v6345_v55 }
 0x64d   :  { %2337 = vmatprep.subr.bf16.mxu0 %v6346_v56  ;;  %2378 = vmatprep.subr.bf16.mxu1 %v6347_v58 }
 0x650   :  { %2338 = vmatpush1.bf16.msra.mxu0 %v6348_v59  ;;  %2379 = vmatpush1.bf16.msra.mxu1 %v6349_v60 }
 0x651   :  { %2339 = vmatprep.subr.bf16.mxu0 %v6394_v1  ;;  %2380 = vmatprep.subr.bf16.mxu1 %v6395_v2 }
 0x654   :  { %2340 = vmatpush1.bf16.msra.mxu0 %v6396_v3  ;;  %2381 = vmatpush1.bf16.msra.mxu1 %v6397_v4  ;;  %v6423_v3 = vld [vmem:[#allocation15_spill] sm:$0xff] }
 0x655   :  { %2341 = vmatprep.subr.bf16.mxu0 %v6398_v5  ;;  %2382 = vmatprep.subr.bf16.mxu1 %v6399_v28 }
 0x658   :  { %2342 = vmatpush1.bf16.msra.mxu0 %v6400_v6  ;;  %2383 = vmatpush1.bf16.msra.mxu1 %v6401_v7 }
 0x659   :  { %2343 = vmatprep.subr.bf16.mxu0 %v6402_v9  ;;  %2384 = vmatprep.subr.bf16.mxu1 %v6403_v10 }
 0x65c   :  { %2344 = vmatpush1.bf16.msra.mxu0 %v6404_v23  ;;  %2385 = vmatpush1.bf16.msra.mxu1 %v6405_v31 }
 0x65d   :  { %2345 = vmatprep.subr.bf16.mxu0 %v6406_v15  ;;  %2386 = vmatprep.subr.bf16.mxu1 %v6407_v53 }
 0x660   :  { %2346 = vmatpush1.bf16.msra.mxu0 %v6408_v17  ;;  %2387 = vmatpush1.bf16.msra.mxu1 %v6409_v21 }
 0x661   :  { %2347 = vmatprep.subr.bf16.mxu0 %v6410_v18  ;;  %2388 = vmatprep.subr.bf16.mxu1 %v6411_v27 }
 0x664   :  { %2348 = vmatpush1.bf16.msra.mxu0 %v6412_v62  ;;  %2389 = vmatpush1.bf16.msra.mxu1 %v6413_v44  ;;  %v6424_v62 = vld [vmem:[#allocation82_spill] sm:$0xff] }
 0x665   :  { %2349 = vmatprep.subr.bf16.mxu0 %v6414_v0  ;;  %2390 = vmatprep.subr.bf16.mxu1 %v6415_v35  ;;  %v6425_v0 = vld [vmem:[#allocation83_spill] sm:$0xff] }
 0x668   :  { %2350 = vmatpush1.bf16.msra.mxu0 %v6416_v32  ;;  %2391 = vmatpush1.bf16.msra.mxu1 %v6417_v34 }
 0x669   :  { %2429 = vmatprep.subr.bf16.mxu0 %v6418_v33  ;;  %2470 = vmatprep.subr.bf16.mxu1 %v6419_v30 }
 0x6de   :  { %v2131_v26 = vpop.f32.mrb[52].mxu0  ;;  %v2172_v22 = vpop.f32.mrb[52].mxu1 }
 0x6df   :  { %v2132_v29 = vadd.f32 %v2131_v26, %v6420_v25  ;;  %v2133_v24 = vpop.f32.mrb[53].mxu0  ;;  %v2174_v43 = vpop.f32.mrb[53].mxu1  ;;  %v2173_v4 = vadd.f32 %v2172_v22, %v6423_v3  ;;  %v6426_v26 = vld [vmem:[#allocation84_spill] sm:$0xff] }
 0x6e0   :  { %v2134_v50 = vadd.f32 %v2133_v24, %v6421_v20  ;;  %v2135_v51 = vpop.f32.mrb[54].mxu0  ;;  %v2176_v55 = vpop.f32.mrb[54].mxu1  ;;  %v2175_v1 = vadd.f32 %v2174_v43, %v6422_v47 }
 0x6e1   :  { %v3147_v56 = vmul.f32 -1.442695, %v2132_v29  ;;  %v2136_v58 = vpop.f32.mrb[55].mxu0  ;;  %v2177_v59 = vpop.f32.mrb[55].mxu1  ;;  %v6427_v29 = vld [vmem:[#allocation85_spill] sm:$0xff] }
 0x6e2   :  { %v3148_v60 = vmul.f32 -1.442695, %v2134_v50  ;;  %v3149_v2 = vmul.f32 -1.442695, %v2175_v1 }
 0x6e3   :  { %3563 = vpow2.f32 %v3147_v56 }
 0x6e4   :  { %3565 = vpow2.f32 %v3148_v60 }
 0x6e5   :  { %3567 = vpow2.f32 %v3149_v2 }
 0x6e6   :  { %3569 = vtanh.f32 %v2173_v4 }
 0x6ed   :  { %v3564_v5 = vpop.eup %3563 }
 0x6ee   :  { %v3566_v28 = vpop.eup %3565  ;;  %v2182_v6 = vadd.f32 1.0, %v3564_v5 }
 0x6ef   :  { %v2188_v7 = vadd.f32 1.0, %v3566_v28  ;;  %v3568_v9 = vpop.eup %3567 }
 0x6f0   :  { %3571 = vrcp.f32 %v2182_v6  ;;  %v3570_v10 = vpop.eup %3569  ;;  %v2194_v53 = vadd.f32 1.0, %v3568_v9 }
 0x6f1   :  { %3573 = vrcp.f32 %v2188_v7 }
 0x6f2   :  { %3575 = vrcp.f32 %v2194_v53 }
 0x6fa   :  { %v3572_v23 = vpop.eup %3571 }
 0x6fb   :  { %v3574_v31 = vpop.eup %3573  ;;  %v2199_v15 = vmul.f32 %v3572_v23, %v3570_v10 }
 0x6fc   :  { %v2198_v17 = vmul.f32 %v3574_v31, %v5124_v40  ;;  %v3576_v58 = vpop.eup %3575 }
 0x6fe   :  { %v2241_v21 = vpop.f32.mrb[56].mxu0  ;;  %v2282_v18 = vpop.f32.mrb[56].mxu1  ;;  %v5304_v27 = vadd.f32 %v2199_v15, %v2198_v17 }
 0x6ff   :  { %v2289_v44 = vadd.f32 %v2241_v21, %v6424_v62  ;;  %v2291_v35 = vadd.f32 %v2282_v18, %v6425_v0  ;;  %v2243_v32 = vpop.f32.mrb[57].mxu0  ;;  %v2284_v34 = vpop.f32.mrb[57].mxu1  ;;  %v6429_v0 = vld [vmem:[#allocation23_spill] sm:$0xff] }
 0x700   :  { %v2290_v22 = vadd.f32 %v2243_v32, %v6426_v26  ;;  %v2292_v24 = vadd.f32 %v2284_v34, %v6427_v29  ;;  %v2245_v43 = vpop.f32.mrb[58].mxu0  ;;  %v2286_v50 = vpop.f32.mrb[58].mxu1  ;;  %3577 = vtanh.f32 %v5304_v27  ;;  %v6431_v32 = vld [vmem:[#allocation25_spill] sm:$0xff]  ;;  %v6432_v34 = vld [vmem:[#allocation74_spill] sm:$0xff]  ;;  %v6433_v26 = vld [vmem:[#allocation75_spill] sm:$0xff] }
 0x701   :  { %v3150_v40 = vmul.f32 -1.442695, %v2289_v44  ;;  %v2246_v51 = vpop.f32.mrb[59].mxu0  ;;  %v2287_v55 = vpop.f32.mrb[59].mxu1  ;;  %v6435_v29 = vld [vmem:[#allocation77_spill] sm:$0xff]  ;;  %v6437_v43 = vld [vmem:[#allocation27_spill] sm:$0xff] }
 0x702   :  { %v3151_v56 = vmul.f32 -1.442695, %v2290_v22  ;;  %v3152_v60 = vmul.f32 -1.442695, %v2292_v24  ;;  %v6434_v22 = vld [vmem:[#allocation76_spill] sm:$0xff]  ;;  %v6436_v24 = vld [vmem:[#allocation26_spill] sm:$0xff] }
 0x703   :  { %3579 = vpow2.f32 %v3150_v40  ;;  %v5347_v50 = vld [vmem:[#allocation7 + $0x4] ss:$16 sps:$4 sm:$0xff]   ;;  %v5350_v40 = vld [vmem:[#allocation7 + $0xc] ss:$16 sps:$4 sm:$0xff]   ;;  %v5353_v51 = vld [vmem:[#allocation7] ss:$16 sps:$4 sm:$0xff]  }
 0x704   :  { %3581 = vpow2.f32 %v3151_v56  ;;  %v5356_v55 = vld [vmem:[#allocation7 + $0x8] ss:$16 sps:$4 sm:$0xff]   ;;  %v5359_v56 = vld [vmem:[#allocation7 + $0x24] ss:$16 sps:$4 sm:$0xff]  }
 0x705   :  { %3583 = vpow2.f32 %v3152_v60  ;;  %v5368_v60 = vld [vmem:[#allocation7 + $0x28] ss:$16 sps:$4 sm:$0xff]  }
 0x706   :  { %3585 = vtanh.f32 %v2291_v35  ;;  %v6430_v35 = vld [vmem:[#allocation24_spill] sm:$0xff] }
 0x70a   :  { %v3578_v59 = vpop.eup %3577 }
 0x70b   :  { %v2202_v1 = vmul.f32 %v3578_v59, %v3576_v58  ;;  %v5362_v58 = vld [vmem:[#allocation7 + $0x2c] ss:$16 sps:$4 sm:$0xff]   ;;  %v5365_v59 = vld [vmem:[#allocation7 + $0x20] ss:$16 sps:$4 sm:$0xff]  }
 0x70d   :  { %v3580_v2 = vpop.eup %3579  ;;  %v2318_v4 = vpack.c.bf16 %v2202_v1, %v2202_v1  ;;  %v5371_v1 = vld [vmem:[#allocation7 + $0x44] ss:$16 sps:$4 sm:$0xff]  }
 0x70e   :  { %v3582_v5 = vpop.eup %3581  ;;  %v2296_v28 = vadd.f32 1.0, %v3580_v2  ;;  %v5374_v2 = vld [vmem:[#allocation7 + $0x4c] ss:$16 sps:$4 sm:$0xff]  }
 0x70f   :  { %v2302_v6 = vadd.f32 1.0, %v3582_v5  ;;  %2351 = vmatprep.mubr.bf16.mxu0 %v2318_v4  ;;  %2392 = vmatprep.mubr.bf16.mxu1 %v2318_v4  ;;  %v3584_v7 = vpop.eup %3583  ;;  %v5377_v4 = vld [vmem:[#allocation7 + $0x40] ss:$16 sps:$4 sm:$0xff]   ;;  %v5380_v5 = vld [vmem:[#allocation7 + $0x48] ss:$16 sps:$4 sm:$0xff]  }
 0x710   :  { %3587 = vrcp.f32 %v2296_v28  ;;  %v3586_v9 = vpop.eup %3585  ;;  %v2308_v15 = vadd.f32 1.0, %v3584_v7  ;;  %6438 = vst [vmem:[#allocation28_spill] sm:$0xff] %v5377_v4  ;;  %6439 = vst [vmem:[#allocation29_spill] sm:$0xff] %v5380_v5  ;;  %v5383_v28 = vld [vmem:[#allocation7 + $0x64] ss:$16 sps:$4 sm:$0xff]  }
 0x711   :  { %3589 = vrcp.f32 %v2302_v6  ;;  %6440 = vst [vmem:[#allocation30_spill] sm:$0xff] %v5383_v28  ;;  %v5386_v6 = vld [vmem:[#allocation7 + $0x6c] ss:$16 sps:$4 sm:$0xff]   ;;  %v5389_v7 = vld [vmem:[#allocation7 + $0x60] ss:$16 sps:$4 sm:$0xff]  }
 0x712   :  { %3591 = vrcp.f32 %v2308_v15  ;;  %6441 = vst [vmem:[#allocation31_spill] sm:$0xff] %v5386_v6  ;;  %6442 = vst [vmem:[#allocation32_spill] sm:$0xff] %v5389_v7  ;;  %v5404_v15 = vld [vmem:[#allocation7 + $0x88] ss:$16 sps:$4 sm:$0xff]  }
 0x713   :  { %6447 = vst [vmem:[#allocation37_spill] sm:$0xff] %v5404_v15 }
 0x71a   :  { %v3588_v10 = vpop.eup %3587 }
 0x71b   :  { %v3590_v23 = vpop.eup %3589  ;;  %v2313_v31 = vmul.f32 %v3588_v10, %v3586_v9  ;;  %v5392_v9 = vld [vmem:[#allocation7 + $0x68] ss:$16 sps:$4 sm:$0xff]   ;;  %v5395_v10 = vld [vmem:[#allocation7 + $0x84] ss:$16 sps:$4 sm:$0xff]  }
 0x71c   :  { %v2312_v53 = vmul.f32 %v3590_v23, %v5132_v49  ;;  %v3592_v21 = vpop.eup %3591  ;;  %v6428_v49 = vld [vmem:[#allocation22_spill] sm:$0xff]  ;;  %6443 = vst [vmem:[#allocation33_spill] sm:$0xff] %v5392_v9  ;;  %6444 = vst [vmem:[#allocation34_spill] sm:$0xff] %v5395_v10  ;;  %v5398_v23 = vld [vmem:[#allocation7 + $0x8c] ss:$16 sps:$4 sm:$0xff]  }
 0x71d   :  { %6445 = vst [vmem:[#allocation35_spill] sm:$0xff] %v5398_v23 }
 0x71e   :  { %v5312_v17 = vadd.f32 %v2313_v31, %v2312_v53  ;;  %v5401_v31 = vld [vmem:[#allocation7 + $0x80] ss:$16 sps:$4 sm:$0xff]   ;;  %v5407_v53 = vld [vmem:[#allocation7 + $0xa4] ss:$16 sps:$4 sm:$0xff]  }
 0x71f   :  { %6446 = vst [vmem:[#allocation36_spill] sm:$0xff] %v5401_v31  ;;  %6448 = vst [vmem:[#allocation38_spill] sm:$0xff] %v5407_v53 }
 0x720   :  { %3593 = vtanh.f32 %v5312_v17 }
 0x72a   :  { %v3594_v18 = vpop.eup %3593 }
 0x72b   :  { %v2316_v62 = vmul.f32 %v3594_v18, %v3592_v21  ;;  %v5410_v21 = vld [vmem:[#allocation7 + $0xac] ss:$16 sps:$4 sm:$0xff]   ;;  %v5413_v18 = vld [vmem:[#allocation7 + $0xa0] ss:$16 sps:$4 sm:$0xff]  }
 0x72c   :  { %6449 = vst [vmem:[#allocation39_spill] sm:$0xff] %v5410_v21  ;;  %6450 = vst [vmem:[#allocation40_spill] sm:$0xff] %v5413_v18 }
 0x72d   :  { %v2317_v44 = vpack.c.bf16 %v2316_v62, %v2316_v62  ;;  %v5416_v62 = vld [vmem:[#allocation7 + $0xa8] ss:$16 sps:$4 sm:$0xff]  }
 0x72e   :  { %6451 = vst [vmem:[#allocation65_spill] sm:$0xff] %v5416_v62 }
 0x72f   :  { %2352 = vmatmul.mubr.bf16.vlgmr.msra.gmra.mrb[60].mxu0 %v2317_v44  ;;  %2393 = vmatmul.mubr.bf16.vlgmr.msra.gmra.mrb[60].mxu1 %v2317_v44 }
 0x730   :  { %2430 = vmatpush1.bf16.msra.mxu0 %v5139_v8  ;;  %2471 = vmatpush1.bf16.msra.mxu1 %v5142_v45 }
 0x731   :  { %2431 = vmatprep.subr.bf16.mxu0 %v5145_v46  ;;  %2472 = vmatprep.subr.bf16.mxu1 %v5148_v42 }
 0x732   :  { %2461 = vmatprep.mubr.bf16.mxu0 %v6137_v19  ;;  %2502 = vmatprep.mubr.bf16.mxu1 %v6137_v19 }
 0x734   :  { %2432 = vmatpush1.bf16.msra.mxu0 %v5153_v48  ;;  %2473 = vmatpush1.bf16.msra.mxu1 %v5156_v39 }
 0x735   :  { %2433 = vmatprep.subr.bf16.mxu0 %v5159_v52  ;;  %2474 = vmatprep.subr.bf16.mxu1 %v5162_v13 }
 0x738   :  { %2434 = vmatpush1.bf16.msra.mxu0 %v5165_v63  ;;  %2475 = vmatpush1.bf16.msra.mxu1 %v5168_v61 }
 0x739   :  { %2435 = vmatprep.subr.bf16.mxu0 %v5171_v38  ;;  %2476 = vmatprep.subr.bf16.mxu1 %v5174_v41 }
 0x73c   :  { %2436 = vmatpush1.bf16.msra.mxu0 %v5177_v14  ;;  %2477 = vmatpush1.bf16.msra.mxu1 %v5180_v16 }
 0x73d   :  { %2437 = vmatprep.subr.bf16.mxu0 %v6428_v49  ;;  %2478 = vmatprep.subr.bf16.mxu1 %v6429_v0 }
 0x740   :  { %2438 = vmatpush1.bf16.msra.mxu0 %v6430_v35  ;;  %2479 = vmatpush1.bf16.msra.mxu1 %v6431_v32 }
 0x741   :  { %2439 = vmatprep.subr.bf16.mxu0 %v6432_v34  ;;  %2480 = vmatprep.subr.bf16.mxu1 %v6433_v26 }
 0x744   :  { %2440 = vmatpush1.bf16.msra.mxu0 %v6434_v22  ;;  %2481 = vmatpush1.bf16.msra.mxu1 %v6435_v29 }
 0x745   :  { %2441 = vmatprep.subr.bf16.mxu0 %v6436_v24  ;;  %2482 = vmatprep.subr.bf16.mxu1 %v6437_v43 }
 0x748   :  { %2442 = vmatpush1.bf16.msra.mxu0 %v5213_v36  ;;  %2483 = vmatpush1.bf16.msra.mxu1 %v5216_v54 }
 0x749   :  { %2443 = vmatprep.subr.bf16.mxu0 %v5219_v37  ;;  %2484 = vmatprep.subr.bf16.mxu1 %v5222_v12 }
 0x74c   :  { %2444 = vmatpush1.bf16.msra.mxu0 %v5225_v57  ;;  %2485 = vmatpush1.bf16.msra.mxu1 %v5228_v11 }
 0x74d   :  { %2541 = vmatprep.subr.bf16.mxu0 %v5347_v50  ;;  %2582 = vmatprep.subr.bf16.mxu1 %v5350_v40 }
 0x74f   :  { %2462 = vmatmul.mubr.bf16.vlgmr.msra.gmra.mrb[64].mxu0 %v2317_v44  ;;  %2503 = vmatmul.mubr.bf16.vlgmr.msra.gmra.mrb[64].mxu1 %v2317_v44  ;;  %v5419_v44 = vld [vmem:[#allocation7 + $0xc4] ss:$16 sps:$4 sm:$0xff]  }
 0x750   :  { %2542 = vmatpush1.bf16.msra.mxu0 %v5353_v51  ;;  %2583 = vmatpush1.bf16.msra.mxu1 %v5356_v55  ;;  %6452 = vst [vmem:[#allocation66_spill] sm:$0xff] %v5419_v44 }
 0x751   :  { %2543 = vmatprep.subr.bf16.mxu0 %v5359_v56  ;;  %2584 = vmatprep.subr.bf16.mxu1 %v5362_v58 }
 0x754   :  { %2544 = vmatpush1.bf16.msra.mxu0 %v5365_v59  ;;  %2585 = vmatpush1.bf16.msra.mxu1 %v5368_v60 }
 0x755   :  { %2545 = vmatprep.subr.bf16.mxu0 %v5371_v1  ;;  %2586 = vmatprep.subr.bf16.mxu1 %v5374_v2 }
 0x758   :  { %2546 = vmatpush1.bf16.msra.mxu0 %v5377_v4  ;;  %2587 = vmatpush1.bf16.msra.mxu1 %v5380_v5 }
 0x759   :  { %2547 = vmatprep.subr.bf16.mxu0 %v5383_v28  ;;  %2588 = vmatprep.subr.bf16.mxu1 %v5386_v6 }
 0x75c   :  { %2548 = vmatpush1.bf16.msra.mxu0 %v5389_v7  ;;  %2589 = vmatpush1.bf16.msra.mxu1 %v5392_v9 }
 0x75d   :  { %2549 = vmatprep.subr.bf16.mxu0 %v5395_v10  ;;  %2590 = vmatprep.subr.bf16.mxu1 %v5398_v23 }
 0x760   :  { %2550 = vmatpush1.bf16.msra.mxu0 %v5401_v31  ;;  %2591 = vmatpush1.bf16.msra.mxu1 %v5404_v15  ;;  %v5422_v15 = vld [vmem:[#allocation7 + $0xcc] ss:$16 sps:$4 sm:$0xff]  }
 0x761   :  { %2551 = vmatprep.subr.bf16.mxu0 %v5407_v53  ;;  %2592 = vmatprep.subr.bf16.mxu1 %v5410_v21  ;;  %6453 = vst [vmem:[#allocation67_spill] sm:$0xff] %v5422_v15  ;;  %v5425_v53 = vld [vmem:[#allocation7 + $0xc0] ss:$16 sps:$4 sm:$0xff]   ;;  %v5428_v21 = vld [vmem:[#allocation7 + $0xc8] ss:$16 sps:$4 sm:$0xff]  }
 0x762   :  { %6454 = vst [vmem:[#allocation68_spill] sm:$0xff] %v5425_v53  ;;  %6455 = vst [vmem:[#allocation69_spill] sm:$0xff] %v5428_v21 }
 0x764   :  { %2552 = vmatpush1.bf16.msra.mxu0 %v5413_v18  ;;  %2593 = vmatpush1.bf16.msra.mxu1 %v5416_v62  ;;  %v5431_v18 = vld [vmem:[#allocation7 + $0xe4] ss:$16 sps:$4 sm:$0xff]   ;;  %v5434_v62 = vld [vmem:[#allocation7 + $0xec] ss:$16 sps:$4 sm:$0xff]  }
 0x765   :  { %2553 = vmatprep.subr.bf16.mxu0 %v5419_v44  ;;  %2594 = vmatprep.subr.bf16.mxu1 %v5422_v15  ;;  %6456 = vst [vmem:[#allocation41_spill] sm:$0xff] %v5431_v18  ;;  %6457 = vst [vmem:[#allocation42_spill] sm:$0xff] %v5434_v62  ;;  %v5437_v44 = vld [vmem:[#allocation7 + $0xe0] ss:$16 sps:$4 sm:$0xff]   ;;  %v5440_v15 = vld [vmem:[#allocation7 + $0xe8] ss:$16 sps:$4 sm:$0xff]  }
 0x766   :  { %6458 = vst [vmem:[#allocation43_spill] sm:$0xff] %v5437_v44  ;;  %6459 = vst [vmem:[#allocation44_spill] sm:$0xff] %v5440_v15 }
 0x768   :  { %2554 = vmatpush1.bf16.msra.mxu0 %v5425_v53  ;;  %2595 = vmatpush1.bf16.msra.mxu1 %v5428_v21  ;;  %v5443_v53 = vld [vmem:[#allocation7 + $0x104] ss:$16 sps:$4 sm:$0xff]   ;;  %v5446_v21 = vld [vmem:[#allocation7 + $0x10c] ss:$16 sps:$4 sm:$0xff]  }
 0x769   :  { %2555 = vmatprep.subr.bf16.mxu0 %v5431_v18  ;;  %2596 = vmatprep.subr.bf16.mxu1 %v5434_v62  ;;  %6460 = vst [vmem:[#allocation45_spill] sm:$0xff] %v5443_v53  ;;  %6461 = vst [vmem:[#allocation46_spill] sm:$0xff] %v5446_v21  ;;  %v5449_v18 = vld [vmem:[#allocation7 + $0x100] ss:$16 sps:$4 sm:$0xff]   ;;  %v5452_v62 = vld [vmem:[#allocation7 + $0x108] ss:$16 sps:$4 sm:$0xff]  }
 0x76a   :  { %6462 = vst [vmem:[#allocation47_spill] sm:$0xff] %v5449_v18  ;;  %6463 = vst [vmem:[#allocation48_spill] sm:$0xff] %v5452_v62 }
 0x76c   :  { %2556 = vmatpush1.bf16.msra.mxu0 %v5437_v44  ;;  %2597 = vmatpush1.bf16.msra.mxu1 %v5440_v15  ;;  %v5455_v44 = vld [vmem:[#allocation7 + $0x124] ss:$16 sps:$4 sm:$0xff]   ;;  %v5458_v15 = vld [vmem:[#allocation7 + $0x12c] ss:$16 sps:$4 sm:$0xff]  }
 0x76d   :  { %2557 = vmatprep.subr.bf16.mxu0 %v5443_v53  ;;  %2598 = vmatprep.subr.bf16.mxu1 %v5446_v21  ;;  %6464 = vst [vmem:[#allocation49_spill] sm:$0xff] %v5455_v44  ;;  %6465 = vst [vmem:[#allocation50_spill] sm:$0xff] %v5458_v15  ;;  %v5461_v53 = vld [vmem:[#allocation7 + $0x120] ss:$16 sps:$4 sm:$0xff]   ;;  %v5464_v21 = vld [vmem:[#allocation7 + $0x128] ss:$16 sps:$4 sm:$0xff]  }
 0x76e   :  { %6466 = vst [vmem:[#allocation78_spill] sm:$0xff] %v5461_v53  ;;  %6467 = vst [vmem:[#allocation79_spill] sm:$0xff] %v5464_v21 }
 0x770   :  { %2558 = vmatpush1.bf16.msra.mxu0 %v5449_v18  ;;  %2599 = vmatpush1.bf16.msra.mxu1 %v5452_v62  ;;  %v5467_v18 = vld [vmem:[#allocation7 + $0x144] ss:$16 sps:$4 sm:$0xff]   ;;  %v5470_v62 = vld [vmem:[#allocation7 + $0x14c] ss:$16 sps:$4 sm:$0xff]  }
 0x771   :  { %2559 = vmatprep.subr.bf16.mxu0 %v5455_v44  ;;  %2600 = vmatprep.subr.bf16.mxu1 %v5458_v15  ;;  %6468 = vst [vmem:[#allocation80_spill] sm:$0xff] %v5467_v18  ;;  %6469 = vst [vmem:[#allocation81_spill] sm:$0xff] %v5470_v62  ;;  %v5473_v44 = vld [vmem:[#allocation7 + $0x140] ss:$16 sps:$4 sm:$0xff]   ;;  %v5476_v15 = vld [vmem:[#allocation7 + $0x148] ss:$16 sps:$4 sm:$0xff]  }
 0x772   :  { %6470 = vst [vmem:[#allocation51_spill] sm:$0xff] %v5473_v44  ;;  %6471 = vst [vmem:[#allocation52_spill] sm:$0xff] %v5476_v15 }
 0x774   :  { %2560 = vmatpush1.bf16.msra.mxu0 %v5461_v53  ;;  %2601 = vmatpush1.bf16.msra.mxu1 %v5464_v21  ;;  %v5479_v53 = vld [vmem:[#allocation7 + $0x164] ss:$16 sps:$4 sm:$0xff]   ;;  %v5482_v21 = vld [vmem:[#allocation7 + $0x16c] ss:$16 sps:$4 sm:$0xff]  }
 0x775   :  { %2561 = vmatprep.subr.bf16.mxu0 %v5467_v18  ;;  %2602 = vmatprep.subr.bf16.mxu1 %v5470_v62  ;;  %6472 = vst [vmem:[#allocation53_spill] sm:$0xff] %v5479_v53  ;;  %6473 = vst [vmem:[#allocation54_spill] sm:$0xff] %v5482_v21  ;;  %v5485_v18 = vld [vmem:[#allocation7 + $0x160] ss:$16 sps:$4 sm:$0xff]   ;;  %v5488_v62 = vld [vmem:[#allocation7 + $0x168] ss:$16 sps:$4 sm:$0xff]  }
 0x776   :  { %6474 = vst [vmem:[#allocation55_spill] sm:$0xff] %v5485_v18  ;;  %6475 = vst [vmem:[#allocation56_spill] sm:$0xff] %v5488_v62 }
 0x778   :  { %2562 = vmatpush1.bf16.msra.mxu0 %v5473_v44  ;;  %2603 = vmatpush1.bf16.msra.mxu1 %v5476_v15  ;;  %v5491_v44 = vld [vmem:[#allocation7 + $0x184] ss:$16 sps:$4 sm:$0xff]   ;;  %v5494_v15 = vld [vmem:[#allocation7 + $0x18c] ss:$16 sps:$4 sm:$0xff]  }
 0x779   :  { %2563 = vmatprep.subr.bf16.mxu0 %v5479_v53  ;;  %2604 = vmatprep.subr.bf16.mxu1 %v5482_v21  ;;  %6476 = vst [vmem:[#allocation57_spill] sm:$0xff] %v5491_v44  ;;  %6477 = vst [vmem:[#allocation58_spill] sm:$0xff] %v5494_v15  ;;  %v5497_v53 = vld [vmem:[#allocation7 + $0x180] ss:$16 sps:$4 sm:$0xff]   ;;  %v5500_v21 = vld [vmem:[#allocation7 + $0x188] ss:$16 sps:$4 sm:$0xff]  }
 0x77a   :  { %6478 = vst [vmem:[#allocation59_spill] sm:$0xff] %v5497_v53  ;;  %6479 = vst [vmem:[#allocation60_spill] sm:$0xff] %v5500_v21 }
 0x77c   :  { %2564 = vmatpush1.bf16.msra.mxu0 %v5485_v18  ;;  %2605 = vmatpush1.bf16.msra.mxu1 %v5488_v62  ;;  %v5503_v18 = vld [vmem:[#allocation7 + $0x1a4] ss:$16 sps:$4 sm:$0xff]   ;;  %v5506_v62 = vld [vmem:[#allocation7 + $0x1ac] ss:$16 sps:$4 sm:$0xff]  }
 0x77d   :  { %2565 = vmatprep.subr.bf16.mxu0 %v5491_v44  ;;  %2606 = vmatprep.subr.bf16.mxu1 %v5494_v15  ;;  %6480 = vst [vmem:[#allocation61_spill] sm:$0xff] %v5503_v18  ;;  %6481 = vst [vmem:[#allocation62_spill] sm:$0xff] %v5506_v62  ;;  %v5509_v44 = vld [vmem:[#allocation7 + $0x1a0] ss:$16 sps:$4 sm:$0xff]   ;;  %v5512_v15 = vld [vmem:[#allocation7 + $0x1a8] ss:$16 sps:$4 sm:$0xff]  }
 0x77e   :  { %6482 = vst [vmem:[#allocation63_spill] sm:$0xff] %v5509_v44  ;;  %6483 = vst [vmem:[#allocation64_spill] sm:$0xff] %v5512_v15 }
 0x780   :  { %2566 = vmatpush1.bf16.msra.mxu0 %v5497_v53  ;;  %2607 = vmatpush1.bf16.msra.mxu1 %v5500_v21  ;;  %v5515_v53 = vld [vmem:[#allocation7 + $0x1c4] ss:$16 sps:$4 sm:$0xff]   ;;  %v5518_v21 = vld [vmem:[#allocation7 + $0x1cc] ss:$16 sps:$4 sm:$0xff]  }
 0x781   :  { %2567 = vmatprep.subr.bf16.mxu0 %v5503_v18  ;;  %2608 = vmatprep.subr.bf16.mxu1 %v5506_v62  ;;  %6484 = vst [vmem:[#allocation10_spill] sm:$0xff] %v5515_v53  ;;  %6485 = vst [vmem:[#allocation11_spill] sm:$0xff] %v5518_v21  ;;  %v5521_v18 = vld [vmem:[#allocation7 + $0x1c0] ss:$16 sps:$4 sm:$0xff]   ;;  %v5524_v62 = vld [vmem:[#allocation7 + $0x1c8] ss:$16 sps:$4 sm:$0xff]  }
 0x782   :  { %6486 = vst [vmem:[#allocation16_spill] sm:$0xff] %v5521_v18  ;;  %6487 = vst [vmem:[#allocation70_spill] sm:$0xff] %v5524_v62 }
 0x784   :  { %2568 = vmatpush1.bf16.msra.mxu0 %v5509_v44  ;;  %2609 = vmatpush1.bf16.msra.mxu1 %v5512_v15  ;;  %v5527_v44 = vld [vmem:[#allocation7 + $0x1e4] ss:$16 sps:$4 sm:$0xff]   ;;  %v5530_v15 = vld [vmem:[#allocation7 + $0x1ec] ss:$16 sps:$4 sm:$0xff]  }
 0x785   :  { %2569 = vmatprep.subr.bf16.mxu0 %v5515_v53  ;;  %2610 = vmatprep.subr.bf16.mxu1 %v5518_v21  ;;  %6488 = vst [vmem:[#allocation71_spill] sm:$0xff] %v5527_v44  ;;  %6489 = vst [vmem:[#allocation72_spill] sm:$0xff] %v5530_v15  ;;  %v5533_v53 = vld [vmem:[#allocation7 + $0x1e0] ss:$16 sps:$4 sm:$0xff]   ;;  %v5536_v21 = vld [vmem:[#allocation7 + $0x1e8] ss:$16 sps:$4 sm:$0xff]  }
 0x786   :  { %6490 = vst [vmem:[#allocation73_spill] sm:$0xff] %v5533_v53  ;;  %6491 = vst [vmem:[#allocation17_spill] sm:$0xff] %v5536_v21 }
 0x788   :  { %2570 = vmatpush1.bf16.msra.mxu0 %v5521_v18  ;;  %2611 = vmatpush1.bf16.msra.mxu1 %v5524_v62 }
 0x789   :  { %2571 = vmatprep.subr.bf16.mxu0 %v5527_v44  ;;  %2612 = vmatprep.subr.bf16.mxu1 %v5530_v15 }
 0x78c   :  { %2572 = vmatpush1.bf16.msra.mxu0 %v5533_v53  ;;  %2613 = vmatpush1.bf16.msra.mxu1 %v5536_v21 }
 0x78d   :  { %2651 = vmatprep.subr.bf16.mxu0 %v6418_v33  ;;  %2692 = vmatprep.subr.bf16.mxu1 %v6419_v30 }
 0x802   :  { %v2353_v62 = vpop.f32.mrb[60].mxu0  ;;  %v2394_v18 = vpop.f32.mrb[60].mxu1 }
 0x803   :  { %v2354_v44 = vadd.f32 %v2353_v62, %v6420_v25  ;;  %v2355_v31 = vpop.f32.mrb[61].mxu0  ;;  %v2396_v23 = vpop.f32.mrb[61].mxu1  ;;  %v2395_v30 = vadd.f32 %v2394_v18, %v6423_v3  ;;  %v6492_v18 = vld [vmem:[#allocation86_spill] sm:$0xff]  ;;  %v6495_v3 = vld [vmem:[#allocation89_spill] sm:$0xff] }
 0x804   :  { %v2356_v15 = vadd.f32 %v2355_v31, %v6421_v20  ;;  %v2357_v10 = vpop.f32.mrb[62].mxu0  ;;  %v2398_v9 = vpop.f32.mrb[62].mxu1  ;;  %v2397_v33 = vadd.f32 %v2396_v23, %v6422_v47 }
 0x805   :  { %v3153_v7 = vmul.f32 -1.442695, %v2354_v44  ;;  %v2358_v53 = vpop.f32.mrb[63].mxu0  ;;  %v2399_v6 = vpop.f32.mrb[63].mxu1 }
 0x806   :  { %v3154_v28 = vmul.f32 -1.442695, %v2356_v15  ;;  %v3155_v21 = vmul.f32 -1.442695, %v2397_v33 }
 0x807   :  { %3595 = vpow2.f32 %v3153_v7 }
 0x808   :  { %3597 = vpow2.f32 %v3154_v28 }
 0x809   :  { %3599 = vpow2.f32 %v3155_v21  ;;  %v6493_v21 = vld [vmem:[#allocation87_spill] sm:$0xff] }
 0x80a   :  { %3601 = vtanh.f32 %v2395_v30 }
 0x811   :  { %v3596_v5 = vpop.eup %3595 }
 0x812   :  { %v3598_v4 = vpop.eup %3597  ;;  %v2404_v62 = vadd.f32 1.0, %v3596_v5 }
 0x813   :  { %v2410_v25 = vadd.f32 1.0, %v3598_v4  ;;  %v3600_v9 = vpop.eup %3599 }
 0x814   :  { %3603 = vrcp.f32 %v2404_v62  ;;  %v3602_v10 = vpop.eup %3601  ;;  %v2416_v7 = vadd.f32 1.0, %v3600_v9 }
 0x815   :  { %3605 = vrcp.f32 %v2410_v25  ;;  %v6494_v25 = vld [vmem:[#allocation88_spill] sm:$0xff] }
 0x816   :  { %3607 = vrcp.f32 %v2416_v7 }
 0x81e   :  { %v3604_v31 = vpop.eup %3603 }
 0x81f   :  { %v3606_v6 = vpop.eup %3605  ;;  %v2421_v15 = vmul.f32 %v3604_v31, %v3602_v10 }
 0x820   :  { %v2420_v28 = vmul.f32 %v3606_v6, %v5304_v27 }
 0x822   :  { %v2463_v23 = vpop.f32.mrb[64].mxu0  ;;  %v2504_v53 = vpop.f32.mrb[64].mxu1  ;;  %v5546_v44 = vadd.f32 %v2421_v15, %v2420_v28 }
 0x823   :  { %v2511_v5 = vadd.f32 %v2463_v23, %v6492_v18  ;;  %v2513_v33 = vadd.f32 %v2504_v53, %v6493_v21  ;;  %v2465_v4 = vpop.f32.mrb[65].mxu0  ;;  %v2506_v30 = vpop.f32.mrb[65].mxu1 }
 0x824   :  { %v2512_v62 = vadd.f32 %v2465_v4, %v6494_v25  ;;  %v2514_v47 = vadd.f32 %v2506_v30, %v6495_v3  ;;  %v2467_v20 = vpop.f32.mrb[66].mxu0  ;;  %v2508_v10 = vpop.f32.mrb[66].mxu1  ;;  %3609 = vtanh.f32 %v5546_v44 }
 0x825   :  { %v3156_v27 = vmul.f32 -1.442695, %v2511_v5  ;;  %v2468_v9 = vpop.f32.mrb[67].mxu0  ;;  %v2509_v31 = vpop.f32.mrb[67].mxu1 }
 0x826   :  { %v3157_v6 = vmul.f32 -1.442695, %v2512_v62  ;;  %v3608_v15 = vpop.eup %3607  ;;  %v3158_v28 = vmul.f32 -1.442695, %v2514_v47 }
 0x827   :  { %3611 = vpow2.f32 %v3156_v27 }
 0x828   :  { %3613 = vpow2.f32 %v3157_v6 }
 0x829   :  { %3615 = vpow2.f32 %v3158_v28  ;;  %v6540_v28 = vld [vmem:[#allocation63_spill] sm:$0xff] }
 0x82a   :  { %3617 = vtanh.f32 %v2513_v33 }
 0x82e   :  { %v3610_v7 = vpop.eup %3609 }
 0x82f   :  { %v2424_v23 = vmul.f32 %v3610_v7, %v3608_v15  ;;  %v6538_v15 = vld [vmem:[#allocation61_spill] sm:$0xff]  ;;  %v6539_v7 = vld [vmem:[#allocation62_spill] sm:$0xff] }
 0x831   :  { %v3612_v53 = vpop.eup %3611  ;;  %v2540_v18 = vpack.c.bf16 %v2424_v23, %v2424_v23  ;;  %v6541_v23 = vld [vmem:[#allocation64_spill] sm:$0xff] }
 0x832   :  { %v3614_v21 = vpop.eup %3613  ;;  %v2518_v4 = vadd.f32 1.0, %v3612_v53  ;;  %v6542_v53 = vld [vmem:[#allocation10_spill] sm:$0xff] }
 0x833   :  { %v2524_v20 = vadd.f32 1.0, %v3614_v21  ;;  %2573 = vmatprep.mubr.bf16.mxu0 %v2540_v18  ;;  %2614 = vmatprep.mubr.bf16.mxu1 %v2540_v18  ;;  %v3616_v3 = vpop.eup %3615  ;;  %v6543_v18 = vld [vmem:[#allocation11_spill] sm:$0xff]  ;;  %v6544_v21 = vld [vmem:[#allocation16_spill] sm:$0xff] }
 0x834   :  { %3619 = vrcp.f32 %v2518_v4  ;;  %v3618_v5 = vpop.eup %3617  ;;  %v2530_v10 = vadd.f32 1.0, %v3616_v3  ;;  %v6545_v4 = vld [vmem:[#allocation70_spill] sm:$0xff]  ;;  %v6547_v3 = vld [vmem:[#allocation72_spill] sm:$0xff] }
 0x835   :  { %3621 = vrcp.f32 %v2524_v20  ;;  %v6546_v20 = vld [vmem:[#allocation71_spill] sm:$0xff] }
 0x836   :  { %3623 = vrcp.f32 %v2530_v10  ;;  %v6550_v10 = vld [vmem:[#allocation12_spill] sm:$0xff] }
 0x83e   :  { %v3620_v30 = vpop.eup %3619 }
 0x83f   :  { %v3622_v25 = vpop.eup %3621  ;;  %v2535_v62 = vmul.f32 %v3620_v30, %v3618_v5  ;;  %v6548_v5 = vld [vmem:[#allocation73_spill] sm:$0xff] }
 0x840   :  { %v2534_v47 = vmul.f32 %v3622_v25, %v5312_v17  ;;  %v3624_v9 = vpop.eup %3623  ;;  %v6517_v17 = vld [vmem:[#allocation44_spill] sm:$0xff]  ;;  %v6549_v30 = vld [vmem:[#allocation17_spill] sm:$0xff] }
 0x842   :  { %v5554_v27 = vadd.f32 %v2535_v62, %v2534_v47 }
 0x844   :  { %3625 = vtanh.f32 %v5554_v27 }
 0x84e   :  { %v3626_v33 = vpop.eup %3625 }
 0x84f   :  { %v2538_v31 = vmul.f32 %v3626_v33, %v3624_v9 }
 0x851   :  { %v2539_v6 = vpack.c.bf16 %v2538_v31, %v2538_v31  ;;  %v6551_v31 = vld [vmem:[#allocation13_spill] sm:$0xff] }
 0x853   :  { %2574 = vmatmul.mubr.bf16.vlgmr.msra.gmra.mrb[68].mxu0 %v2539_v6  ;;  %2615 = vmatmul.mubr.bf16.vlgmr.msra.gmra.mrb[68].mxu1 %v2539_v6 }
 0x854   :  { %2652 = vmatpush1.bf16.msra.mxu0 %v5139_v8  ;;  %2693 = vmatpush1.bf16.msra.mxu1 %v5142_v45  ;;  %v6497_v8 = vld [vmem:[#allocation29_spill] sm:$0xff]  ;;  %v6498_v45 = vld [vmem:[#allocation30_spill] sm:$0xff] }
 0x855   :  { %2653 = vmatprep.subr.bf16.mxu0 %v5145_v46  ;;  %2694 = vmatprep.subr.bf16.mxu1 %v5148_v42  ;;  %v6499_v46 = vld [vmem:[#allocation31_spill] sm:$0xff]  ;;  %v6500_v42 = vld [vmem:[#allocation32_spill] sm:$0xff] }
 0x856   :  { %2683 = vmatprep.mubr.bf16.mxu0 %v6137_v19  ;;  %2724 = vmatprep.mubr.bf16.mxu1 %v6137_v19  ;;  %v6496_v19 = vld [vmem:[#allocation28_spill] sm:$0xff] }
 0x858   :  { %2654 = vmatpush1.bf16.msra.mxu0 %v5153_v48  ;;  %2695 = vmatpush1.bf16.msra.mxu1 %v5156_v39  ;;  %v6501_v48 = vld [vmem:[#allocation33_spill] sm:$0xff]  ;;  %v6502_v39 = vld [vmem:[#allocation34_spill] sm:$0xff] }
 0x859   :  { %2655 = vmatprep.subr.bf16.mxu0 %v5159_v52  ;;  %2696 = vmatprep.subr.bf16.mxu1 %v5162_v13  ;;  %v6503_v52 = vld [vmem:[#allocation35_spill] sm:$0xff]  ;;  %v6504_v13 = vld [vmem:[#allocation36_spill] sm:$0xff] }
 0x85c   :  { %2656 = vmatpush1.bf16.msra.mxu0 %v5165_v63  ;;  %2697 = vmatpush1.bf16.msra.mxu1 %v5168_v61  ;;  %v6505_v63 = vld [vmem:[#allocation37_spill] sm:$0xff]  ;;  %v6506_v61 = vld [vmem:[#allocation38_spill] sm:$0xff] }
 0x85d   :  { %2657 = vmatprep.subr.bf16.mxu0 %v5171_v38  ;;  %2698 = vmatprep.subr.bf16.mxu1 %v5174_v41  ;;  %v6507_v38 = vld [vmem:[#allocation39_spill] sm:$0xff]  ;;  %v6508_v41 = vld [vmem:[#allocation40_spill] sm:$0xff] }
 0x860   :  { %2658 = vmatpush1.bf16.msra.mxu0 %v5177_v14  ;;  %2699 = vmatpush1.bf16.msra.mxu1 %v5180_v16  ;;  %v6509_v14 = vld [vmem:[#allocation65_spill] sm:$0xff]  ;;  %v6510_v16 = vld [vmem:[#allocation66_spill] sm:$0xff] }
 0x861   :  { %2659 = vmatprep.subr.bf16.mxu0 %v6428_v49  ;;  %2700 = vmatprep.subr.bf16.mxu1 %v6429_v0  ;;  %v6518_v49 = vld [vmem:[#allocation45_spill] sm:$0xff]  ;;  %v6519_v0 = vld [vmem:[#allocation46_spill] sm:$0xff] }
 0x864   :  { %2660 = vmatpush1.bf16.msra.mxu0 %v6430_v35  ;;  %2701 = vmatpush1.bf16.msra.mxu1 %v6431_v32  ;;  %v6520_v35 = vld [vmem:[#allocation47_spill] sm:$0xff]  ;;  %v6521_v32 = vld [vmem:[#allocation48_spill] sm:$0xff] }
 0x865   :  { %2661 = vmatprep.subr.bf16.mxu0 %v6432_v34  ;;  %2702 = vmatprep.subr.bf16.mxu1 %v6433_v26  ;;  %v6522_v34 = vld [vmem:[#allocation49_spill] sm:$0xff]  ;;  %v6523_v26 = vld [vmem:[#allocation50_spill] sm:$0xff] }
 0x868   :  { %2662 = vmatpush1.bf16.msra.mxu0 %v6434_v22  ;;  %2703 = vmatpush1.bf16.msra.mxu1 %v6435_v29  ;;  %v6524_v22 = vld [vmem:[#allocation78_spill] sm:$0xff]  ;;  %v6525_v29 = vld [vmem:[#allocation79_spill] sm:$0xff] }
 0x869   :  { %2663 = vmatprep.subr.bf16.mxu0 %v6436_v24  ;;  %2704 = vmatprep.subr.bf16.mxu1 %v6437_v43  ;;  %v6526_v24 = vld [vmem:[#allocation80_spill] sm:$0xff]  ;;  %v6527_v43 = vld [vmem:[#allocation81_spill] sm:$0xff] }
 0x86c   :  { %2664 = vmatpush1.bf16.msra.mxu0 %v5213_v36  ;;  %2705 = vmatpush1.bf16.msra.mxu1 %v5216_v54  ;;  %v6515_v36 = vld [vmem:[#allocation42_spill] sm:$0xff]  ;;  %v6516_v54 = vld [vmem:[#allocation43_spill] sm:$0xff] }
 0x86d   :  { %2665 = vmatprep.subr.bf16.mxu0 %v5219_v37  ;;  %2706 = vmatprep.subr.bf16.mxu1 %v5222_v12  ;;  %v6511_v37 = vld [vmem:[#allocation67_spill] sm:$0xff]  ;;  %v6512_v12 = vld [vmem:[#allocation68_spill] sm:$0xff] }
 0x870   :  { %2666 = vmatpush1.bf16.msra.mxu0 %v5225_v57  ;;  %2707 = vmatpush1.bf16.msra.mxu1 %v5228_v11  ;;  %v6513_v57 = vld [vmem:[#allocation69_spill] sm:$0xff] }
 0x871   :  { %2763 = vmatprep.subr.bf16.mxu0 %v5347_v50  ;;  %2804 = vmatprep.subr.bf16.mxu1 %v5350_v40  ;;  %v6514_v11 = vld [vmem:[#allocation41_spill] sm:$0xff]  ;;  %v6528_v50 = vld [vmem:[#allocation51_spill] sm:$0xff]  ;;  %v6529_v40 = vld [vmem:[#allocation52_spill] sm:$0xff] }
 0x873   :  { %2684 = vmatmul.mubr.bf16.vlgmr.msra.gmra.mrb[72].mxu0 %v2539_v6  ;;  %2725 = vmatmul.mubr.bf16.vlgmr.msra.gmra.mrb[72].mxu1 %v2539_v6 }
 0x874   :  { %2764 = vmatpush1.bf16.msra.mxu0 %v5353_v51  ;;  %2805 = vmatpush1.bf16.msra.mxu1 %v5356_v55  ;;  %v6530_v51 = vld [vmem:[#allocation53_spill] sm:$0xff]  ;;  %v6531_v55 = vld [vmem:[#allocation54_spill] sm:$0xff] }
 0x875   :  { %2765 = vmatprep.subr.bf16.mxu0 %v5359_v56  ;;  %2806 = vmatprep.subr.bf16.mxu1 %v5362_v58  ;;  %v6532_v56 = vld [vmem:[#allocation55_spill] sm:$0xff]  ;;  %v6533_v58 = vld [vmem:[#allocation56_spill] sm:$0xff] }
 0x878   :  { %2766 = vmatpush1.bf16.msra.mxu0 %v5365_v59  ;;  %2807 = vmatpush1.bf16.msra.mxu1 %v5368_v60  ;;  %v6534_v59 = vld [vmem:[#allocation57_spill] sm:$0xff]  ;;  %v6535_v60 = vld [vmem:[#allocation58_spill] sm:$0xff] }
 0x879   :  { %2767 = vmatprep.subr.bf16.mxu0 %v5371_v1  ;;  %2808 = vmatprep.subr.bf16.mxu1 %v5374_v2  ;;  %v6536_v1 = vld [vmem:[#allocation59_spill] sm:$0xff]  ;;  %v6537_v2 = vld [vmem:[#allocation60_spill] sm:$0xff] }
 0x87c   :  { %2768 = vmatpush1.bf16.msra.mxu0 %v6496_v19  ;;  %2809 = vmatpush1.bf16.msra.mxu1 %v6497_v8 }
 0x87d   :  { %2769 = vmatprep.subr.bf16.mxu0 %v6498_v45  ;;  %2810 = vmatprep.subr.bf16.mxu1 %v6499_v46 }
 0x880   :  { %2770 = vmatpush1.bf16.msra.mxu0 %v6500_v42  ;;  %2811 = vmatpush1.bf16.msra.mxu1 %v6501_v48 }
 0x881   :  { %2771 = vmatprep.subr.bf16.mxu0 %v6502_v39  ;;  %2812 = vmatprep.subr.bf16.mxu1 %v6503_v52  ;;  %v6552_v39 = vld [vmem:[#allocation14_spill] sm:$0xff] }
 0x884   :  { %2772 = vmatpush1.bf16.msra.mxu0 %v6504_v13  ;;  %2813 = vmatpush1.bf16.msra.mxu1 %v6505_v63  ;;  %v6553_v63 = vld [vmem:[#allocation15_spill] sm:$0xff] }
 0x885   :  { %2773 = vmatprep.subr.bf16.mxu0 %v6506_v61  ;;  %2814 = vmatprep.subr.bf16.mxu1 %v6507_v38 }
 0x888   :  { %2774 = vmatpush1.bf16.msra.mxu0 %v6508_v41  ;;  %2815 = vmatpush1.bf16.msra.mxu1 %v6509_v14 }
 0x889   :  { %2775 = vmatprep.subr.bf16.mxu0 %v6510_v16  ;;  %2816 = vmatprep.subr.bf16.mxu1 %v6511_v37 }
 0x88c   :  { %2776 = vmatpush1.bf16.msra.mxu0 %v6512_v12  ;;  %2817 = vmatpush1.bf16.msra.mxu1 %v6513_v57 }
 0x88d   :  { %2777 = vmatprep.subr.bf16.mxu0 %v6514_v11  ;;  %2818 = vmatprep.subr.bf16.mxu1 %v6515_v36 }
 0x890   :  { %2778 = vmatpush1.bf16.msra.mxu0 %v6516_v54  ;;  %2819 = vmatpush1.bf16.msra.mxu1 %v6517_v17 }
 0x891   :  { %2779 = vmatprep.subr.bf16.mxu0 %v6518_v49  ;;  %2820 = vmatprep.subr.bf16.mxu1 %v6519_v0 }
 0x894   :  { %2780 = vmatpush1.bf16.msra.mxu0 %v6520_v35  ;;  %2821 = vmatpush1.bf16.msra.mxu1 %v6521_v32  ;;  %v6554_v32 = vld [vmem:[#allocation90_spill] sm:$0xff] }
 0x895   :  { %2781 = vmatprep.subr.bf16.mxu0 %v6522_v34  ;;  %2822 = vmatprep.subr.bf16.mxu1 %v6523_v26  ;;  %v6555_v26 = vld [vmem:[#allocation91_spill] sm:$0xff] }
 0x898   :  { %2782 = vmatpush1.bf16.msra.mxu0 %v6524_v22  ;;  %2823 = vmatpush1.bf16.msra.mxu1 %v6525_v29 }
 0x899   :  { %2783 = vmatprep.subr.bf16.mxu0 %v6526_v24  ;;  %2824 = vmatprep.subr.bf16.mxu1 %v6527_v43  ;;  %v6556_v43 = vld [vmem:[#allocation92_spill] sm:$0xff] }
 0x89c   :  { %2784 = vmatpush1.bf16.msra.mxu0 %v6528_v50  ;;  %2825 = vmatpush1.bf16.msra.mxu1 %v6529_v40  ;;  %v6557_v40 = vld [vmem:[#allocation93_spill] sm:$0xff] }
 0x89d   :  { %2785 = vmatprep.subr.bf16.mxu0 %v6530_v51  ;;  %2826 = vmatprep.subr.bf16.mxu1 %v6531_v55 }
 0x8a0   :  { %2786 = vmatpush1.bf16.msra.mxu0 %v6532_v56  ;;  %2827 = vmatpush1.bf16.msra.mxu1 %v6533_v58 }
 0x8a1   :  { %2787 = vmatprep.subr.bf16.mxu0 %v6534_v59  ;;  %2828 = vmatprep.subr.bf16.mxu1 %v6535_v60 }
 0x8a4   :  { %2788 = vmatpush1.bf16.msra.mxu0 %v6536_v1  ;;  %2829 = vmatpush1.bf16.msra.mxu1 %v6537_v2 }
 0x8a5   :  { %2789 = vmatprep.subr.bf16.mxu0 %v6538_v15  ;;  %2830 = vmatprep.subr.bf16.mxu1 %v6539_v7 }
 0x8a8   :  { %2790 = vmatpush1.bf16.msra.mxu0 %v6540_v28  ;;  %2831 = vmatpush1.bf16.msra.mxu1 %v6541_v23 }
 0x8a9   :  { %2791 = vmatprep.subr.bf16.mxu0 %v6542_v53  ;;  %2832 = vmatprep.subr.bf16.mxu1 %v6543_v18 }
 0x8ac   :  { %2792 = vmatpush1.bf16.msra.mxu0 %v6544_v21  ;;  %2833 = vmatpush1.bf16.msra.mxu1 %v6545_v4 }
 0x8ad   :  { %2793 = vmatprep.subr.bf16.mxu0 %v6546_v20  ;;  %2834 = vmatprep.subr.bf16.mxu1 %v6547_v3 }
 0x8b0   :  { %2794 = vmatpush1.bf16.msra.mxu0 %v6548_v5  ;;  %2835 = vmatpush1.bf16.msra.mxu1 %v6549_v30 }
 0x926   :  { %v2575_v25 = vpop.f32.mrb[68].mxu0  ;;  %v2616_v62 = vpop.f32.mrb[68].mxu1 }
 0x927   :  { %v2576_v47 = vadd.f32 %v2575_v25, %v6550_v10  ;;  %v2577_v9 = vpop.f32.mrb[69].mxu0  ;;  %v2618_v33 = vpop.f32.mrb[69].mxu1  ;;  %v2617_v61 = vadd.f32 %v2616_v62, %v6553_v63 }
 0x928   :  { %v2578_v6 = vadd.f32 %v2577_v9, %v6551_v31  ;;  %v2579_v19 = vpop.f32.mrb[70].mxu0  ;;  %v2620_v8 = vpop.f32.mrb[70].mxu1  ;;  %v2619_v52 = vadd.f32 %v2618_v33, %v6552_v39 }
 0x929   :  { %v3159_v45 = vmul.f32 -1.442695, %v2576_v47  ;;  %v2580_v46 = vpop.f32.mrb[71].mxu0  ;;  %v2621_v42 = vpop.f32.mrb[71].mxu1  ;;  %v3411_v8 = vld [vmem:[%s5707_s6] sm:$0xff]  }
 0x92a   :  { %v3160_v48 = vmul.f32 -1.442695, %v2578_v6  ;;  %v3161_v13 = vmul.f32 -1.442695, %v2619_v52  ;;  %v3413_v46 = vld [vmem:[%s5707_s6 + $0x10] sm:$0xff]   ;;  %v3414_v42 = vld [vmem:[%s5707_s6 + $0x18] sm:$0xff]  }
 0x92b   :  { %3627 = vpow2.f32 %v3159_v45  ;;  %v3944_v45 = vmov 0.0   ;;  %v3416_v52 = vld [vmem:[%s5707_s6 + $0x28] sm:$0xff]  }
 0x92c   :  { %3629 = vpow2.f32 %v3160_v48  ;;  %3186 = vmatprep.subr.bf16.mxu0 %v3944_v45  ;;  %v3415_v48 = vld [vmem:[%s5707_s6 + $0x20] sm:$0xff]  }
 0x92d   :  { %3631 = vpow2.f32 %v3161_v13  ;;  %v3417_v13 = vld [vmem:[%s5707_s6 + $0x30] sm:$0xff]  }
 0x92e   :  { %3633 = vtanh.f32 %v2617_v61  ;;  %v3418_v61 = vld [vmem:[%s5707_s6 + $0x38] sm:$0xff]  }
 0x935   :  { %v3628_v38 = vpop.eup %3627 }
 0x936   :  { %v3630_v41 = vpop.eup %3629  ;;  %v2626_v14 = vadd.f32 1.0, %v3628_v38 }
 0x937   :  { %v2632_v16 = vadd.f32 1.0, %v3630_v41  ;;  %v3632_v37 = vpop.eup %3631 }
 0x938   :  { %3635 = vrcp.f32 %v2626_v14  ;;  %v3634_v12 = vpop.eup %3633  ;;  %v2638_v54 = vadd.f32 1.0, %v3632_v37 }
 0x939   :  { %3637 = vrcp.f32 %v2632_v16 }
 0x93a   :  { %3639 = vrcp.f32 %v2638_v54 }
 0x942   :  { %v3636_v57 = vpop.eup %3635 }
 0x943   :  { %v3638_v11 = vpop.eup %3637  ;;  %v2643_v36 = vmul.f32 %v3636_v57, %v3634_v12 }
 0x944   :  { %v2642_v17 = vmul.f32 %v3638_v11, %v5546_v44  ;;  %v3640_v1 = vpop.eup %3639 }
 0x946   :  { %v2685_v49 = vpop.f32.mrb[72].mxu0  ;;  %v2726_v0 = vpop.f32.mrb[72].mxu1  ;;  %v5658_v35 = vadd.f32 %v2643_v36, %v2642_v17 }
 0x947   :  { %v2733_v34 = vadd.f32 %v2685_v49, %v6554_v32  ;;  %v2735_v22 = vadd.f32 %v2726_v0, %v6555_v26  ;;  %v2687_v29 = vpop.f32.mrb[73].mxu0  ;;  %v2728_v24 = vpop.f32.mrb[73].mxu1 }
 0x948   :  { %v2734_v50 = vadd.f32 %v2687_v29, %v6556_v43  ;;  %v2736_v51 = vadd.f32 %v2728_v24, %v6557_v40  ;;  %v2689_v55 = vpop.f32.mrb[74].mxu0  ;;  %v2730_v56 = vpop.f32.mrb[74].mxu1  ;;  %3641 = vtanh.f32 %v5658_v35 }
 0x949   :  { %v3162_v44 = vmul.f32 -1.442695, %v2733_v34  ;;  %v2690_v58 = vpop.f32.mrb[75].mxu0  ;;  %v2731_v59 = vpop.f32.mrb[75].mxu1 }
 0x94a   :  { %v3163_v60 = vmul.f32 -1.442695, %v2734_v50  ;;  %v3164_v15 = vmul.f32 -1.442695, %v2736_v51  ;;  %v3168_v59 = vld [vmem:[%s5708_s7] ss:$0 sm:$0xff] }
 0x94b   :  { %3643 = vpow2.f32 %v3162_v44 }
 0x94c   :  { %3645 = vpow2.f32 %v3163_v60 }
 0x94d   :  { %3647 = vpow2.f32 %v3164_v15 }
 0x94e   :  { %3649 = vtanh.f32 %v2735_v22 }
 0x952   :  { %v3642_v2 = vpop.eup %3641 }
 0x953   :  { %v2646_v7 = vmul.f32 %v3642_v2, %v3640_v1 }
 0x955   :  { %v3644_v28 = vpop.eup %3643  ;;  %v2762_v23 = vpack.c.bf16 %v2646_v7, %v2646_v7 }
 0x956   :  { %v3646_v53 = vpop.eup %3645  ;;  %v2740_v18 = vadd.f32 1.0, %v3644_v28 }
 0x957   :  { %v2746_v21 = vadd.f32 1.0, %v3646_v53  ;;  %2795 = vmatprep.mubr.bf16.mxu0 %v2762_v23  ;;  %2836 = vmatprep.mubr.bf16.mxu1 %v2762_v23  ;;  %v3648_v4 = vpop.eup %3647 }
 0x958   :  { %3651 = vrcp.f32 %v2740_v18  ;;  %v3650_v20 = vpop.eup %3649  ;;  %v2752_v25 = vadd.f32 1.0, %v3648_v4 }
 0x959   :  { %3653 = vrcp.f32 %v2746_v21 }
 0x95a   :  { %3655 = vrcp.f32 %v2752_v25 }
 0x962   :  { %v3652_v3 = vpop.eup %3651 }
 0x963   :  { %v3654_v5 = vpop.eup %3653  ;;  %v2757_v30 = vmul.f32 %v3652_v3, %v3650_v20 }
 0x964   :  { %v2756_v62 = vmul.f32 %v3654_v5, %v5554_v27  ;;  %v3656_v9 = vpop.eup %3655  ;;  %v3412_v27 = vld [vmem:[%s5707_s6 + $0x8] sm:$0xff]  }
 0x966   :  { %v2758_v47 = vadd.f32 %v2757_v30, %v2756_v62 }
 0x968   :  { %3657 = vtanh.f32 %v2758_v47 }
 0x972   :  { %v3658_v33 = vpop.eup %3657 }
 0x973   :  { %v2760_v6 = vmul.f32 %v3658_v33, %v3656_v9 }
 0x975   :  { %v2761_v19 = vpack.c.bf16 %v2760_v6, %v2760_v6 }
 0x977   :  { %2796 = vmatmul.mubr.bf16.vlgmr.msra.gmra.mrb[76].mxu0 %v2761_v19  ;;  %2837 = vmatmul.mubr.bf16.vlgmr.msra.gmra.mrb[76].mxu1 %v2761_v19 }
 0x978   :  { %3187 = vmatpush3.bf16.msra.mxu0 %v3411_v8  ;;  %3202 = vmatprep.mubr.msk.bf16.mxu0 %vm3945_vm0, %v3944_v45 }
 0x979   :  { %3188 = vmatprep.subr.bf16.mxu0 %v3944_v45 }
 0x97c   :  { %3189 = vmatpush3.bf16.msra.mxu0 %v3412_v27 }
 0x97d   :  { %3190 = vmatprep.subr.bf16.mxu0 %v3944_v45 }
 0x980   :  { %3191 = vmatpush3.bf16.msra.mxu0 %v3413_v46 }
 0x981   :  { %3192 = vmatprep.subr.bf16.mxu0 %v3944_v45 }
 0x984   :  { %3193 = vmatpush3.bf16.msra.mxu0 %v3414_v42 }
 0x985   :  { %3194 = vmatprep.subr.bf16.mxu0 %v3944_v45 }
 0x988   :  { %3195 = vmatpush3.bf16.msra.mxu0 %v3415_v48 }
 0x989   :  { %3196 = vmatprep.subr.bf16.mxu0 %v3944_v45 }
 0x98c   :  { %3197 = vmatpush3.bf16.msra.mxu0 %v3416_v52 }
 0x98d   :  { %3198 = vmatprep.subr.bf16.mxu0 %v3944_v45 }
 0x990   :  { %3199 = vmatpush3.bf16.msra.mxu0 %v3417_v13 }
 0x991   :  { %3200 = vmatprep.subr.bf16.mxu0 %v3944_v45 }
 0x994   :  { %3201 = vmatpush3.bf16.msra.mxu0 %v3418_v61 }
 0xa4a   :  { %v2797_v38 = vpop.f32.mrb[76].mxu0  ;;  %v2838_v41 = vpop.f32.mrb[76].mxu1 }
 0xa4b   :  { %v2798_v14 = vadd.f32 %v2797_v38, %v6550_v10  ;;  %v2799_v16 = vpop.f32.mrb[77].mxu0  ;;  %v2840_v37 = vpop.f32.mrb[77].mxu1  ;;  %v2839_v34 = vadd.f32 %v2838_v41, %v6553_v63 }
 0xa4c   :  { %v2800_v12 = vadd.f32 %v2799_v16, %v6551_v31  ;;  %v2801_v57 = vpop.f32.mrb[78].mxu0  ;;  %v2842_v11 = vpop.f32.mrb[78].mxu1  ;;  %v2841_v0 = vadd.f32 %v2840_v37, %v6552_v39 }
 0xa4d   :  { %v3165_v36 = vmul.f32 -1.442695, %v2798_v14  ;;  %v2802_v54 = vpop.f32.mrb[79].mxu0  ;;  %v2843_v17 = vpop.f32.mrb[79].mxu1 }
 0xa4e   :  { %v3166_v49 = vmul.f32 -1.442695, %v2800_v12  ;;  %v3167_v32 = vmul.f32 -1.442695, %v2841_v0 }
 0xa4f   :  { %3659 = vpow2.f32 %v3165_v36 }
 0xa50   :  { %3661 = vpow2.f32 %v3166_v49 }
 0xa51   :  { %3663 = vpow2.f32 %v3167_v32 }
 0xa52   :  { %3665 = vtanh.f32 %v2839_v34 }
 0xa59   :  { %v3660_v26 = vpop.eup %3659 }
 0xa5a   :  { %v3662_v22 = vpop.eup %3661  ;;  %v2848_v10 = vadd.f32 1.0, %v3660_v26 }
 0xa5b   :  { %v2854_v29 = vadd.f32 1.0, %v3662_v22  ;;  %v3664_v31 = vpop.eup %3663 }
 0xa5c   :  { %3667 = vrcp.f32 %v2848_v10  ;;  %v3666_v24 = vpop.eup %3665  ;;  %v2860_v51 = vadd.f32 1.0, %v3664_v31 }
 0xa5d   :  { %3669 = vrcp.f32 %v2854_v29 }
 0xa5e   :  { %3671 = vrcp.f32 %v2860_v51 }
 0xa66   :  { %v3668_v43 = vpop.eup %3667 }
 0xa67   :  { %v3670_v50 = vpop.eup %3669  ;;  %v2865_v40 = vmul.f32 %v3668_v43, %v3666_v24 }
 0xa68   :  { %v2864_v55 = vmul.f32 %v3670_v50, %v5658_v35  ;;  %v3672_v63 = vpop.eup %3671 }
 0xa6a   :  { %v2866_v39 = vadd.f32 %v2865_v40, %v2864_v55 }
 0xa6c   :  { %3673 = vtanh.f32 %v2866_v39 }
 0xa76   :  { %v3674_v56 = vpop.eup %3673 }
 0xa77   :  { %v2868_v44 = vmul.f32 %v3674_v56, %v3672_v63 }
 0xa79   :  { %v2869_v58 = vpack.c.bf16 %v2868_v44, %v2868_v44 }
 0xa7b   :  { %3203 = vmatmul.mubr.bf16.vlgmr.msra.gmra.mrb[80].mxu0 %v2869_v58 }
 0xb4e   :  { %v2975_v60 = vpop.f32.mrb[80].mxu0 }
 0xb4f   :  { %v2976_v1 = vadd.f32 %v3168_v59, %v2975_v60  ;;  %v3204_v2 = vpop.f32.mrb[81].mxu0 }
 0xb50   :  { %v2978_v15 = vpop.f32.mrb[82].mxu0 }
 0xb51   :  { %2981 = vst [vmem:[%s5709_s8] sm:$0xff] %v2976_v1  ;;  %v3205_v35 = vpop.f32.mrb[83].mxu0 }
 0xb52   :  { %2986 = vsyncpa [#allocation4], 1 }
 0xb53   :  { %2987 = vsyncpa [#allocation6], 1 }

</bundles_post_ra>
